<compile_context>
chip_gen: v7x
topology: tpu7x:2x2x1
jax: 0.10.0
libtpu: 0.0.40
codegen_flags: <defaults>
</compile_context>

<pallas_src>
import functools

import jax
import jax.numpy as jnp
from jax.experimental import pallas as pl
from jax.experimental.pallas import tpu as pltpu


C_PAD = 128                      # lane-dense channel width carried through the net
_CHANNELS = [3, 16, 32, 64]      # tiny AlexNet-like backbone: 3 stages (real widths)


def _round_up(x, m):
    return ((x + m - 1) // m) * m


# ---------------------------------------------------------------------------
# Pallas kernel 1: conv (as im2col matmul) fused with bias + ReLU  (MXU path)
#   inputs bf16, accumulation / bias / ReLU in f32, 128-lane-dense output.
# ---------------------------------------------------------------------------
def _conv_mm_kernel(x_ref, w_ref, b_ref, o_ref):
    y = jnp.dot(x_ref[...], w_ref[...], preferred_element_type=jnp.float32)
    y = y + b_ref[...]
    o_ref[...] = jnp.maximum(y, 0.0)


def conv_matmul_relu(patches_bf16, w_mat, bias):
    """patches: [R, K] bf16 (K % 128 == 0), w_mat: [K, 128] bf16, bias: [1, 128] f32
       -> [R, 128] f32."""
    R, K = patches_bf16.shape
    C_out = w_mat.shape[1]

    # Largest tile that fits comfortably; pad rows so any R works.
    TR = min(512, _round_up(R, 8))
    R_pad = _round_up(R, TR)
    if R_pad != R:
        patches_bf16 = jnp.pad(patches_bf16, ((0, R_pad - R), (0, 0)))
    grid = (R_pad // TR,)

    out = pl.pallas_call(
        _conv_mm_kernel,
        out_shape=jax.ShapeDtypeStruct((R_pad, C_out), jnp.float32),
        grid_spec=pltpu.PrefetchScalarGridSpec(
            num_scalar_prefetch=0,
            grid=grid,
            in_specs=[
                pl.BlockSpec((TR, K), lambda i: (i, 0)),
                pl.BlockSpec((K, C_out), lambda i: (0, 0)),
                pl.BlockSpec((1, C_out), lambda i: (0, 0)),
            ],
            out_specs=pl.BlockSpec((TR, C_out), lambda i: (i, 0)),
        ),
        compiler_params=pltpu.CompilerParams(
            dimension_semantics=("parallel",)),
    )(patches_bf16, w_mat, bias)
    if R_pad != R:
        out = out[:R]
    return out


# ---------------------------------------------------------------------------
# Pallas kernel 2: fused LPIPS distance over ALL layers, gridded over batch.
#   For each sample: unit-normalize along (padded, lane-dense) channels,
#   squared diff, weighted channel sum, spatial mean, sum over layers.
#   Output is a lane-dense (1, 8, 128) block (score broadcast; read [n,0,0]).
# ---------------------------------------------------------------------------
def _lpips_dist_kernel(a0_ref, b0_ref, a1_ref, b1_ref, a2_ref, b2_ref,
                       w_ref, o_ref):
    eps = 1e-10
    total = jnp.zeros((1, 1), jnp.float32)
    layer_refs = ((a0_ref, b0_ref), (a1_ref, b1_ref), (a2_ref, b2_ref))
    for li, (a_ref, b_ref) in enumerate(layer_refs):
        hw = a_ref.shape[1]
        ch = min(64, hw)                      # chunk HW to keep vreg pressure low
        w = w_ref[pl.ds(li, 1), :]            # [1, 128] non-negative lin weights
        layer_sum = jnp.zeros((1, 1), jnp.float32)
        for c0 in range(0, hw, ch):
            a = a_ref[0, pl.ds(c0, ch), :]    # [ch, 128] img1 features
            b = b_ref[0, pl.ds(c0, ch), :]    # [ch, 128] img2 features
            # eps added OUTSIDE sqrt (matches torch LPIPS normalize_tensor)
            inv_a = pl.reciprocal(
                jnp.sqrt(jnp.sum(a * a, axis=-1, keepdims=True)) + eps, approx=True)
            inv_b = pl.reciprocal(
                jnp.sqrt(jnp.sum(b * b, axis=-1, keepdims=True)) + eps, approx=True)
            d = a * inv_a - b * inv_b                          # fused, no n1/n2 temps
            per_pix = jnp.sum(d * d * w, axis=-1, keepdims=True)   # [ch, 1] lane-dense
            layer_sum = layer_sum + jnp.sum(per_pix, axis=0, keepdims=True)
        total = total + layer_sum * (1.0 / hw)                 # spatial mean
    o_ref[...] = jnp.broadcast_to(total.reshape(1, 1, 1), o_ref.shape)


def lpips_distance(f1s, f2s, w_all):
    """f1s/f2s: lists of 3 arrays [N, HW_l, 128]; w_all: [3, 128] -> [N, 8, 128]."""
    N = f1s[0].shape[0]
    C = f1s[0].shape[2]
    inputs, in_specs = [], []
    for a, b in zip(f1s, f2s):
        hw = a.shape[1]
        in_specs.append(pl.BlockSpec((1, hw, C), lambda n: (n, 0, 0)))
        in_specs.append(pl.BlockSpec((1, hw, C), lambda n: (n, 0, 0)))
        inputs.extend([a, b])
    in_specs.append(pl.BlockSpec((3, C), lambda n: (0, 0)))
    inputs.append(w_all)
    return pl.pallas_call(
        _lpips_dist_kernel,
        out_shape=jax.ShapeDtypeStruct((N, 8, 128), jnp.float32),
        grid_spec=pltpu.PrefetchScalarGridSpec(
            num_scalar_prefetch=0,
            grid=(N,),
            in_specs=in_specs,
            out_specs=pl.BlockSpec((1, 8, 128), lambda n: (n, 0, 0)),
        ),
        compiler_params=pltpu.CompilerParams(
            dimension_semantics=("parallel",)),
    )(*inputs)


# ---------------------------------------------------------------------------
# Plain-JAX glue: scaling layer, im2col patch extraction, pooling, params
# ---------------------------------------------------------------------------
def _scale_input(x_nchw):
    # LPIPS ScalingLayer (inputs expected in [-1, 1])
    shift = jnp.array([-0.030, -0.088, -0.188], jnp.float32).reshape(1, 3, 1, 1)
    scale = jnp.array([0.458, 0.448, 0.450], jnp.float32).reshape(1, 3, 1, 1)
    return (x_nchw - shift) / scale


def _im2col_3x3(x_nhwc):
    # 3x3 conv, stride 1, pad 1 ("same") patch extraction
    # TODO(synk): fold into the conv kernel (9 shifted in-VMEM matmuls) to avoid
    #             materializing 9x activation bytes in HBM at real resolutions.
    N, H, W, C = x_nhwc.shape
    xp = jnp.pad(x_nhwc, ((0, 0), (1, 1), (1, 1), (0, 0)))
    cols = []
    for dy in range(3):
        for dx in range(3):
            cols.append(xp[:, dy:dy + H, dx:dx + W, :])
    patches = jnp.concatenate(cols, axis=-1)            # [N, H, W, 9*C]
    return patches.reshape(N * H * W, 9 * C)


def _max_pool_2x2(x_nhwc):
    N, H, W, C = x_nhwc.shape
    x = x_nhwc.reshape(N, H // 2, 2, W // 2, 2, C)
    return jnp.max(x, axis=(2, 4))


def init_params(key):
    """Real-sized synthetic weights, zero-padded to lane-dense (x128) matmul form."""
    params = {}
    lins = []
    keys = jax.random.split(key, 9)
    ki = 0
    for l in range(3):
        cin, cout = _CHANNELS[l], _CHANNELS[l + 1]
        fan_in = 9 * cin
        w = (jax.random.normal(keys[ki], (3, 3, cin, cout), jnp.float32)
             * (2.0 / fan_in) ** 0.5)
        ki += 1
        b = 0.01 * jax.random.normal(keys[ki], (cout,), jnp.float32)
        ki += 1
        lin = jnp.abs(jax.random.normal(keys[ki], (cout,), jnp.float32)) * 0.1
        ki += 1

        # Layer 0 sees the raw 3-channel image; later layers see 128-padded activations.
        cin_feed = cin if l == 0 else C_PAD
        w_full = jnp.zeros((3, 3, cin_feed, C_PAD),
                           jnp.float32).at[:, :, :cin, :cout].set(w)
        w_mat = w_full.reshape(9 * cin_feed, C_PAD)
        k_pad = _round_up(9 * cin_feed, 128)
        if k_pad != 9 * cin_feed:
            w_mat = jnp.pad(w_mat, ((0, k_pad - 9 * cin_feed), (0, 0)))
        params[f"wmat{l}"] = w_mat.astype(jnp.bfloat16)      # bf16 MXU weights
        params[f"bias{l}"] = jnp.pad(b, (0, C_PAD - cout)).reshape(1, C_PAD)
        lins.append(jnp.pad(lin, (0, C_PAD - cout)))         # zero weights on pad chans
    params["lin_all"] = jnp.stack(lins, axis=0)              # [3, 128]
    return params


def extract_features(img_nchw, params):
    """img_nchw: [B, 3, H, W] (both images stacked) -> list of [B, H, W, 128]."""
    x = _scale_input(img_nchw)
    x = jnp.transpose(x, (0, 2, 3, 1))                  # NCHW -> NHWC
    feats = []
    for l in range(3):
        if l > 0:
            x = _max_pool_2x2(x)
        B, H, W, C = x.shape
        patches = _im2col_3x3(x)                        # [B*H*W, 9*C]
        K = patches.shape[1]
        K_pad = _round_up(K, 128)
        if K_pad != K:
            patches = jnp.pad(patches, ((0, 0), (0, K_pad - K)))
        y = conv_matmul_relu(patches.astype(jnp.bfloat16),
                             params[f"wmat{l}"], params[f"bias{l}"])
        x = y.reshape(B, H, W, C_PAD)                   # padded channels are exactly 0
        feats.append(x)
    return feats


def lpips_forward(img1, img2, params):
    """img1, img2: [N, 3, H, W] in [-1, 1]  ->  scalar LPIPS (batch mean)."""
    N = img1.shape[0]
    stacked = jnp.concatenate([img1, img2], axis=0)     # one conv pass for both images
    feats = extract_features(stacked, params)
    f1s, f2s = [], []
    for f in feats:
        B2, H, W, C = f.shape
        f = f.reshape(B2, H * W, C)
        f1s.append(f[:N])
        f2s.append(f[N:])
    scores = lpips_distance(f1s, f2s, params["lin_all"])   # [N, 8, 128]
    return jnp.mean(scores[:, 0, 0])                        # reduction='mean'


if __name__ == "__main__":
    key = jax.random.PRNGKey(0)
    k1, k2, kp = jax.random.split(key, 3)
    preds = jax.random.uniform(k1, (2, 3, 16, 16), jnp.float32, -1.0, 1.0)
    target = jax.random.uniform(k2, (2, 3, 16, 16), jnp.float32, -1.0, 1.0)
    params = init_params(kp)

    fwd = jax.jit(functools.partial(lpips_forward, params=params))
    out = fwd(preds, target)
    jax.block_until_ready(out)
    assert out.shape == () and jnp.isfinite(out)
    print("KERNEL_OK")
</pallas_src>

<mosaic_0001>
module attributes {stable_mosaic.version = 11 : i64} {
  func.func @_conv_mm_kernel(%arg0: i32, %arg1: memref<512x128xbf16, #tpu.memory_space<vmem>>, %arg2: memref<128x128xbf16, #tpu.memory_space<vmem>>, %arg3: memref<1x128xf32, #tpu.memory_space<vmem>>, %arg4: memref<512x128xf32, #tpu.memory_space<vmem>>) attributes {dimension_semantics = [#tpu.dimension_semantics<parallel>], iteration_bounds = array<i64: 2>, scalar_prefetch = 0 : i64, scratch_operands = 0 : i64, tpu.core_type = #tpu.core_type<tc>, window_params = [{transform_indices = @transform_0, window_bounds = array<i64: 512, 128>}, {pipeline_mode = #tpu.pipeline_mode<synchronous>, transform_indices = @transform_1, window_bounds = array<i64: 128, 128>}, {pipeline_mode = #tpu.pipeline_mode<synchronous>, transform_indices = @transform_2, window_bounds = array<i64: 1, 128>}, {transform_indices = @transform_3, window_bounds = array<i64: 512, 128>}]} {
    %c0 = arith.constant 0 : index
    %c0_0 = arith.constant 0 : index
    %0 = vector.load %arg1[%c0, %c0_0] : memref<512x128xbf16, #tpu.memory_space<vmem>>, vector<512x128xbf16>
    %c0_1 = arith.constant 0 : index
    %c0_2 = arith.constant 0 : index
    %1 = vector.load %arg2[%c0_1, %c0_2] : memref<128x128xbf16, #tpu.memory_space<vmem>>, vector<128x128xbf16>
    %cst = arith.constant dense<0.000000e+00> : vector<512x128xf32>
    %2 = tpu.matmul %0, %1, %cst {dimension_numbers = #tpu.dot_dimension_numbers<[1], [0], [0], [1], [0, 0, 1, 1], [], []>} : vector<512x128xbf16>, vector<128x128xbf16>, vector<512x128xf32> -> vector<512x128xf32>
    %c0_3 = arith.constant 0 : index
    %c0_4 = arith.constant 0 : index
    %3 = vector.load %arg3[%c0_3, %c0_4] : memref<1x128xf32, #tpu.memory_space<vmem>>, vector<1x128xf32>
    %4 = vector.broadcast %3 : vector<1x128xf32> to vector<512x128xf32>
    %5 = arith.addf %2, %4 : vector<512x128xf32>
    %cst_5 = arith.constant 0.000000e+00 : f32
    %6 = vector.broadcast %cst_5 : f32 to vector<512x128xf32>
    %7 = arith.maximumf %5, %6 : vector<512x128xf32>
    %c0_6 = arith.constant 0 : index
    %c0_7 = arith.constant 0 : index
    %8 = vector.load %arg4[%c0_6, %c0_7] : memref<512x128xf32, #tpu.memory_space<vmem>>, vector<512x128xf32>
    tpu.vector_store %arg4[%c0_6, %c0_7], %7 {strides = array<i32>} : memref<512x128xf32, #tpu.memory_space<vmem>>, vector<512x128xf32>,
    return
  }
  func.func @transform_0(%arg0: i32) -> (i32, i32) {
    %c0_i32 = arith.constant 0 : i32
    %c0_i32_0 = arith.constant 0 : i32
    return %arg0, %c0_i32 : i32, i32
  }
  func.func @transform_1(%arg0: i32) -> (i32, i32) {
    %c0_i32 = arith.constant 0 : i32
    %c0_i32_0 = arith.constant 0 : i32
    %c0_i32_1 = arith.constant 0 : i32
    return %c0_i32, %c0_i32_0 : i32, i32
  }
  func.func @transform_2(%arg0: i32) -> (i32, i32) {
    %c0_i32 = arith.constant 0 : i32
    %c0_i32_0 = arith.constant 0 : i32
    %c0_i32_1 = arith.constant 0 : i32
    return %c0_i32, %c0_i32_0 : i32, i32
  }
  func.func @transform_3(%arg0: i32) -> (i32, i32) {
    %c0_i32 = arith.constant 0 : i32
    %c0_i32_0 = arith.constant 0 : i32
    return %arg0, %c0_i32 : i32, i32
  }
}

module attributes {stable_mosaic.version = 11 : i64} {
  func.func @_conv_mm_kernel(%arg0: i32, %arg1: memref<256x1152xbf16, #tpu.memory_space<vmem>>, %arg2: memref<1152x128xbf16, #tpu.memory_space<vmem>>, %arg3: memref<1x128xf32, #tpu.memory_space<vmem>>, %arg4: memref<256x128xf32, #tpu.memory_space<vmem>>) attributes {dimension_semantics = [#tpu.dimension_semantics<parallel>], iteration_bounds = array<i64: 1>, scalar_prefetch = 0 : i64, scratch_operands = 0 : i64, tpu.core_type = #tpu.core_type<tc>, window_params = [{transform_indices = @transform_0, window_bounds = array<i64: 256, 1152>}, {pipeline_mode = #tpu.pipeline_mode<synchronous>, transform_indices = @transform_1, window_bounds = array<i64: 1152, 128>}, {pipeline_mode = #tpu.pipeline_mode<synchronous>, transform_indices = @transform_2, window_bounds = array<i64: 1, 128>}, {transform_indices = @transform_3, window_bounds = array<i64: 256, 128>}]} {
    %c0 = arith.constant 0 : index
    %c0_0 = arith.constant 0 : index
    %0 = vector.load %arg1[%c0, %c0_0] : memref<256x1152xbf16, #tpu.memory_space<vmem>>, vector<256x1152xbf16>
    %c0_1 = arith.constant 0 : index
    %c0_2 = arith.constant 0 : index
    %1 = vector.load %arg2[%c0_1, %c0_2] : memref<1152x128xbf16, #tpu.memory_space<vmem>>, vector<1152x128xbf16>
    %cst = arith.constant dense<0.000000e+00> : vector<256x128xf32>
    %2 = tpu.matmul %0, %1, %cst {dimension_numbers = #tpu.dot_dimension_numbers<[1], [0], [0], [1], [0, 0, 1, 1], [], []>} : vector<256x1152xbf16>, vector<1152x128xbf16>, vector<256x128xf32> -> vector<256x128xf32>
    %c0_3 = arith.constant 0 : index
    %c0_4 = arith.constant 0 : index
    %3 = vector.load %arg3[%c0_3, %c0_4] : memref<1x128xf32, #tpu.memory_space<vmem>>, vector<1x128xf32>
    %4 = vector.broadcast %3 : vector<1x128xf32> to vector<256x128xf32>
    %5 = arith.addf %2, %4 : vector<256x128xf32>
    %cst_5 = arith.constant 0.000000e+00 : f32
    %6 = vector.broadcast %cst_5 : f32 to vector<256x128xf32>
    %7 = arith.maximumf %5, %6 : vector<256x128xf32>
    %c0_6 = arith.constant 0 : index
    %c0_7 = arith.constant 0 : index
    %8 = vector.load %arg4[%c0_6, %c0_7] : memref<256x128xf32, #tpu.memory_space<vmem>>, vector<256x128xf32>
    tpu.vector_store %arg4[%c0_6, %c0_7], %7 {strides = array<i32>} : memref<256x128xf32, #tpu.memory_space<vmem>>, vector<256x128xf32>,
    return
  }
  func.func @transform_0(%arg0: i32) -> (i32, i32) {
    %c0_i32 = arith.constant 0 : i32
    %c0_i32_0 = arith.constant 0 : i32
    return %arg0, %c0_i32 : i32, i32
  }
  func.func @transform_1(%arg0: i32) -> (i32, i32) {
    %c0_i32 = arith.constant 0 : i32
    %c0_i32_0 = arith.constant 0 : i32
    %c0_i32_1 = arith.constant 0 : i32
    return %c0_i32, %c0_i32_0 : i32, i32
  }
  func.func @transform_2(%arg0: i32) -> (i32, i32) {
    %c0_i32 = arith.constant 0 : i32
    %c0_i32_0 = arith.constant 0 : i32
    %c0_i32_1 = arith.constant 0 : i32
    return %c0_i32, %c0_i32_0 : i32, i32
  }
  func.func @transform_3(%arg0: i32) -> (i32, i32) {
    %c0_i32 = arith.constant 0 : i32
    %c0_i32_0 = arith.constant 0 : i32
    return %arg0, %c0_i32 : i32, i32
  }
}

module attributes {stable_mosaic.version = 11 : i64} {
  func.func @_conv_mm_kernel(%arg0: i32, %arg1: memref<64x1152xbf16, #tpu.memory_space<vmem>>, %arg2: memref<1152x128xbf16, #tpu.memory_space<vmem>>, %arg3: memref<1x128xf32, #tpu.memory_space<vmem>>, %arg4: memref<64x128xf32, #tpu.memory_space<vmem>>) attributes {dimension_semantics = [#tpu.dimension_semantics<parallel>], iteration_bounds = array<i64: 1>, scalar_prefetch = 0 : i64, scratch_operands = 0 : i64, tpu.core_type = #tpu.core_type<tc>, window_params = [{transform_indices = @transform_0, window_bounds = array<i64: 64, 1152>}, {pipeline_mode = #tpu.pipeline_mode<synchronous>, transform_indices = @transform_1, window_bounds = array<i64: 1152, 128>}, {pipeline_mode = #tpu.pipeline_mode<synchronous>, transform_indices = @transform_2, window_bounds = array<i64: 1, 128>}, {transform_indices = @transform_3, window_bounds = array<i64: 64, 128>}]} {
    %c0 = arith.constant 0 : index
    %c0_0 = arith.constant 0 : index
    %0 = vector.load %arg1[%c0, %c0_0] : memref<64x1152xbf16, #tpu.memory_space<vmem>>, vector<64x1152xbf16>
    %c0_1 = arith.constant 0 : index
    %c0_2 = arith.constant 0 : index
    %1 = vector.load %arg2[%c0_1, %c0_2] : memref<1152x128xbf16, #tpu.memory_space<vmem>>, vector<1152x128xbf16>
    %cst = arith.constant dense<0.000000e+00> : vector<64x128xf32>
    %2 = tpu.matmul %0, %1, %cst {dimension_numbers = #tpu.dot_dimension_numbers<[1], [0], [0], [1], [0, 0, 1, 1], [], []>} : vector<64x1152xbf16>, vector<1152x128xbf16>, vector<64x128xf32> -> vector<64x128xf32>
    %c0_3 = arith.constant 0 : index
    %c0_4 = arith.constant 0 : index
    %3 = vector.load %arg3[%c0_3, %c0_4] : memref<1x128xf32, #tpu.memory_space<vmem>>, vector<1x128xf32>
    %4 = vector.broadcast %3 : vector<1x128xf32> to vector<64x128xf32>
    %5 = arith.addf %2, %4 : vector<64x128xf32>
    %cst_5 = arith.constant 0.000000e+00 : f32
    %6 = vector.broadcast %cst_5 : f32 to vector<64x128xf32>
    %7 = arith.maximumf %5, %6 : vector<64x128xf32>
    %c0_6 = arith.constant 0 : index
    %c0_7 = arith.constant 0 : index
    %8 = vector.load %arg4[%c0_6, %c0_7] : memref<64x128xf32, #tpu.memory_space<vmem>>, vector<64x128xf32>
    tpu.vector_store %arg4[%c0_6, %c0_7], %7 {strides = array<i32>} : memref<64x128xf32, #tpu.memory_space<vmem>>, vector<64x128xf32>,
    return
  }
  func.func @transform_0(%arg0: i32) -> (i32, i32) {
    %c0_i32 = arith.constant 0 : i32
    %c0_i32_0 = arith.constant 0 : i32
    return %arg0, %c0_i32 : i32, i32
  }
  func.func @transform_1(%arg0: i32) -> (i32, i32) {
    %c0_i32 = arith.constant 0 : i32
    %c0_i32_0 = arith.constant 0 : i32
    %c0_i32_1 = arith.constant 0 : i32
    return %c0_i32, %c0_i32_0 : i32, i32
  }
  func.func @transform_2(%arg0: i32) -> (i32, i32) {
    %c0_i32 = arith.constant 0 : i32
    %c0_i32_0 = arith.constant 0 : i32
    %c0_i32_1 = arith.constant 0 : i32
    return %c0_i32, %c0_i32_0 : i32, i32
  }
  func.func @transform_3(%arg0: i32) -> (i32, i32) {
    %c0_i32 = arith.constant 0 : i32
    %c0_i32_0 = arith.constant 0 : i32
    return %arg0, %c0_i32 : i32, i32
  }
}

module attributes {stable_mosaic.version = 11 : i64} {
  func.func @_lpips_dist_kernel(%arg0: i32, %arg1: memref<1x256x128xf32, #tpu.memory_space<vmem>>, %arg2: memref<1x256x128xf32, #tpu.memory_space<vmem>>, %arg3: memref<1x64x128xf32, #tpu.memory_space<vmem>>, %arg4: memref<1x64x128xf32, #tpu.memory_space<vmem>>, %arg5: memref<1x16x128xf32, #tpu.memory_space<vmem>>, %arg6: memref<1x16x128xf32, #tpu.memory_space<vmem>>, %arg7: memref<3x128xf32, #tpu.memory_space<vmem>>, %arg8: memref<1x8x128xf32, #tpu.memory_space<vmem>>) attributes {dimension_semantics = [#tpu.dimension_semantics<parallel>], iteration_bounds = array<i64: 2>, scalar_prefetch = 0 : i64, scratch_operands = 0 : i64, tpu.core_type = #tpu.core_type<tc>, window_params = [{transform_indices = @transform_0, window_bounds = array<i64: 1, 256, 128>}, {transform_indices = @transform_1, window_bounds = array<i64: 1, 256, 128>}, {transform_indices = @transform_2, window_bounds = array<i64: 1, 64, 128>}, {transform_indices = @transform_3, window_bounds = array<i64: 1, 64, 128>}, {transform_indices = @transform_4, window_bounds = array<i64: 1, 16, 128>}, {transform_indices = @transform_5, window_bounds = array<i64: 1, 16, 128>}, {pipeline_mode = #tpu.pipeline_mode<synchronous>, transform_indices = @transform_6, window_bounds = array<i64: 3, 128>}, {transform_indices = @transform_7, window_bounds = array<i64: 1, 8, 128>}]} {
    %cst = arith.constant 0.000000e+00 : f32
    %0 = vector.broadcast %cst : f32 to vector<1x1xf32>
    %c0 = arith.constant 0 : index
    %c0_0 = arith.constant 0 : index
    %1 = vector.load %arg7[%c0, %c0_0] : memref<3x128xf32, #tpu.memory_space<vmem>>, vector<1x128xf32>
    %cst_1 = arith.constant 0.000000e+00 : f32
    %2 = vector.broadcast %cst_1 : f32 to vector<1x1xf32>
    %c0_2 = arith.constant 0 : index
    %c0_3 = arith.constant 0 : index
    %c0_4 = arith.constant 0 : index
    %3 = vector.load %arg1[%c0_2, %c0_3, %c0_4] : memref<1x256x128xf32, #tpu.memory_space<vmem>>, vector<1x64x128xf32>
    %4 = vector.shape_cast %3 : vector<1x64x128xf32> to vector<64x128xf32>
    %c0_5 = arith.constant 0 : index
    %c0_6 = arith.constant 0 : index
    %c0_7 = arith.constant 0 : index
    %5 = vector.load %arg2[%c0_5, %c0_6, %c0_7] : memref<1x256x128xf32, #tpu.memory_space<vmem>>, vector<1x64x128xf32>
    %6 = vector.shape_cast %5 : vector<1x64x128xf32> to vector<64x128xf32>
    %7 = arith.mulf %4, %4 : vector<64x128xf32>
    %cst_8 = arith.constant dense<0.000000e+00> : vector<64xf32>
    %8 = vector.multi_reduction <add>, %7, %cst_8 [1] : vector<64x128xf32> to vector<64xf32>
    %9 = vector.shape_cast %8 : vector<64xf32> to vector<64x1xf32>
    %10 = math.sqrt %9 : vector<64x1xf32>
    %cst_9 = arith.constant 1.000000e-10 : f32
    %11 = vector.broadcast %cst_9 : f32 to vector<64x1xf32>
    %12 = arith.addf %10, %11 : vector<64x1xf32>
    %13 = tpu.reciprocal %12 {approx = true} : vector<64x1xf32> -> vector<64x1xf32>
    %14 = arith.mulf %6, %6 : vector<64x128xf32>
    %cst_10 = arith.constant dense<0.000000e+00> : vector<64xf32>
    %15 = vector.multi_reduction <add>, %14, %cst_10 [1] : vector<64x128xf32> to vector<64xf32>
    %16 = vector.shape_cast %15 : vector<64xf32> to vector<64x1xf32>
    %17 = math.sqrt %16 : vector<64x1xf32>
    %cst_11 = arith.constant 1.000000e-10 : f32
    %18 = vector.broadcast %cst_11 : f32 to vector<64x1xf32>
    %19 = arith.addf %17, %18 : vector<64x1xf32>
    %20 = tpu.reciprocal %19 {approx = true} : vector<64x1xf32> -> vector<64x1xf32>
    %21 = vector.broadcast %13 : vector<64x1xf32> to vector<64x128xf32>
    %22 = arith.mulf %4, %21 : vector<64x128xf32>
    %23 = vector.broadcast %20 : vector<64x1xf32> to vector<64x128xf32>
    %24 = arith.mulf %6, %23 : vector<64x128xf32>
    %25 = arith.subf %22, %24 : vector<64x128xf32>
    %26 = arith.mulf %25, %25 : vector<64x128xf32>
    %27 = vector.broadcast %1 : vector<1x128xf32> to vector<64x128xf32>
    %28 = arith.mulf %26, %27 : vector<64x128xf32>
    %cst_12 = arith.constant dense<0.000000e+00> : vector<64xf32>
    %29 = vector.multi_reduction <add>, %28, %cst_12 [1] : vector<64x128xf32> to vector<64xf32>
    %30 = vector.shape_cast %29 : vector<64xf32> to vector<64x1xf32>
    %cst_13 = arith.constant dense<0.000000e+00> : vector<1xf32>
    %31 = vector.multi_reduction <add>, %30, %cst_13 [0] : vector<64x1xf32> to vector<1xf32>
    %32 = vector.shape_cast %31 : vector<1xf32> to vector<1x1xf32>
    %33 = arith.addf %2, %32 : vector<1x1xf32>
    %c0_14 = arith.constant 0 : index
    %c64 = arith.constant 64 : index
    %c0_15 = arith.constant 0 : index
    %34 = vector.load %arg1[%c0_14, %c64, %c0_15] : memref<1x256x128xf32, #tpu.memory_space<vmem>>, vector<1x64x128xf32>
    %35 = vector.shape_cast %34 : vector<1x64x128xf32> to vector<64x128xf32>
    %c0_16 = arith.constant 0 : index
    %c64_17 = arith.constant 64 : index
    %c0_18 = arith.constant 0 : index
    %36 = vector.load %arg2[%c0_16, %c64_17, %c0_18] : memref<1x256x128xf32, #tpu.memory_space<vmem>>, vector<1x64x128xf32>
    %37 = vector.shape_cast %36 : vector<1x64x128xf32> to vector<64x128xf32>
    %38 = arith.mulf %35, %35 : vector<64x128xf32>
    %cst_19 = arith.constant dense<0.000000e+00> : vector<64xf32>
    %39 = vector.multi_reduction <add>, %38, %cst_19 [1] : vector<64x128xf32> to vector<64xf32>
    %40 = vector.shape_cast %39 : vector<64xf32> to vector<64x1xf32>
    %41 = math.sqrt %40 : vector<64x1xf32>
    %cst_20 = arith.constant 1.000000e-10 : f32
    %42 = vector.broadcast %cst_20 : f32 to vector<64x1xf32>
    %43 = arith.addf %41, %42 : vector<64x1xf32>
    %44 = tpu.reciprocal %43 {approx = true} : vector<64x1xf32> -> vector<64x1xf32>
    %45 = arith.mulf %37, %37 : vector<64x128xf32>
    %cst_21 = arith.constant dense<0.000000e+00> : vector<64xf32>
    %46 = vector.multi_reduction <add>, %45, %cst_21 [1] : vector<64x128xf32> to vector<64xf32>
    %47 = vector.shape_cast %46 : vector<64xf32> to vector<64x1xf32>
    %48 = math.sqrt %47 : vector<64x1xf32>
    %cst_22 = arith.constant 1.000000e-10 : f32
    %49 = vector.broadcast %cst_22 : f32 to vector<64x1xf32>
    %50 = arith.addf %48, %49 : vector<64x1xf32>
    %51 = tpu.reciprocal %50 {approx = true} : vector<64x1xf32> -> vector<64x1xf32>
    %52 = vector.broadcast %44 : vector<64x1xf32> to vector<64x128xf32>
    %53 = arith.mulf %35, %52 : vector<64x128xf32>
    %54 = vector.broadcast %51 : vector<64x1xf32> to vector<64x128xf32>
    %55 = arith.mulf %37, %54 : vector<64x128xf32>
    %56 = arith.subf %53, %55 : vector<64x128xf32>
    %57 = arith.mulf %56, %56 : vector<64x128xf32>
    %58 = vector.broadcast %1 : vector<1x128xf32> to vector<64x128xf32>
    %59 = arith.mulf %57, %58 : vector<64x128xf32>
    %cst_23 = arith.constant dense<0.000000e+00> : vector<64xf32>
    %60 = vector.multi_reduction <add>, %59, %cst_23 [1] : vector<64x128xf32> to vector<64xf32>
    %61 = vector.shape_cast %60 : vector<64xf32> to vector<64x1xf32>
    %cst_24 = arith.constant dense<0.000000e+00> : vector<1xf32>
    %62 = vector.multi_reduction <add>, %61, %cst_24 [0] : vector<64x1xf32> to vector<1xf32>
    %63 = vector.shape_cast %62 : vector<1xf32> to vector<1x1xf32>
    %64 = arith.addf %33, %63 : vector<1x1xf32>
    %c0_25 = arith.constant 0 : index
    %c128 = arith.constant 128 : index
    %c0_26 = arith.constant 0 : index
    %65 = vector.load %arg1[%c0_25, %c128, %c0_26] : memref<1x256x128xf32, #tpu.memory_space<vmem>>, vector<1x64x128xf32>
    %66 = vector.shape_cast %65 : vector<1x64x128xf32> to vector<64x128xf32>
    %c0_27 = arith.constant 0 : index
    %c128_28 = arith.constant 128 : index
    %c0_29 = arith.constant 0 : index
    %67 = vector.load %arg2[%c0_27, %c128_28, %c0_29] : memref<1x256x128xf32, #tpu.memory_space<vmem>>, vector<1x64x128xf32>
    %68 = vector.shape_cast %67 : vector<1x64x128xf32> to vector<64x128xf32>
    %69 = arith.mulf %66, %66 : vector<64x128xf32>
    %cst_30 = arith.constant dense<0.000000e+00> : vector<64xf32>
    %70 = vector.multi_reduction <add>, %69, %cst_30 [1] : vector<64x128xf32> to vector<64xf32>
    %71 = vector.shape_cast %70 : vector<64xf32> to vector<64x1xf32>
    %72 = math.sqrt %71 : vector<64x1xf32>
    %cst_31 = arith.constant 1.000000e-10 : f32
    %73 = vector.broadcast %cst_31 : f32 to vector<64x1xf32>
    %74 = arith.addf %72, %73 : vector<64x1xf32>
    %75 = tpu.reciprocal %74 {approx = true} : vector<64x1xf32> -> vector<64x1xf32>
    %76 = arith.mulf %68, %68 : vector<64x128xf32>
    %cst_32 = arith.constant dense<0.000000e+00> : vector<64xf32>
    %77 = vector.multi_reduction <add>, %76, %cst_32 [1] : vector<64x128xf32> to vector<64xf32>
    %78 = vector.shape_cast %77 : vector<64xf32> to vector<64x1xf32>
    %79 = math.sqrt %78 : vector<64x1xf32>
    %cst_33 = arith.constant 1.000000e-10 : f32
    %80 = vector.broadcast %cst_33 : f32 to vector<64x1xf32>
    %81 = arith.addf %79, %80 : vector<64x1xf32>
    %82 = tpu.reciprocal %81 {approx = true} : vector<64x1xf32> -> vector<64x1xf32>
    %83 = vector.broadcast %75 : vector<64x1xf32> to vector<64x128xf32>
    %84 = arith.mulf %66, %83 : vector<64x128xf32>
    %85 = vector.broadcast %82 : vector<64x1xf32> to vector<64x128xf32>
    %86 = arith.mulf %68, %85 : vector<64x128xf32>
    %87 = arith.subf %84, %86 : vector<64x128xf32>
    %88 = arith.mulf %87, %87 : vector<64x128xf32>
    %89 = vector.broadcast %1 : vector<1x128xf32> to vector<64x128xf32>
    %90 = arith.mulf %88, %89 : vector<64x128xf32>
    %cst_34 = arith.constant dense<0.000000e+00> : vector<64xf32>
    %91 = vector.multi_reduction <add>, %90, %cst_34 [1] : vector<64x128xf32> to vector<64xf32>
    %92 = vector.shape_cast %91 : vector<64xf32> to vector<64x1xf32>
    %cst_35 = arith.constant dense<0.000000e+00> : vector<1xf32>
    %93 = vector.multi_reduction <add>, %92, %cst_35 [0] : vector<64x1xf32> to vector<1xf32>
    %94 = vector.shape_cast %93 : vector<1xf32> to vector<1x1xf32>
    %95 = arith.addf %64, %94 : vector<1x1xf32>
    %c0_36 = arith.constant 0 : index
    %c192 = arith.constant 192 : index
    %c0_37 = arith.constant 0 : index
    %96 = vector.load %arg1[%c0_36, %c192, %c0_37] : memref<1x256x128xf32, #tpu.memory_space<vmem>>, vector<1x64x128xf32>
    %97 = vector.shape_cast %96 : vector<1x64x128xf32> to vector<64x128xf32>
    %c0_38 = arith.constant 0 : index
    %c192_39 = arith.constant 192 : index
    %c0_40 = arith.constant 0 : index
    %98 = vector.load %arg2[%c0_38, %c192_39, %c0_40] : memref<1x256x128xf32, #tpu.memory_space<vmem>>, vector<1x64x128xf32>
    %99 = vector.shape_cast %98 : vector<1x64x128xf32> to vector<64x128xf32>
    %100 = arith.mulf %97, %97 : vector<64x128xf32>
    %cst_41 = arith.constant dense<0.000000e+00> : vector<64xf32>
    %101 = vector.multi_reduction <add>, %100, %cst_41 [1] : vector<64x128xf32> to vector<64xf32>
    %102 = vector.shape_cast %101 : vector<64xf32> to vector<64x1xf32>
    %103 = math.sqrt %102 : vector<64x1xf32>
    %cst_42 = arith.constant 1.000000e-10 : f32
    %104 = vector.broadcast %cst_42 : f32 to vector<64x1xf32>
    %105 = arith.addf %103, %104 : vector<64x1xf32>
    %106 = tpu.reciprocal %105 {approx = true} : vector<64x1xf32> -> vector<64x1xf32>
    %107 = arith.mulf %99, %99 : vector<64x128xf32>
    %cst_43 = arith.constant dense<0.000000e+00> : vector<64xf32>
    %108 = vector.multi_reduction <add>, %107, %cst_43 [1] : vector<64x128xf32> to vector<64xf32>
    %109 = vector.shape_cast %108 : vector<64xf32> to vector<64x1xf32>
    %110 = math.sqrt %109 : vector<64x1xf32>
    %cst_44 = arith.constant 1.000000e-10 : f32
    %111 = vector.broadcast %cst_44 : f32 to vector<64x1xf32>
    %112 = arith.addf %110, %111 : vector<64x1xf32>
    %113 = tpu.reciprocal %112 {approx = true} : vector<64x1xf32> -> vector<64x1xf32>
    %114 = vector.broadcast %106 : vector<64x1xf32> to vector<64x128xf32>
    %115 = arith.mulf %97, %114 : vector<64x128xf32>
    %116 = vector.broadcast %113 : vector<64x1xf32> to vector<64x128xf32>
    %117 = arith.mulf %99, %116 : vector<64x128xf32>
    %118 = arith.subf %115, %117 : vector<64x128xf32>
    %119 = arith.mulf %118, %118 : vector<64x128xf32>
    %120 = vector.broadcast %1 : vector<1x128xf32> to vector<64x128xf32>
    %121 = arith.mulf %119, %120 : vector<64x128xf32>
    %cst_45 = arith.constant dense<0.000000e+00> : vector<64xf32>
    %122 = vector.multi_reduction <add>, %121, %cst_45 [1] : vector<64x128xf32> to vector<64xf32>
    %123 = vector.shape_cast %122 : vector<64xf32> to vector<64x1xf32>
    %cst_46 = arith.constant dense<0.000000e+00> : vector<1xf32>
    %124 = vector.multi_reduction <add>, %123, %cst_46 [0] : vector<64x1xf32> to vector<1xf32>
    %125 = vector.shape_cast %124 : vector<1xf32> to vector<1x1xf32>
    %126 = arith.addf %95, %125 : vector<1x1xf32>
    %cst_47 = arith.constant 3.906250e-03 : f32
    %127 = vector.broadcast %cst_47 : f32 to vector<1x1xf32>
    %128 = arith.mulf %126, %127 : vector<1x1xf32>
    %129 = arith.addf %0, %128 : vector<1x1xf32>
    %c1 = arith.constant 1 : index
    %c0_48 = arith.constant 0 : index
    %130 = vector.load %arg7[%c1, %c0_48] : memref<3x128xf32, #tpu.memory_space<vmem>>, vector<1x128xf32>
    %cst_49 = arith.constant 0.000000e+00 : f32
    %131 = vector.broadcast %cst_49 : f32 to vector<1x1xf32>
    %c0_50 = arith.constant 0 : index
    %c0_51 = arith.constant 0 : index
    %c0_52 = arith.constant 0 : index
    %132 = vector.load %arg3[%c0_50, %c0_51, %c0_52] : memref<1x64x128xf32, #tpu.memory_space<vmem>>, vector<1x64x128xf32>
    %133 = vector.shape_cast %132 : vector<1x64x128xf32> to vector<64x128xf32>
    %c0_53 = arith.constant 0 : index
    %c0_54 = arith.constant 0 : index
    %c0_55 = arith.constant 0 : index
    %134 = vector.load %arg4[%c0_53, %c0_54, %c0_55] : memref<1x64x128xf32, #tpu.memory_space<vmem>>, vector<1x64x128xf32>
    %135 = vector.shape_cast %134 : vector<1x64x128xf32> to vector<64x128xf32>
    %136 = arith.mulf %133, %133 : vector<64x128xf32>
    %cst_56 = arith.constant dense<0.000000e+00> : vector<64xf32>
    %137 = vector.multi_reduction <add>, %136, %cst_56 [1] : vector<64x128xf32> to vector<64xf32>
    %138 = vector.shape_cast %137 : vector<64xf32> to vector<64x1xf32>
    %139 = math.sqrt %138 : vector<64x1xf32>
    %cst_57 = arith.constant 1.000000e-10 : f32
    %140 = vector.broadcast %cst_57 : f32 to vector<64x1xf32>
    %141 = arith.addf %139, %140 : vector<64x1xf32>
    %142 = tpu.reciprocal %141 {approx = true} : vector<64x1xf32> -> vector<64x1xf32>
    %143 = arith.mulf %135, %135 : vector<64x128xf32>
    %cst_58 = arith.constant dense<0.000000e+00> : vector<64xf32>
    %144 = vector.multi_reduction <add>, %143, %cst_58 [1] : vector<64x128xf32> to vector<64xf32>
    %145 = vector.shape_cast %144 : vector<64xf32> to vector<64x1xf32>
    %146 = math.sqrt %145 : vector<64x1xf32>
    %cst_59 = arith.constant 1.000000e-10 : f32
    %147 = vector.broadcast %cst_59 : f32 to vector<64x1xf32>
    %148 = arith.addf %146, %147 : vector<64x1xf32>
    %149 = tpu.reciprocal %148 {approx = true} : vector<64x1xf32> -> vector<64x1xf32>
    %150 = vector.broadcast %142 : vector<64x1xf32> to vector<64x128xf32>
    %151 = arith.mulf %133, %150 : vector<64x128xf32>
    %152 = vector.broadcast %149 : vector<64x1xf32> to vector<64x128xf32>
    %153 = arith.mulf %135, %152 : vector<64x128xf32>
    %154 = arith.subf %151, %153 : vector<64x128xf32>
    %155 = arith.mulf %154, %154 : vector<64x128xf32>
    %156 = vector.broadcast %130 : vector<1x128xf32> to vector<64x128xf32>
    %157 = arith.mulf %155, %156 : vector<64x128xf32>
    %cst_60 = arith.constant dense<0.000000e+00> : vector<64xf32>
    %158 = vector.multi_reduction <add>, %157, %cst_60 [1] : vector<64x128xf32> to vector<64xf32>
    %159 = vector.shape_cast %158 : vector<64xf32> to vector<64x1xf32>
    %cst_61 = arith.constant dense<0.000000e+00> : vector<1xf32>
    %160 = vector.multi_reduction <add>, %159, %cst_61 [0] : vector<64x1xf32> to vector<1xf32>
    %161 = vector.shape_cast %160 : vector<1xf32> to vector<1x1xf32>
    %162 = arith.addf %131, %161 : vector<1x1xf32>
    %cst_62 = arith.constant 1.562500e-02 : f32
    %163 = vector.broadcast %cst_62 : f32 to vector<1x1xf32>
    %164 = arith.mulf %162, %163 : vector<1x1xf32>
    %165 = arith.addf %129, %164 : vector<1x1xf32>
    %c2 = arith.constant 2 : index
    %c0_63 = arith.constant 0 : index
    %166 = vector.load %arg7[%c2, %c0_63] : memref<3x128xf32, #tpu.memory_space<vmem>>, vector<1x128xf32>
    %cst_64 = arith.constant 0.000000e+00 : f32
    %167 = vector.broadcast %cst_64 : f32 to vector<1x1xf32>
    %c0_65 = arith.constant 0 : index
    %c0_66 = arith.constant 0 : index
    %c0_67 = arith.constant 0 : index
    %168 = vector.load %arg5[%c0_65, %c0_66, %c0_67] : memref<1x16x128xf32, #tpu.memory_space<vmem>>, vector<1x16x128xf32>
    %169 = vector.shape_cast %168 : vector<1x16x128xf32> to vector<16x128xf32>
    %c0_68 = arith.constant 0 : index
    %c0_69 = arith.constant 0 : index
    %c0_70 = arith.constant 0 : index
    %170 = vector.load %arg6[%c0_68, %c0_69, %c0_70] : memref<1x16x128xf32, #tpu.memory_space<vmem>>, vector<1x16x128xf32>
    %171 = vector.shape_cast %170 : vector<1x16x128xf32> to vector<16x128xf32>
    %172 = arith.mulf %169, %169 : vector<16x128xf32>
    %cst_71 = arith.constant dense<0.000000e+00> : vector<16xf32>
    %173 = vector.multi_reduction <add>, %172, %cst_71 [1] : vector<16x128xf32> to vector<16xf32>
    %174 = vector.shape_cast %173 : vector<16xf32> to vector<16x1xf32>
    %175 = math.sqrt %174 : vector<16x1xf32>
    %cst_72 = arith.constant 1.000000e-10 : f32
    %176 = vector.broadcast %cst_72 : f32 to vector<16x1xf32>
    %177 = arith.addf %175, %176 : vector<16x1xf32>
    %178 = tpu.reciprocal %177 {approx = true} : vector<16x1xf32> -> vector<16x1xf32>
    %179 = arith.mulf %171, %171 : vector<16x128xf32>
    %cst_73 = arith.constant dense<0.000000e+00> : vector<16xf32>
    %180 = vector.multi_reduction <add>, %179, %cst_73 [1] : vector<16x128xf32> to vector<16xf32>
    %181 = vector.shape_cast %180 : vector<16xf32> to vector<16x1xf32>
    %182 = math.sqrt %181 : vector<16x1xf32>
    %cst_74 = arith.constant 1.000000e-10 : f32
    %183 = vector.broadcast %cst_74 : f32 to vector<16x1xf32>
    %184 = arith.addf %182, %183 : vector<16x1xf32>
    %185 = tpu.reciprocal %184 {approx = true} : vector<16x1xf32> -> vector<16x1xf32>
    %186 = vector.broadcast %178 : vector<16x1xf32> to vector<16x128xf32>
    %187 = arith.mulf %169, %186 : vector<16x128xf32>
    %188 = vector.broadcast %185 : vector<16x1xf32> to vector<16x128xf32>
    %189 = arith.mulf %171, %188 : vector<16x128xf32>
    %190 = arith.subf %187, %189 : vector<16x128xf32>
    %191 = arith.mulf %190, %190 : vector<16x128xf32>
    %192 = vector.broadcast %166 : vector<1x128xf32> to vector<16x128xf32>
    %193 = arith.mulf %191, %192 : vector<16x128xf32>
    %cst_75 = arith.constant dense<0.000000e+00> : vector<16xf32>
    %194 = vector.multi_reduction <add>, %193, %cst_75 [1] : vector<16x128xf32> to vector<16xf32>
    %195 = vector.shape_cast %194 : vector<16xf32> to vector<16x1xf32>
    %cst_76 = arith.constant dense<0.000000e+00> : vector<1xf32>
    %196 = vector.multi_reduction <add>, %195, %cst_76 [0] : vector<16x1xf32> to vector<1xf32>
    %197 = vector.shape_cast %196 : vector<1xf32> to vector<1x1xf32>
    %198 = arith.addf %167, %197 : vector<1x1xf32>
    %cst_77 = arith.constant 6.250000e-02 : f32
    %199 = vector.broadcast %cst_77 : f32 to vector<1x1xf32>
    %200 = arith.mulf %198, %199 : vector<1x1xf32>
    %201 = arith.addf %165, %200 : vector<1x1xf32>
    %202 = vector.shape_cast %201 : vector<1x1xf32> to vector<1x1x1xf32>
    %203 = vector.shape_cast %202 : vector<1x1x1xf32> to vector<1x1x1xf32>
    %204 = vector.broadcast %203 : vector<1x1x1xf32> to vector<1x8x128xf32>
    %c0_78 = arith.constant 0 : index
    %c0_79 = arith.constant 0 : index
    %c0_80 = arith.constant 0 : index
    %205 = vector.load %arg8[%c0_78, %c0_79, %c0_80] : memref<1x8x128xf32, #tpu.memory_space<vmem>>, vector<1x8x128xf32>
    tpu.vector_store %arg8[%c0_78, %c0_79, %c0_80], %204 {strides = array<i32>} : memref<1x8x128xf32, #tpu.memory_space<vmem>>, vector<1x8x128xf32>,
    return
  }
  func.func @transform_0(%arg0: i32) -> (i32, i32, i32) {
    %c0_i32 = arith.constant 0 : i32
    %c0_i32_0 = arith.constant 0 : i32
    %c0_i32_1 = arith.constant 0 : i32
    return %arg0, %c0_i32, %c0_i32_0 : i32, i32, i32
  }
  func.func @transform_1(%arg0: i32) -> (i32, i32, i32) {
    %c0_i32 = arith.constant 0 : i32
    %c0_i32_0 = arith.constant 0 : i32
    %c0_i32_1 = arith.constant 0 : i32
    return %arg0, %c0_i32, %c0_i32_0 : i32, i32, i32
  }
  func.func @transform_2(%arg0: i32) -> (i32, i32, i32) {
    %c0_i32 = arith.constant 0 : i32
    %c0_i32_0 = arith.constant 0 : i32
    %c0_i32_1 = arith.constant 0 : i32
    return %arg0, %c0_i32, %c0_i32_0 : i32, i32, i32
  }
  func.func @transform_3(%arg0: i32) -> (i32, i32, i32) {
    %c0_i32 = arith.constant 0 : i32
    %c0_i32_0 = arith.constant 0 : i32
    %c0_i32_1 = arith.constant 0 : i32
    return %arg0, %c0_i32, %c0_i32_0 : i32, i32, i32
  }
  func.func @transform_4(%arg0: i32) -> (i32, i32, i32) {
    %c0_i32 = arith.constant 0 : i32
    %c0_i32_0 = arith.constant 0 : i32
    %c0_i32_1 = arith.constant 0 : i32
    return %arg0, %c0_i32, %c0_i32_0 : i32, i32, i32
  }
  func.func @transform_5(%arg0: i32) -> (i32, i32, i32) {
    %c0_i32 = arith.constant 0 : i32
    %c0_i32_0 = arith.constant 0 : i32
    %c0_i32_1 = arith.constant 0 : i32
    return %arg0, %c0_i32, %c0_i32_0 : i32, i32, i32
  }
  func.func @transform_6(%arg0: i32) -> (i32, i32) {
    %c0_i32 = arith.constant 0 : i32
    %c0_i32_0 = arith.constant 0 : i32
    %c0_i32_1 = arith.constant 0 : i32
    return %c0_i32, %c0_i32_0 : i32, i32
  }
  func.func @transform_7(%arg0: i32) -> (i32, i32, i32) {
    %c0_i32 = arith.constant 0 : i32
    %c0_i32_0 = arith.constant 0 : i32
    %c0_i32_1 = arith.constant 0 : i32
    return %arg0, %c0_i32, %c0_i32_0 : i32, i32, i32
  }
}

</mosaic_0001>

<bundles_post_ra>
// kernel: lpips_forward.4
= control target key start
LH: loop header
LB: loop body
LE: loop exit
PB: predicated region body
PF: predicated region fallthrough
CT: control target
= control target key end

     0   :  { %s1239_s12 = smov 0   ;;  %s1453_s0 = inlined_call_operand.vmem [shape: bf16[1024,128], index: 0, kind: input, shape index: {}]   ;;  %s1454_s1 = inlined_call_operand.vmem [shape: bf16[128,128], index: 1, kind: input, shape index: {}]   ;;  %s1455_s2 = inlined_call_operand.vmem [shape: f32[1,128], index: 2, kind: input, shape index: {}]   ;;  %s1456_s3 = inlined_call_operand.vmem [shape: f32[1024,128], index: 3, kind: output, shape index: {}]  }
   0x1 LB: > { %s975_s13 = sadd.s32 4294967295, %s1217_s12   ;;  %p979_p0 = scmp.ge.s32.totalorder %s1217_s12, 1  ;;  %s1217_s12 = sphi %s1239_s12, %s13_s12  }
   0x2   : > { %p138_p1 = scmp.lt.s32.totalorder %s1217_s12, 3 }
   0x4   : > { %p139_p2 = pnand %p979_p0, %p138_p1 }
   0x5   : > { %v1171_v0 = vld [vmem:[%s1454_s1] sm:$0xff] (!%p139_p2)   ;;  %s980_s16 = sshll.u32 (!%p139_p2), %s975_s13, 6  ;;  %v1172_v1 = vld [vmem:[%s1454_s1 + $0x8] sm:$0xff] (!%p139_p2)   ;;  %v1173_v2 = vld [vmem:[%s1454_s1 + $0x10] sm:$0xff] (!%p139_p2)  }
   0x6   : > { %142 = sbr.rel (%p139_p2) target bundleno = 314 (0x13a), region = 32  ;;  %p163_p3 = scmp.lt.s32.totalorder (!%p139_p2), %s980_s16, 127  ;;  %1067 = vmatprep.subr.bf16.mxu0 (!%p139_p2), %v1171_v0  ;;  %1147 = vmatprep.subr.bf16.mxu1 (!%p139_p2), %v1171_v0  ;;  %v1174_v3 = vld [vmem:[%s1454_s1 + $0x18] sm:$0xff] (!%p139_p2)   ;;  %v1175_v6 = vld [vmem:[%s1454_s1 + $0x20] sm:$0xff] (!%p139_p2)   ;;  %v1176_v7 = vld [vmem:[%s1454_s1 + $0x28] sm:$0xff] (!%p139_p2)  }
   0x7   : > { %1068 = vmatpush3.bf16.msra.mxu0 (!%p139_p2), %v1171_v0  ;;  %1155 = vmatpush3.bf16.msra.mxu1 (!%p139_p2), %v1171_v0  ;;  %v1177_v8 = vld [vmem:[%s1454_s1 + $0x30] sm:$0xff] (!%p139_p2)   ;;  %v1178_v9 = vld [vmem:[%s1454_s1 + $0x38] sm:$0xff] (!%p139_p2)   ;;  %v1314_v40 = vld [vmem:[%s1455_s2] ss:$0 sm:$0xff] (!%p139_p2) }
   0x8   : > { %1069 = vmatprep.subr.bf16.mxu0 (!%p139_p2), %v1172_v1  ;;  %1148 = vmatprep.subr.bf16.mxu1 (!%p139_p2), %v1172_v1 }
   0xb   : > { %1070 = vmatpush3.bf16.msra.mxu0 (!%p139_p2), %v1172_v1  ;;  %1156 = vmatpush3.bf16.msra.mxu1 (!%p139_p2), %v1172_v1 }
   0xc   : > { %1071 = vmatprep.subr.bf16.mxu0 (!%p139_p2), %v1173_v2  ;;  %1149 = vmatprep.subr.bf16.mxu1 (!%p139_p2), %v1173_v2 }
   0xd   : > { %s1458_s16 = smov (!%p163_p3, %s980_s16), 127 }
   0xe   : > { %s981_s21 = sshll.u32 %s1458_s16, 2  ;;  %s983_s10 = sshll.u32 %s1458_s16, 3 }
   0xf   : > { %s1262_s24 = scalar_lea.vmem %s1453_s0, %s981_s21  ;;  %1072 = vmatpush3.bf16.msra.mxu0 %v1173_v2  ;;  %1157 = vmatpush3.bf16.msra.mxu1 %v1173_v2  ;;  %s1322_s14 = scalar_lea.vmem %s1456_s3, %s983_s10 }
  0x10   : > { %v1179_v4 = vld [vmem:[%s1262_s24] sm:$0xff]   ;;  %1073 = vmatprep.subr.bf16.mxu0 %v1174_v3  ;;  %1150 = vmatprep.subr.bf16.mxu1 %v1174_v3  ;;  %v1181_v10 = vld [vmem:[%s1262_s24 + $0x8] sm:$0xff]   ;;  %v1183_v12 = vld [vmem:[%s1262_s24 + $0x10] sm:$0xff]  }
  0x11   : > { %v1180_v5 = vld [vmem:[%s1262_s24 + $0x80] sm:$0xff]   ;;  %1083 = vmatprep.mubr.bf16.mxu0 %v1179_v4  ;;  %v1182_v11 = vld [vmem:[%s1262_s24 + $0x88] sm:$0xff]   ;;  %v1184_v13 = vld [vmem:[%s1262_s24 + $0x90] sm:$0xff]  }
  0x12   : > { %1115 = vmatprep.mubr.bf16.mxu1 %v1180_v5  ;;  %v1185_v14 = vld [vmem:[%s1262_s24 + $0x18] sm:$0xff]   ;;  %v1187_v16 = vld [vmem:[%s1262_s24 + $0x20] sm:$0xff]   ;;  %v1189_v18 = vld [vmem:[%s1262_s24 + $0x28] sm:$0xff]  }
  0x13   : > { %1074 = vmatpush3.bf16.msra.mxu0 %v1174_v3  ;;  %1158 = vmatpush3.bf16.msra.mxu1 %v1174_v3  ;;  %v1186_v15 = vld [vmem:[%s1262_s24 + $0x98] sm:$0xff]   ;;  %v1188_v17 = vld [vmem:[%s1262_s24 + $0xa0] sm:$0xff]   ;;  %v1190_v19 = vld [vmem:[%s1262_s24 + $0xa8] sm:$0xff]  }
  0x14   : > { %1075 = vmatprep.subr.bf16.mxu0 %v1175_v6  ;;  %1151 = vmatprep.subr.bf16.mxu1 %v1175_v6  ;;  %v1191_v20 = vld [vmem:[%s1262_s24 + $0x30] sm:$0xff]   ;;  %v1193_v22 = vld [vmem:[%s1262_s24 + $0x38] sm:$0xff]   ;;  %v1195_v24 = vld [vmem:[%s1262_s24 + $0x40] sm:$0xff]  }
  0x15   : > { %v1192_v21 = vld [vmem:[%s1262_s24 + $0xb0] sm:$0xff]   ;;  %v1194_v23 = vld [vmem:[%s1262_s24 + $0xb8] sm:$0xff]   ;;  %v1196_v25 = vld [vmem:[%s1262_s24 + $0xc0] sm:$0xff]  }
  0x16   : > { %v1197_v26 = vld [vmem:[%s1262_s24 + $0x48] sm:$0xff]   ;;  %v1199_v28 = vld [vmem:[%s1262_s24 + $0x50] sm:$0xff]   ;;  %v1201_v30 = vld [vmem:[%s1262_s24 + $0x58] sm:$0xff]  }
  0x17   : > { %1076 = vmatpush3.bf16.msra.mxu0 %v1175_v6  ;;  %1159 = vmatpush3.bf16.msra.mxu1 %v1175_v6  ;;  %v1198_v27 = vld [vmem:[%s1262_s24 + $0xc8] sm:$0xff]   ;;  %v1200_v29 = vld [vmem:[%s1262_s24 + $0xd0] sm:$0xff]   ;;  %v1202_v31 = vld [vmem:[%s1262_s24 + $0xd8] sm:$0xff]  }
  0x18   : > { %1077 = vmatprep.subr.bf16.mxu0 %v1176_v7  ;;  %1152 = vmatprep.subr.bf16.mxu1 %v1176_v7  ;;  %v1203_v32 = vld [vmem:[%s1262_s24 + $0x60] sm:$0xff]   ;;  %v1205_v34 = vld [vmem:[%s1262_s24 + $0x68] sm:$0xff]   ;;  %v1207_v36 = vld [vmem:[%s1262_s24 + $0x70] sm:$0xff]  }
  0x19   : > { %v1204_v33 = vld [vmem:[%s1262_s24 + $0xe0] sm:$0xff]   ;;  %v1206_v35 = vld [vmem:[%s1262_s24 + $0xe8] sm:$0xff]   ;;  %v1208_v37 = vld [vmem:[%s1262_s24 + $0xf0] sm:$0xff]  }
  0x1a   : > { %v1209_v38 = vld [vmem:[%s1262_s24 + $0x78] sm:$0xff]  }
  0x1b   : > { %1078 = vmatpush3.bf16.msra.mxu0 %v1176_v7  ;;  %1160 = vmatpush3.bf16.msra.mxu1 %v1176_v7  ;;  %v1210_v39 = vld [vmem:[%s1262_s24 + $0xf8] sm:$0xff]  }
  0x1c   : > { %1079 = vmatprep.subr.bf16.mxu0 %v1177_v8  ;;  %1153 = vmatprep.subr.bf16.mxu1 %v1177_v8 }
  0x1f   : > { %1080 = vmatpush3.bf16.msra.mxu0 %v1177_v8  ;;  %1161 = vmatpush3.bf16.msra.mxu1 %v1177_v8 }
  0x20   : > { %1081 = vmatprep.subr.bf16.mxu0 %v1178_v9  ;;  %1154 = vmatprep.subr.bf16.mxu1 %v1178_v9 }
  0x23   : > { %1082 = vmatpush3.bf16.msra.mxu0 %v1178_v9  ;;  %1162 = vmatpush3.bf16.msra.mxu1 %v1178_v9 }
  0x26   : > { %1084 = vmatmul.mubr.bf16.vlgmr.msra.gmra.mrb[0].mxu0 %v1181_v10  ;;  %1116 = vmatmul.mubr.bf16.vlgmr.msra.gmra.mrb[0].mxu1 %v1182_v11 }
  0x27   : > { %1087 = vmatprep.mubr.bf16.mxu0 %v1183_v12  ;;  %1119 = vmatprep.mubr.bf16.mxu1 %v1184_v13 }
  0x2e   : > { %1088 = vmatmul.mubr.bf16.gmra.mrb[4].mxu0 %v1185_v14  ;;  %1120 = vmatmul.mubr.bf16.gmra.mrb[4].mxu1 %v1186_v15 }
  0x2f   : > { %1091 = vmatprep.mubr.bf16.mxu0 %v1187_v16  ;;  %1123 = vmatprep.mubr.bf16.mxu1 %v1188_v17 }
  0x36   : > { %1092 = vmatmul.mubr.bf16.gmra.mrb[8].mxu0 %v1189_v18  ;;  %1124 = vmatmul.mubr.bf16.gmra.mrb[8].mxu1 %v1190_v19 }
  0x37   : > { %1095 = vmatprep.mubr.bf16.mxu0 %v1191_v20  ;;  %1127 = vmatprep.mubr.bf16.mxu1 %v1192_v21 }
  0x3e   : > { %1096 = vmatmul.mubr.bf16.gmra.mrb[12].mxu0 %v1193_v22  ;;  %1128 = vmatmul.mubr.bf16.gmra.mrb[12].mxu1 %v1194_v23 }
  0x3f   : > { %1099 = vmatprep.mubr.bf16.mxu0 %v1195_v24  ;;  %1131 = vmatprep.mubr.bf16.mxu1 %v1196_v25 }
  0x46   : > { %1100 = vmatmul.mubr.bf16.gmra.mrb[16].mxu0 %v1197_v26  ;;  %1132 = vmatmul.mubr.bf16.gmra.mrb[16].mxu1 %v1198_v27 }
  0x47   : > { %1103 = vmatprep.mubr.bf16.mxu0 %v1199_v28  ;;  %1135 = vmatprep.mubr.bf16.mxu1 %v1200_v29 }
  0x4e   : > { %1104 = vmatmul.mubr.bf16.gmra.mrb[20].mxu0 %v1201_v30  ;;  %1136 = vmatmul.mubr.bf16.gmra.mrb[20].mxu1 %v1202_v31 }
  0x4f   : > { %1107 = vmatprep.mubr.bf16.mxu0 %v1203_v32  ;;  %1139 = vmatprep.mubr.bf16.mxu1 %v1204_v33 }
  0x56   : > { %1108 = vmatmul.mubr.bf16.gmra.mrb[24].mxu0 %v1205_v34  ;;  %1140 = vmatmul.mubr.bf16.gmra.mrb[24].mxu1 %v1206_v35 }
  0x57   : > { %1111 = vmatprep.mubr.bf16.mxu0 %v1207_v36  ;;  %1143 = vmatprep.mubr.bf16.mxu1 %v1208_v37 }
  0x5e   : > { %1112 = vmatmul.mubr.bf16.gmra.mrb[28].mxu0 %v1209_v38  ;;  %1144 = vmatmul.mubr.bf16.gmra.mrb[28].mxu1 %v1210_v39 }
  0xf9   : > { %v1085_v41 = vpop.f32.mrb[0].mxu0  ;;  %v1117_v42 = vpop.f32.mrb[0].mxu1 }
  0xfa   : > { %v545_v43 = vadd.f32 %v1085_v41, %v1314_v40  ;;  %v673_v44 = vadd.f32 %v1117_v42, %v1314_v40  ;;  %v536_v45 = vpop.f32.mrb[1].mxu0  ;;  %v664_v46 = vpop.f32.mrb[1].mxu1 }
  0xfb   : > { %v537_v47 = vadd.f32 %v1314_v40, %v536_v45  ;;  %v665_v48 = vadd.f32 %v1314_v40, %v664_v46  ;;  %v1086_v49 = vpop.f32.mrb[2].mxu0  ;;  %v1118_v50 = vpop.f32.mrb[2].mxu1 }
  0xfc   : > { %v793_v51 = vmax.f32 %v545_v43, 0.0  ;;  %v825_v52 = vmax.f32 %v673_v44, 0.0  ;;  %v548_v53 = vadd.f32 %v1086_v49, %v1314_v40  ;;  %v676_v54 = vadd.f32 %v1118_v50, %v1314_v40  ;;  %v539_v55 = vpop.f32.mrb[3].mxu0  ;;  %v667_v56 = vpop.f32.mrb[3].mxu1 }
  0xfd   : > { %v791_v57 = vmax.f32 %v537_v47, 0.0  ;;  %v823_v58 = vmax.f32 %v665_v48, 0.0  ;;  %v540_v59 = vadd.f32 %v1314_v40, %v539_v55  ;;  %v668_v60 = vadd.f32 %v1314_v40, %v667_v56 }
  0xfe   : > { %857 = vst [vmem:[%s1322_s14 + $0x10] sm:$0xff] %v793_v51  ;;  %889 = vst [vmem:[%s1322_s14 + $0x110] sm:$0xff] %v825_v52  ;;  %v794_v61 = vmax.f32 %v548_v53, 0.0  ;;  %v826_v62 = vmax.f32 %v676_v54, 0.0 }
  0xff   : > { %855 = vst [vmem:[%s1322_s14] sm:$0xff] %v791_v57  ;;  %887 = vst [vmem:[%s1322_s14 + $0x100] sm:$0xff] %v823_v58  ;;  %v792_v63 = vmax.f32 %v540_v59, 0.0  ;;  %v824_v0 = vmax.f32 %v668_v60, 0.0 }
 0x100   : > { %858 = vst [vmem:[%s1322_s14 + $0x18] sm:$0xff] %v794_v61  ;;  %890 = vst [vmem:[%s1322_s14 + $0x118] sm:$0xff] %v826_v62 }
 0x101   : > { %856 = vst [vmem:[%s1322_s14 + $0x8] sm:$0xff] %v792_v63  ;;  %888 = vst [vmem:[%s1322_s14 + $0x108] sm:$0xff] %v824_v0  ;;  %v1089_v1 = vpop.f32.mrb[4].mxu0  ;;  %v1121_v2 = vpop.f32.mrb[4].mxu1 }
 0x102   : > { %v561_v3 = vadd.f32 %v1089_v1, %v1314_v40  ;;  %v689_v4 = vadd.f32 %v1121_v2, %v1314_v40  ;;  %v552_v5 = vpop.f32.mrb[5].mxu0  ;;  %v680_v6 = vpop.f32.mrb[5].mxu1 }
 0x103   : > { %v553_v7 = vadd.f32 %v1314_v40, %v552_v5  ;;  %v681_v8 = vadd.f32 %v1314_v40, %v680_v6  ;;  %v1090_v9 = vpop.f32.mrb[6].mxu0  ;;  %v1122_v10 = vpop.f32.mrb[6].mxu1 }
 0x104   : > { %v797_v11 = vmax.f32 %v561_v3, 0.0  ;;  %v829_v12 = vmax.f32 %v689_v4, 0.0  ;;  %v564_v13 = vadd.f32 %v1090_v9, %v1314_v40  ;;  %v692_v14 = vadd.f32 %v1122_v10, %v1314_v40  ;;  %v555_v15 = vpop.f32.mrb[7].mxu0  ;;  %v683_v16 = vpop.f32.mrb[7].mxu1 }
 0x105   : > { %v795_v17 = vmax.f32 %v553_v7, 0.0  ;;  %v827_v18 = vmax.f32 %v681_v8, 0.0  ;;  %v556_v19 = vadd.f32 %v1314_v40, %v555_v15  ;;  %v684_v20 = vadd.f32 %v1314_v40, %v683_v16 }
 0x106   : > { %861 = vst [vmem:[%s1322_s14 + $0x30] sm:$0xff] %v797_v11  ;;  %893 = vst [vmem:[%s1322_s14 + $0x130] sm:$0xff] %v829_v12  ;;  %v798_v21 = vmax.f32 %v564_v13, 0.0  ;;  %v830_v22 = vmax.f32 %v692_v14, 0.0 }
 0x107   : > { %859 = vst [vmem:[%s1322_s14 + $0x20] sm:$0xff] %v795_v17  ;;  %891 = vst [vmem:[%s1322_s14 + $0x120] sm:$0xff] %v827_v18  ;;  %v796_v23 = vmax.f32 %v556_v19, 0.0  ;;  %v828_v24 = vmax.f32 %v684_v20, 0.0 }
 0x108   : > { %862 = vst [vmem:[%s1322_s14 + $0x38] sm:$0xff] %v798_v21  ;;  %894 = vst [vmem:[%s1322_s14 + $0x138] sm:$0xff] %v830_v22 }
 0x109   : > { %860 = vst [vmem:[%s1322_s14 + $0x28] sm:$0xff] %v796_v23  ;;  %892 = vst [vmem:[%s1322_s14 + $0x128] sm:$0xff] %v828_v24  ;;  %v1093_v25 = vpop.f32.mrb[8].mxu0  ;;  %v1125_v26 = vpop.f32.mrb[8].mxu1 }
 0x10a   : > { %v577_v27 = vadd.f32 %v1093_v25, %v1314_v40  ;;  %v705_v28 = vadd.f32 %v1125_v26, %v1314_v40  ;;  %v568_v29 = vpop.f32.mrb[9].mxu0  ;;  %v696_v30 = vpop.f32.mrb[9].mxu1 }
 0x10b   : > { %v569_v31 = vadd.f32 %v1314_v40, %v568_v29  ;;  %v697_v32 = vadd.f32 %v1314_v40, %v696_v30  ;;  %v1094_v33 = vpop.f32.mrb[10].mxu0  ;;  %v1126_v34 = vpop.f32.mrb[10].mxu1 }
 0x10c   : > { %v801_v35 = vmax.f32 %v577_v27, 0.0  ;;  %v833_v36 = vmax.f32 %v705_v28, 0.0  ;;  %v580_v37 = vadd.f32 %v1094_v33, %v1314_v40  ;;  %v708_v38 = vadd.f32 %v1126_v34, %v1314_v40  ;;  %v571_v39 = vpop.f32.mrb[11].mxu0  ;;  %v699_v41 = vpop.f32.mrb[11].mxu1 }
 0x10d   : > { %v799_v42 = vmax.f32 %v569_v31, 0.0  ;;  %v831_v43 = vmax.f32 %v697_v32, 0.0  ;;  %v572_v44 = vadd.f32 %v1314_v40, %v571_v39  ;;  %v700_v45 = vadd.f32 %v1314_v40, %v699_v41 }
 0x10e   : > { %865 = vst [vmem:[%s1322_s14 + $0x50] sm:$0xff] %v801_v35  ;;  %897 = vst [vmem:[%s1322_s14 + $0x150] sm:$0xff] %v833_v36  ;;  %v802_v46 = vmax.f32 %v580_v37, 0.0  ;;  %v834_v47 = vmax.f32 %v708_v38, 0.0 }
 0x10f   : > { %863 = vst [vmem:[%s1322_s14 + $0x40] sm:$0xff] %v799_v42  ;;  %895 = vst [vmem:[%s1322_s14 + $0x140] sm:$0xff] %v831_v43  ;;  %v800_v48 = vmax.f32 %v572_v44, 0.0  ;;  %v832_v49 = vmax.f32 %v700_v45, 0.0 }
 0x110   : > { %866 = vst [vmem:[%s1322_s14 + $0x58] sm:$0xff] %v802_v46  ;;  %898 = vst [vmem:[%s1322_s14 + $0x158] sm:$0xff] %v834_v47 }
 0x111   : > { %864 = vst [vmem:[%s1322_s14 + $0x48] sm:$0xff] %v800_v48  ;;  %896 = vst [vmem:[%s1322_s14 + $0x148] sm:$0xff] %v832_v49  ;;  %v1097_v50 = vpop.f32.mrb[12].mxu0  ;;  %v1129_v51 = vpop.f32.mrb[12].mxu1 }
 0x112   : > { %v593_v52 = vadd.f32 %v1097_v50, %v1314_v40  ;;  %v721_v53 = vadd.f32 %v1129_v51, %v1314_v40  ;;  %v584_v54 = vpop.f32.mrb[13].mxu0  ;;  %v712_v55 = vpop.f32.mrb[13].mxu1 }
 0x113   : > { %v585_v56 = vadd.f32 %v1314_v40, %v584_v54  ;;  %v713_v57 = vadd.f32 %v1314_v40, %v712_v55  ;;  %v1098_v58 = vpop.f32.mrb[14].mxu0  ;;  %v1130_v59 = vpop.f32.mrb[14].mxu1 }
 0x114   : > { %v805_v60 = vmax.f32 %v593_v52, 0.0  ;;  %v837_v61 = vmax.f32 %v721_v53, 0.0  ;;  %v596_v62 = vadd.f32 %v1098_v58, %v1314_v40  ;;  %v724_v63 = vadd.f32 %v1130_v59, %v1314_v40  ;;  %v587_v0 = vpop.f32.mrb[15].mxu0  ;;  %v715_v1 = vpop.f32.mrb[15].mxu1 }
 0x115   : > { %v803_v2 = vmax.f32 %v585_v56, 0.0  ;;  %v835_v3 = vmax.f32 %v713_v57, 0.0  ;;  %v588_v4 = vadd.f32 %v1314_v40, %v587_v0  ;;  %v716_v5 = vadd.f32 %v1314_v40, %v715_v1 }
 0x116   : > { %869 = vst [vmem:[%s1322_s14 + $0x70] sm:$0xff] %v805_v60  ;;  %901 = vst [vmem:[%s1322_s14 + $0x170] sm:$0xff] %v837_v61  ;;  %v806_v6 = vmax.f32 %v596_v62, 0.0  ;;  %v838_v7 = vmax.f32 %v724_v63, 0.0 }
 0x117   : > { %867 = vst [vmem:[%s1322_s14 + $0x60] sm:$0xff] %v803_v2  ;;  %899 = vst [vmem:[%s1322_s14 + $0x160] sm:$0xff] %v835_v3  ;;  %v804_v8 = vmax.f32 %v588_v4, 0.0  ;;  %v836_v9 = vmax.f32 %v716_v5, 0.0 }
 0x118   : > { %870 = vst [vmem:[%s1322_s14 + $0x78] sm:$0xff] %v806_v6  ;;  %902 = vst [vmem:[%s1322_s14 + $0x178] sm:$0xff] %v838_v7 }
 0x119   : > { %868 = vst [vmem:[%s1322_s14 + $0x68] sm:$0xff] %v804_v8  ;;  %900 = vst [vmem:[%s1322_s14 + $0x168] sm:$0xff] %v836_v9  ;;  %v1101_v10 = vpop.f32.mrb[16].mxu0  ;;  %v1133_v11 = vpop.f32.mrb[16].mxu1 }
 0x11a   : > { %v609_v12 = vadd.f32 %v1101_v10, %v1314_v40  ;;  %v737_v13 = vadd.f32 %v1133_v11, %v1314_v40  ;;  %v600_v14 = vpop.f32.mrb[17].mxu0  ;;  %v728_v15 = vpop.f32.mrb[17].mxu1 }
 0x11b   : > { %v601_v16 = vadd.f32 %v1314_v40, %v600_v14  ;;  %v729_v17 = vadd.f32 %v1314_v40, %v728_v15  ;;  %v1102_v18 = vpop.f32.mrb[18].mxu0  ;;  %v1134_v19 = vpop.f32.mrb[18].mxu1 }
 0x11c   : > { %v809_v20 = vmax.f32 %v609_v12, 0.0  ;;  %v841_v21 = vmax.f32 %v737_v13, 0.0  ;;  %v612_v22 = vadd.f32 %v1102_v18, %v1314_v40  ;;  %v740_v23 = vadd.f32 %v1134_v19, %v1314_v40  ;;  %v603_v24 = vpop.f32.mrb[19].mxu0  ;;  %v731_v25 = vpop.f32.mrb[19].mxu1 }
 0x11d   : > { %v807_v26 = vmax.f32 %v601_v16, 0.0  ;;  %v839_v27 = vmax.f32 %v729_v17, 0.0  ;;  %v604_v28 = vadd.f32 %v1314_v40, %v603_v24  ;;  %v732_v29 = vadd.f32 %v1314_v40, %v731_v25 }
 0x11e   : > { %873 = vst [vmem:[%s1322_s14 + $0x90] sm:$0xff] %v809_v20  ;;  %905 = vst [vmem:[%s1322_s14 + $0x190] sm:$0xff] %v841_v21  ;;  %v810_v30 = vmax.f32 %v612_v22, 0.0  ;;  %v842_v31 = vmax.f32 %v740_v23, 0.0 }
 0x11f   : > { %871 = vst [vmem:[%s1322_s14 + $0x80] sm:$0xff] %v807_v26  ;;  %903 = vst [vmem:[%s1322_s14 + $0x180] sm:$0xff] %v839_v27  ;;  %v808_v32 = vmax.f32 %v604_v28, 0.0  ;;  %v840_v33 = vmax.f32 %v732_v29, 0.0 }
 0x120   : > { %874 = vst [vmem:[%s1322_s14 + $0x98] sm:$0xff] %v810_v30  ;;  %906 = vst [vmem:[%s1322_s14 + $0x198] sm:$0xff] %v842_v31 }
 0x121   : > { %872 = vst [vmem:[%s1322_s14 + $0x88] sm:$0xff] %v808_v32  ;;  %904 = vst [vmem:[%s1322_s14 + $0x188] sm:$0xff] %v840_v33  ;;  %v1105_v34 = vpop.f32.mrb[20].mxu0  ;;  %v1137_v35 = vpop.f32.mrb[20].mxu1 }
 0x122   : > { %v625_v36 = vadd.f32 %v1105_v34, %v1314_v40  ;;  %v753_v37 = vadd.f32 %v1137_v35, %v1314_v40  ;;  %v616_v38 = vpop.f32.mrb[21].mxu0  ;;  %v744_v39 = vpop.f32.mrb[21].mxu1 }
 0x123   : > { %v617_v41 = vadd.f32 %v1314_v40, %v616_v38  ;;  %v745_v42 = vadd.f32 %v1314_v40, %v744_v39  ;;  %v1106_v43 = vpop.f32.mrb[22].mxu0  ;;  %v1138_v44 = vpop.f32.mrb[22].mxu1 }
 0x124   : > { %v813_v45 = vmax.f32 %v625_v36, 0.0  ;;  %v845_v46 = vmax.f32 %v753_v37, 0.0  ;;  %v628_v47 = vadd.f32 %v1106_v43, %v1314_v40  ;;  %v756_v48 = vadd.f32 %v1138_v44, %v1314_v40  ;;  %v619_v49 = vpop.f32.mrb[23].mxu0  ;;  %v747_v50 = vpop.f32.mrb[23].mxu1 }
 0x125   : > { %v811_v51 = vmax.f32 %v617_v41, 0.0  ;;  %v843_v52 = vmax.f32 %v745_v42, 0.0  ;;  %v620_v53 = vadd.f32 %v1314_v40, %v619_v49  ;;  %v748_v54 = vadd.f32 %v1314_v40, %v747_v50 }
 0x126   : > { %877 = vst [vmem:[%s1322_s14 + $0xb0] sm:$0xff] %v813_v45  ;;  %909 = vst [vmem:[%s1322_s14 + $0x1b0] sm:$0xff] %v845_v46  ;;  %v814_v55 = vmax.f32 %v628_v47, 0.0  ;;  %v846_v56 = vmax.f32 %v756_v48, 0.0 }
 0x127   : > { %875 = vst [vmem:[%s1322_s14 + $0xa0] sm:$0xff] %v811_v51  ;;  %907 = vst [vmem:[%s1322_s14 + $0x1a0] sm:$0xff] %v843_v52  ;;  %v812_v57 = vmax.f32 %v620_v53, 0.0  ;;  %v844_v58 = vmax.f32 %v748_v54, 0.0 }
 0x128   : > { %878 = vst [vmem:[%s1322_s14 + $0xb8] sm:$0xff] %v814_v55  ;;  %910 = vst [vmem:[%s1322_s14 + $0x1b8] sm:$0xff] %v846_v56 }
 0x129   : > { %876 = vst [vmem:[%s1322_s14 + $0xa8] sm:$0xff] %v812_v57  ;;  %908 = vst [vmem:[%s1322_s14 + $0x1a8] sm:$0xff] %v844_v58  ;;  %v1109_v59 = vpop.f32.mrb[24].mxu0  ;;  %v1141_v60 = vpop.f32.mrb[24].mxu1 }
 0x12a   : > { %v641_v61 = vadd.f32 %v1109_v59, %v1314_v40  ;;  %v769_v62 = vadd.f32 %v1141_v60, %v1314_v40  ;;  %v632_v63 = vpop.f32.mrb[25].mxu0  ;;  %v760_v0 = vpop.f32.mrb[25].mxu1 }
 0x12b   : > { %v633_v1 = vadd.f32 %v1314_v40, %v632_v63  ;;  %v761_v2 = vadd.f32 %v1314_v40, %v760_v0  ;;  %v1110_v3 = vpop.f32.mrb[26].mxu0  ;;  %v1142_v4 = vpop.f32.mrb[26].mxu1 }
 0x12c   : > { %v817_v5 = vmax.f32 %v641_v61, 0.0  ;;  %v849_v6 = vmax.f32 %v769_v62, 0.0  ;;  %v644_v7 = vadd.f32 %v1110_v3, %v1314_v40  ;;  %v772_v8 = vadd.f32 %v1142_v4, %v1314_v40  ;;  %v635_v9 = vpop.f32.mrb[27].mxu0  ;;  %v763_v10 = vpop.f32.mrb[27].mxu1 }
 0x12d   : > { %v815_v11 = vmax.f32 %v633_v1, 0.0  ;;  %v847_v12 = vmax.f32 %v761_v2, 0.0  ;;  %v636_v13 = vadd.f32 %v1314_v40, %v635_v9  ;;  %v764_v14 = vadd.f32 %v1314_v40, %v763_v10 }
 0x12e   : > { %881 = vst [vmem:[%s1322_s14 + $0xd0] sm:$0xff] %v817_v5  ;;  %913 = vst [vmem:[%s1322_s14 + $0x1d0] sm:$0xff] %v849_v6  ;;  %v818_v15 = vmax.f32 %v644_v7, 0.0  ;;  %v850_v16 = vmax.f32 %v772_v8, 0.0 }
 0x12f   : > { %879 = vst [vmem:[%s1322_s14 + $0xc0] sm:$0xff] %v815_v11  ;;  %911 = vst [vmem:[%s1322_s14 + $0x1c0] sm:$0xff] %v847_v12  ;;  %v816_v17 = vmax.f32 %v636_v13, 0.0  ;;  %v848_v18 = vmax.f32 %v764_v14, 0.0 }
 0x130   : > { %882 = vst [vmem:[%s1322_s14 + $0xd8] sm:$0xff] %v818_v15  ;;  %914 = vst [vmem:[%s1322_s14 + $0x1d8] sm:$0xff] %v850_v16 }
 0x131   : > { %880 = vst [vmem:[%s1322_s14 + $0xc8] sm:$0xff] %v816_v17  ;;  %912 = vst [vmem:[%s1322_s14 + $0x1c8] sm:$0xff] %v848_v18  ;;  %v1113_v19 = vpop.f32.mrb[28].mxu0  ;;  %v1145_v20 = vpop.f32.mrb[28].mxu1 }
 0x132   : > { %v657_v21 = vadd.f32 %v1113_v19, %v1314_v40  ;;  %v785_v22 = vadd.f32 %v1145_v20, %v1314_v40  ;;  %v648_v23 = vpop.f32.mrb[29].mxu0  ;;  %v776_v24 = vpop.f32.mrb[29].mxu1 }
 0x133   : > { %v649_v25 = vadd.f32 %v1314_v40, %v648_v23  ;;  %v777_v26 = vadd.f32 %v1314_v40, %v776_v24  ;;  %v1114_v27 = vpop.f32.mrb[30].mxu0  ;;  %v1146_v28 = vpop.f32.mrb[30].mxu1 }
 0x134   : > { %v821_v29 = vmax.f32 %v657_v21, 0.0  ;;  %v853_v30 = vmax.f32 %v785_v22, 0.0  ;;  %v660_v31 = vadd.f32 %v1114_v27, %v1314_v40  ;;  %v788_v32 = vadd.f32 %v1146_v28, %v1314_v40  ;;  %v651_v33 = vpop.f32.mrb[31].mxu0  ;;  %v779_v34 = vpop.f32.mrb[31].mxu1 }
 0x135   : > { %v819_v35 = vmax.f32 %v649_v25, 0.0  ;;  %v851_v36 = vmax.f32 %v777_v26, 0.0  ;;  %v652_v37 = vadd.f32 %v1314_v40, %v651_v33  ;;  %v780_v38 = vadd.f32 %v1314_v40, %v779_v34 }
 0x136   : > { %885 = vst [vmem:[%s1322_s14 + $0xf0] sm:$0xff] %v821_v29  ;;  %917 = vst [vmem:[%s1322_s14 + $0x1f0] sm:$0xff] %v853_v30  ;;  %v822_v39 = vmax.f32 %v660_v31, 0.0  ;;  %v854_v41 = vmax.f32 %v788_v32, 0.0 }
 0x137   : > { %883 = vst [vmem:[%s1322_s14 + $0xe0] sm:$0xff] %v819_v35  ;;  %915 = vst [vmem:[%s1322_s14 + $0x1e0] sm:$0xff] %v851_v36  ;;  %v820_v42 = vmax.f32 %v652_v37, 0.0  ;;  %v852_v43 = vmax.f32 %v780_v38, 0.0 }
 0x138   : > { %886 = vst [vmem:[%s1322_s14 + $0xf8] sm:$0xff] %v822_v39  ;;  %918 = vst [vmem:[%s1322_s14 + $0x1f8] sm:$0xff] %v854_v41 }
 0x139   : > { %884 = vst [vmem:[%s1322_s14 + $0xe8] sm:$0xff] %v820_v42  ;;  %916 = vst [vmem:[%s1322_s14 + $0x1e8] sm:$0xff] %v852_v43 }
 0x13a PF: > { %s13_s12 = sadd.s32 1, %s1217_s12  }
 0x13b   : > { %p10_p4 = scmp.ge.s32.totalorder %s13_s12, 4  }
 0x13d   :  { %12 = sbr.rel (!%p10_p4) target bundleno = 1 (0x1), region = 62 }

// kernel: lpips_forward.5
= control target key start
LH: loop header
LB: loop body
LE: loop exit
PB: predicated region body
PF: predicated region fallthrough
CT: control target
= control target key end

     0   :  { %s4540_s1 = inlined_call_operand.vmem [shape: bf16[1152,128], index: 1, kind: input, shape index: {}]   ;;  %s4541_s0 = inlined_call_operand.vmem [shape: bf16[256,1152], index: 0, kind: input, shape index: {}]   ;;  %s4542_s2 = inlined_call_operand.vmem [shape: f32[1,128], index: 2, kind: input, shape index: {}]   ;;  %s4543_s3 = inlined_call_operand.vmem [shape: f32[256,128], index: 3, kind: output, shape index: {}]  }
   0x1   :  { %v3120_v0 = vld [vmem:[%s4540_s1 + $0x40] sm:$0xff]   ;;  %v3122_v2 = vld [vmem:[%s4540_s1 + $0x48] sm:$0xff]   ;;  %v3124_v4 = vld [vmem:[%s4540_s1 + $0x50] sm:$0xff]  }
   0x2   :  { %v3121_v1 = vld [vmem:[%s4540_s1] sm:$0xff]   ;;  %2584 = vmatprep.subr.bf16.mxu0 %v3120_v0  ;;  %3104 = vmatprep.subr.bf16.mxu1 %v3120_v0  ;;  %v3123_v3 = vld [vmem:[%s4540_s1 + $0x8] sm:$0xff]   ;;  %v3125_v5 = vld [vmem:[%s4540_s1 + $0x10] sm:$0xff]  }
   0x3   :  { %2585 = vmatpush3.bf16.msra.mxu0 %v3121_v1  ;;  %3112 = vmatpush3.bf16.msra.mxu1 %v3121_v1  ;;  %v3126_v6 = vld [vmem:[%s4540_s1 + $0x58] sm:$0xff]   ;;  %v3128_v8 = vld [vmem:[%s4540_s1 + $0x60] sm:$0xff]   ;;  %v3130_v10 = vld [vmem:[%s4540_s1 + $0x68] sm:$0xff]  }
   0x4   :  { %2586 = vmatprep.subr.bf16.mxu0 %v3122_v2  ;;  %3105 = vmatprep.subr.bf16.mxu1 %v3122_v2  ;;  %v3127_v7 = vld [vmem:[%s4540_s1 + $0x18] sm:$0xff]   ;;  %v3129_v9 = vld [vmem:[%s4540_s1 + $0x20] sm:$0xff]   ;;  %v3131_v13 = vld [vmem:[%s4540_s1 + $0x28] sm:$0xff]  }
   0x5   :  { %v3138_v11 = vld [vmem:[%s4541_s0 + $0x4] ss:$36 sps:$4 sm:$0xff]   ;;  %v3132_v14 = vld [vmem:[%s4540_s1 + $0x70] sm:$0xff]   ;;  %v3134_v16 = vld [vmem:[%s4540_s1 + $0x78] sm:$0xff]  }
   0x6   :  { %v3141_v12 = vld [vmem:[%s4541_s0 + $0x364] ss:$36 sps:$4 sm:$0xff]   ;;  %1526 = vmatprep.mubr.bf16.mxu0 %v3138_v11  ;;  %v3133_v15 = vld [vmem:[%s4540_s1 + $0x30] sm:$0xff]   ;;  %v3135_v17 = vld [vmem:[%s4540_s1 + $0x38] sm:$0xff]  }
   0x7   :  { %2587 = vmatpush3.bf16.msra.mxu0 %v3123_v3  ;;  %3113 = vmatpush3.bf16.msra.mxu1 %v3123_v3  ;;  %v3142_v18 = vld [vmem:[%s4540_s1 + $0xc0] sm:$0xff]   ;;  %v3144_v23 = vld [vmem:[%s4540_s1 + $0xc8] sm:$0xff]   ;;  %v3154_v31 = vld [vmem:[%s4540_s1 + $0xd0] sm:$0xff]  }
   0x8   :  { %2588 = vmatprep.subr.bf16.mxu0 %v3124_v4  ;;  %3106 = vmatprep.subr.bf16.mxu1 %v3124_v4  ;;  %v3136_v19 = vld [vmem:[%s4541_s0] ss:$36 sps:$4 sm:$0xff]   ;;  %v3148_v25 = vld [vmem:[%s4541_s0 + $0x4c] ss:$36 sps:$4 sm:$0xff]   ;;  %v3156_v34 = vld [vmem:[%s4540_s1 + $0xd8] sm:$0xff]  }
   0x9   :  { %1622 = vmatprep.mubr.bf16.mxu1 %v3141_v12  ;;  %v3139_v20 = vld [vmem:[%s4541_s0 + $0x360] ss:$36 sps:$4 sm:$0xff]   ;;  %v3150_v26 = vld [vmem:[%s4541_s0 + $0x3ac] ss:$36 sps:$4 sm:$0xff]   ;;  %v3158_v35 = vld [vmem:[%s4541_s0 + $0x94] ss:$36 sps:$4 sm:$0xff]  }
   0xa   :  { %v3145_v21 = vld [vmem:[%s4540_s1 + $0x140] sm:$0xff]   ;;  %v3146_v27 = vld [vmem:[%s4540_s1 + $0x88] sm:$0xff]   ;;  %v3155_v32 = vld [vmem:[%s4540_s1 + $0x90] sm:$0xff]  }
   0xb   :  { %2589 = vmatpush3.bf16.msra.mxu0 %v3125_v5  ;;  %3114 = vmatpush3.bf16.msra.mxu1 %v3125_v5  ;;  %v3143_v22 = vld [vmem:[%s4540_s1 + $0x80] sm:$0xff]   ;;  %v3165_v28 = vld [vmem:[%s4540_s1 + $0x148] sm:$0xff]   ;;  %v3160_v36 = vld [vmem:[%s4541_s0 + $0x3f4] ss:$36 sps:$4 sm:$0xff]  }
   0xc   :  { %2590 = vmatprep.subr.bf16.mxu0 %v3126_v6  ;;  %3107 = vmatprep.subr.bf16.mxu1 %v3126_v6  ;;  %v3147_v24 = vld [vmem:[%s4540_s1 + $0x100] sm:$0xff]   ;;  %v3152_v29 = vld [vmem:[%s4541_s0 + $0x48] ss:$36 sps:$4 sm:$0xff]   ;;  %v3157_v37 = vld [vmem:[%s4540_s1 + $0x98] sm:$0xff]  }
   0xd   :  { %v3153_v30 = vld [vmem:[%s4541_s0 + $0x3a8] ss:$36 sps:$4 sm:$0xff]   ;;  %v3162_v38 = vld [vmem:[%s4541_s0 + $0x90] ss:$36 sps:$4 sm:$0xff]   ;;  %v3164_v40 = vld [vmem:[%s4540_s1 + $0xe0] sm:$0xff]  }
   0xe   :  { %v3167_v33 = vld [vmem:[%s4540_s1 + $0x108] sm:$0xff]   ;;  %v3163_v39 = vld [vmem:[%s4541_s0 + $0x3f0] ss:$36 sps:$4 sm:$0xff]   ;;  %v3166_v41 = vld [vmem:[%s4540_s1 + $0xa0] sm:$0xff]  }
   0xf   :  { %2591 = vmatpush3.bf16.msra.mxu0 %v3127_v7  ;;  %3115 = vmatpush3.bf16.msra.mxu1 %v3127_v7  ;;  %v3168_v42 = vld [vmem:[%s4540_s1 + $0xe8] sm:$0xff]   ;;  %v3179_v43 = vld [vmem:[%s4540_s1 + $0x150] sm:$0xff]   ;;  %v3170_v44 = vld [vmem:[%s4541_s0 + $0xdc] ss:$36 sps:$4 sm:$0xff]  }
  0x10   :  { %2592 = vmatprep.subr.bf16.mxu0 %v3128_v8  ;;  %3108 = vmatprep.subr.bf16.mxu1 %v3128_v8  ;;  %v3172_v45 = vld [vmem:[%s4541_s0 + $0x43c] ss:$36 sps:$4 sm:$0xff]   ;;  %v3181_v46 = vld [vmem:[%s4540_s1 + $0x110] sm:$0xff]   ;;  %v3169_v47 = vld [vmem:[%s4540_s1 + $0xa8] sm:$0xff]  }
  0x11   :  { %v3176_v48 = vld [vmem:[%s4540_s1 + $0xf0] sm:$0xff]   ;;  %v3174_v49 = vld [vmem:[%s4541_s0 + $0xd8] ss:$36 sps:$4 sm:$0xff]   ;;  %v3182_v53 = vld [vmem:[%s4541_s0 + $0x124] ss:$36 sps:$4 sm:$0xff]  }
  0x12   :  { %v3175_v50 = vld [vmem:[%s4541_s0 + $0x438] ss:$36 sps:$4 sm:$0xff]   ;;  %v3177_v51 = vld [vmem:[%s4540_s1 + $0xb0] sm:$0xff]   ;;  %v3184_v58 = vld [vmem:[%s4541_s0 + $0x8] ss:$36 sps:$4 sm:$0xff]  }
  0x13   :  { %2593 = vmatpush3.bf16.msra.mxu0 %v3129_v9  ;;  %3116 = vmatpush3.bf16.msra.mxu1 %v3129_v9  ;;  %v3178_v52 = vld [vmem:[%s4540_s1 + $0xf8] sm:$0xff]   ;;  %v3186_v54 = vld [vmem:[%s4541_s0 + $0xc] ss:$36 sps:$4 sm:$0xff]   ;;  %v3187_v59 = vld [vmem:[%s4541_s0 + $0x120] ss:$36 sps:$4 sm:$0xff]  }
  0x14   :  { %2594 = vmatprep.subr.bf16.mxu0 %v3130_v10  ;;  %3109 = vmatprep.subr.bf16.mxu1 %v3130_v10  ;;  %v3196_v55 = vld [vmem:[%s4540_s1 + $0x158] sm:$0xff]   ;;  %v3188_v60 = vld [vmem:[%s4540_s1 + $0x1c0] sm:$0xff]   ;;  %v3190_v62 = vld [vmem:[%s4541_s0 + $0x16c] ss:$36 sps:$4 sm:$0xff]  }
  0x15   :  { %v3197_v56 = vld [vmem:[%s4540_s1 + $0x118] sm:$0xff]   ;;  %v3189_v61 = vld [vmem:[%s4540_s1 + $0x180] sm:$0xff]   ;;  %v3204_v1 = vld [vmem:[%s4540_s1 + $0x1c8] sm:$0xff]  }
  0x16   :  { %v3180_v57 = vld [vmem:[%s4540_s1 + $0xb8] sm:$0xff]   ;;  %v3206_v0 = vld [vmem:[%s4540_s1 + $0x160] sm:$0xff]   ;;  %v3205_v3 = vld [vmem:[%s4540_s1 + $0x188] sm:$0xff]  }
  0x17   :  { %2595 = vmatpush3.bf16.msra.mxu0 %v3131_v13  ;;  %3117 = vmatpush3.bf16.msra.mxu1 %v3131_v13  ;;  %v3192_v63 = vld [vmem:[%s4541_s0 + $0x54] ss:$36 sps:$4 sm:$0xff]   ;;  %v3207_v2 = vld [vmem:[%s4540_s1 + $0x120] sm:$0xff]   ;;  %v3194_v4 = vld [vmem:[%s4541_s0 + $0x168] ss:$36 sps:$4 sm:$0xff]  }
  0x18   :  { %2596 = vmatprep.subr.bf16.mxu0 %v3132_v14  ;;  %3110 = vmatprep.subr.bf16.mxu1 %v3132_v14  ;;  %v3195_v5 = vld [vmem:[%s4541_s0 + $0x50] ss:$36 sps:$4 sm:$0xff]   ;;  %v3200_v7 = vld [vmem:[%s4541_s0 + $0x9c] ss:$36 sps:$4 sm:$0xff]   ;;  %v3220_v8 = vld [vmem:[%s4540_s1 + $0x168] sm:$0xff]  }
  0x19   :  { %v3198_v6 = vld [vmem:[%s4541_s0 + $0x1b4] ss:$36 sps:$4 sm:$0xff]   ;;  %v3222_v10 = vld [vmem:[%s4540_s1 + $0x128] sm:$0xff]   ;;  %v3208_v14 = vld [vmem:[%s4541_s0 + $0x1fc] ss:$36 sps:$4 sm:$0xff]  }
  0x1a   :  { %v3221_v9 = vld [vmem:[%s4540_s1 + $0x1d0] sm:$0xff]   ;;  %v3203_v13 = vld [vmem:[%s4541_s0 + $0x98] ss:$36 sps:$4 sm:$0xff]  }
  0x1b   :  { %2597 = vmatpush3.bf16.msra.mxu0 %v3133_v15  ;;  %3118 = vmatpush3.bf16.msra.mxu1 %v3133_v15  ;;  %v3223_v11 = vld [vmem:[%s4540_s1 + $0x190] sm:$0xff]  }
  0x1c   :  { %2598 = vmatprep.subr.bf16.mxu0 %v3134_v16  ;;  %3111 = vmatprep.subr.bf16.mxu1 %v3134_v16  ;;  %v3202_v12 = vld [vmem:[%s4541_s0 + $0x1b0] ss:$36 sps:$4 sm:$0xff]  }
  0x1d   :  { %v3230_v15 = vld [vmem:[%s4540_s1 + $0x170] sm:$0xff]  }
  0x1e   :  { %v3231_v16 = vld [vmem:[%s4540_s1 + $0x130] sm:$0xff]  }
  0x1f   :  { %2599 = vmatpush3.bf16.msra.mxu0 %v3135_v17  ;;  %3119 = vmatpush3.bf16.msra.mxu1 %v3135_v17  ;;  %v3210_v17 = vld [vmem:[%s4541_s0 + $0xe4] ss:$36 sps:$4 sm:$0xff]  }
  0x20   :  { %2696 = vmatprep.subr.bf16.mxu1 %v3142_v18  ;;  %2808 = vmatprep.subr.bf16.mxu0 %v3145_v21  ;;  %v3238_v18 = vld [vmem:[%s4540_s1 + $0x1d8] sm:$0xff]   ;;  %v3213_v21 = vld [vmem:[%s4541_s0 + $0xe0] ss:$36 sps:$4 sm:$0xff]  }
  0x22   :  { %1527 = vmatmul.mubr.bf16.vlgmr.msra.gmra.mrb[0].mxu0 %v3136_v19  ;;  %1623 = vmatmul.mubr.bf16.vlgmr.msra.gmra.mrb[0].mxu1 %v3139_v20  ;;  %v3239_v19 = vld [vmem:[%s4540_s1 + $0x198] sm:$0xff]  }
  0x23   :  { %2697 = vmatpush3.bf16.msra.mxu1 %v3143_v22  ;;  %2809 = vmatpush3.bf16.msra.mxu0 %v3147_v24  ;;  %v3212_v20 = vld [vmem:[%s4541_s0 + $0x1f8] ss:$36 sps:$4 sm:$0xff]   ;;  %v3214_v22 = vld [vmem:[%s4541_s0 + $0x244] ss:$36 sps:$4 sm:$0xff]  }
  0x24   :  { %2698 = vmatprep.subr.bf16.mxu1 %v3144_v23  ;;  %1534 = vmatprep.mubr.bf16.mxu0 %v3148_v25  ;;  %v3216_v23 = vld [vmem:[%s4541_s0 + $0x12c] ss:$36 sps:$4 sm:$0xff]   ;;  %v3246_v24 = vld [vmem:[%s4540_s1 + $0x178] sm:$0xff]  }
  0x25   :  { %1630 = vmatprep.mubr.bf16.mxu1 %v3150_v26  ;;  %2810 = vmatprep.subr.bf16.mxu0 %v3165_v28  ;;  %v3247_v25 = vld [vmem:[%s4540_s1 + $0x138] sm:$0xff]   ;;  %v3254_v26 = vld [vmem:[%s4540_s1 + $0x1e0] sm:$0xff]  }
  0x26   :  { %v3255_v28 = vld [vmem:[%s4540_s1 + $0x1a0] sm:$0xff]  }
  0x27   :  { %2699 = vmatpush3.bf16.msra.mxu1 %v3146_v27  ;;  %2811 = vmatpush3.bf16.msra.mxu0 %v3167_v33  ;;  %v3218_v27 = vld [vmem:[%s4541_s0 + $0x240] ss:$36 sps:$4 sm:$0xff]   ;;  %v3269_v33 = vld [vmem:[%s4540_s1 + $0x1e8] sm:$0xff]  }
  0x28   :  { %2700 = vmatprep.subr.bf16.mxu1 %v3154_v31  ;;  %2812 = vmatprep.subr.bf16.mxu0 %v3179_v43  ;;  %v3224_v31 = vld [vmem:[%s4541_s0 + $0x28c] ss:$36 sps:$4 sm:$0xff]   ;;  %v3240_v43 = vld [vmem:[%s4541_s0 + $0x31c] ss:$36 sps:$4 sm:$0xff]  }
  0x2a   :  { %1535 = vmatmul.mubr.bf16.gmra.mrb[4].mxu0 %v3152_v29  ;;  %1631 = vmatmul.mubr.bf16.gmra.mrb[4].mxu1 %v3153_v30  ;;  %v3256_v29 = vld [vmem:[%s4540_s1 + $0x200] sm:$0xff]   ;;  %v3219_v30 = vld [vmem:[%s4541_s0 + $0x128] ss:$36 sps:$4 sm:$0xff]  }
  0x2b   :  { %2701 = vmatpush3.bf16.msra.mxu1 %v3155_v32  ;;  %1542 = vmatprep.mubr.bf16.mxu0 %v3158_v35  ;;  %v3226_v32 = vld [vmem:[%s4541_s0 + $0x174] ss:$36 sps:$4 sm:$0xff]   ;;  %v3270_v35 = vld [vmem:[%s4540_s1 + $0x1a8] sm:$0xff]  }
  0x2c   :  { %2702 = vmatprep.subr.bf16.mxu1 %v3156_v34  ;;  %1638 = vmatprep.mubr.bf16.mxu1 %v3160_v36  ;;  %v3228_v34 = vld [vmem:[%s4541_s0 + $0x288] ss:$36 sps:$4 sm:$0xff]   ;;  %v3229_v36 = vld [vmem:[%s4541_s0 + $0x170] ss:$36 sps:$4 sm:$0xff]  }
  0x2d   :  { %2813 = vmatpush3.bf16.msra.mxu0 %v3181_v46  ;;  %v3245_v46 = vld [vmem:[%s4541_s0 + $0x200] ss:$36 sps:$4 sm:$0xff]  }
  0x2e   :  { %2814 = vmatprep.subr.bf16.mxu0 %v3196_v55  ;;  %v3271_v55 = vld [vmem:[%s4540_s1 + $0x208] sm:$0xff]  }
  0x2f   :  { %2703 = vmatpush3.bf16.msra.mxu1 %v3157_v37  ;;  %v3232_v37 = vld [vmem:[%s4541_s0 + $0x2d4] ss:$36 sps:$4 sm:$0xff]  }
  0x30   :  { %2704 = vmatprep.subr.bf16.mxu1 %v3164_v40  ;;  %v3237_v40 = vld [vmem:[%s4541_s0 + $0x1b8] ss:$36 sps:$4 sm:$0xff]  }
  0x31   :  { %2815 = vmatpush3.bf16.msra.mxu0 %v3197_v56  ;;  %v3286_v56 = vld [vmem:[%s4540_s1 + $0x210] sm:$0xff]  }
  0x32   :  { %1543 = vmatmul.mubr.bf16.gmra.mrb[8].mxu0 %v3162_v38  ;;  %1639 = vmatmul.mubr.bf16.gmra.mrb[8].mxu1 %v3163_v39  ;;  %v3234_v38 = vld [vmem:[%s4541_s0 + $0x1bc] ss:$36 sps:$4 sm:$0xff]   ;;  %v3236_v39 = vld [vmem:[%s4541_s0 + $0x2d0] ss:$36 sps:$4 sm:$0xff]  }
  0x33   :  { %2705 = vmatpush3.bf16.msra.mxu1 %v3166_v41  ;;  %1550 = vmatprep.mubr.bf16.mxu0 %v3170_v44  ;;  %v3284_v41 = vld [vmem:[%s4540_s1 + $0x1f0] sm:$0xff]   ;;  %v3242_v44 = vld [vmem:[%s4541_s0 + $0x204] ss:$36 sps:$4 sm:$0xff]  }
  0x34   :  { %2706 = vmatprep.subr.bf16.mxu1 %v3168_v42  ;;  %1646 = vmatprep.mubr.bf16.mxu1 %v3172_v45  ;;  %v3285_v42 = vld [vmem:[%s4540_s1 + $0x1b0] sm:$0xff]   ;;  %v3244_v45 = vld [vmem:[%s4541_s0 + $0x318] ss:$36 sps:$4 sm:$0xff]  }
  0x35   :  { %2816 = vmatprep.subr.bf16.mxu0 %v3206_v0  ;;  %v3268_v0 = vld [vmem:[%s4541_s0 + $0xa0] ss:$36 sps:$4 sm:$0xff]  }
  0x36   :  { %2817 = vmatpush3.bf16.msra.mxu0 %v3207_v2  ;;  %v3274_v2 = vld [vmem:[%s4541_s0 + $0xec] ss:$36 sps:$4 sm:$0xff]  }
  0x37   :  { %2707 = vmatpush3.bf16.msra.mxu1 %v3169_v47  ;;  %2818 = vmatprep.subr.bf16.mxu0 %v3220_v8  ;;  %v3299_v47 = vld [vmem:[%s4540_s1 + $0x1f8] sm:$0xff]  }
  0x38   :  { %2708 = vmatprep.subr.bf16.mxu1 %v3176_v48  ;;  %v3300_v48 = vld [vmem:[%s4540_s1 + $0x1b8] sm:$0xff]  }
  0x39   :  { %v3280_v8 = vld [vmem:[%s4541_s0 + $0x134] ss:$36 sps:$4 sm:$0xff]  }
  0x3a   :  { %1551 = vmatmul.mubr.bf16.gmra.mrb[12].mxu0 %v3174_v49  ;;  %1647 = vmatmul.mubr.bf16.gmra.mrb[12].mxu1 %v3175_v50  ;;  %v3248_v49 = vld [vmem:[%s4541_s0 + $0x24c] ss:$36 sps:$4 sm:$0xff]   ;;  %v3252_v50 = vld [vmem:[%s4541_s0 + $0x14] ss:$36 sps:$4 sm:$0xff]  }
  0x3b   :  { %2709 = vmatpush3.bf16.msra.mxu1 %v3177_v51  ;;  %1558 = vmatprep.mubr.bf16.mxu0 %v3182_v53  ;;  %v3250_v51 = vld [vmem:[%s4541_s0 + $0x10] ss:$36 sps:$4 sm:$0xff]  }
  0x3c   :  { %2710 = vmatprep.subr.bf16.mxu1 %v3178_v52  ;;  %1687 = vmatprep.mubr.bf16.mxu1 %v3186_v54  ;;  %v3253_v52 = vld [vmem:[%s4541_s0 + $0x248] ss:$36 sps:$4 sm:$0xff]   ;;  %v3257_v53 = vld [vmem:[%s4541_s0 + $0x294] ss:$36 sps:$4 sm:$0xff]   ;;  %v3259_v54 = vld [vmem:[%s4541_s0 + $0x5c] ss:$36 sps:$4 sm:$0xff]  }
  0x3d   :  { %2819 = vmatpush3.bf16.msra.mxu0 %v3222_v10  ;;  %v3282_v10 = vld [vmem:[%s4541_s0 + $0x368] ss:$36 sps:$4 sm:$0xff]  }
  0x3e   :  { %2820 = vmatprep.subr.bf16.mxu0 %v3230_v15  ;;  %v3292_v15 = vld [vmem:[%s4541_s0 + $0x178] ss:$36 sps:$4 sm:$0xff]  }
  0x3f   :  { %2711 = vmatpush3.bf16.msra.mxu1 %v3180_v57  ;;  %v3261_v57 = vld [vmem:[%s4541_s0 + $0x290] ss:$36 sps:$4 sm:$0xff]  }
  0x40   :  { %2920 = vmatprep.subr.bf16.mxu1 %v3188_v60  ;;  %v3265_v60 = vld [vmem:[%s4541_s0 + $0xa4] ss:$36 sps:$4 sm:$0xff]  }
  0x41   :  { %2821 = vmatpush3.bf16.msra.mxu0 %v3231_v16  ;;  %v3293_v16 = vld [vmem:[%s4541_s0 + $0x3fc] ss:$36 sps:$4 sm:$0xff]  }
  0x42   :  { %1559 = vmatmul.mubr.bf16.gmra.mrb[16].mxu0 %v3187_v59  ;;  %1688 = vmatmul.mubr.bf16.vlgmr.msra.gmra.mrb[16].mxu1 %v3184_v58  ;;  %v3262_v58 = vld [vmem:[%s4541_s0 + $0x58] ss:$36 sps:$4 sm:$0xff]  }
  0x43   :  { %2921 = vmatpush3.bf16.msra.mxu1 %v3189_v61  ;;  %1566 = vmatprep.mubr.bf16.mxu0 %v3190_v62  ;;  %v3263_v59 = vld [vmem:[%s4541_s0 + $0x2dc] ss:$36 sps:$4 sm:$0xff]  }
  0x44   :  { %1695 = vmatprep.mubr.bf16.mxu1 %v3192_v63  ;;  %2922 = vmatprep.subr.bf16.mxu1 %v3204_v1  ;;  %v3301_v61 = vld [vmem:[%s4540_s1 + $0x218] sm:$0xff]   ;;  %v3314_v62 = vld [vmem:[%s4540_s1 + $0x220] sm:$0xff]  }
  0x45   :  { %2822 = vmatprep.subr.bf16.mxu0 %v3246_v24  ;;  %v3267_v63 = vld [vmem:[%s4541_s0 + $0x2d8] ss:$36 sps:$4 sm:$0xff]   ;;  %v3272_v1 = vld [vmem:[%s4541_s0 + $0x324] ss:$36 sps:$4 sm:$0xff]  }
  0x46   :  { %2823 = vmatpush3.bf16.msra.mxu0 %v3247_v25  ;;  %v3308_v24 = vld [vmem:[%s4541_s0 + $0x254] ss:$36 sps:$4 sm:$0xff]   ;;  %v3312_v25 = vld [vmem:[%s4541_s0 + $0x1c] ss:$36 sps:$4 sm:$0xff]  }
  0x47   :  { %2923 = vmatpush3.bf16.msra.mxu1 %v3205_v3  ;;  %3056 = vmatprep.subr.bf16.mxu0 %v3256_v29  ;;  %v3327_v3 = vld [vmem:[%s4540_s1 + $0x228] sm:$0xff]  }
  0x48   :  { %2924 = vmatprep.subr.bf16.mxu1 %v3221_v9  ;;  %v3353_v9 = vld [vmem:[%s4540_s1 + $0x238] sm:$0xff]  }
  0x4a   :  { %1567 = vmatmul.mubr.bf16.gmra.mrb[20].mxu0 %v3194_v4  ;;  %1696 = vmatmul.mubr.bf16.gmra.mrb[20].mxu1 %v3195_v5  ;;  %v3276_v4 = vld [vmem:[%s4541_s0 + $0x320] ss:$36 sps:$4 sm:$0xff]   ;;  %v3277_v5 = vld [vmem:[%s4541_s0 + $0xe8] ss:$36 sps:$4 sm:$0xff]  }
  0x4b   :  { %1574 = vmatprep.mubr.bf16.mxu0 %v3198_v6  ;;  %1703 = vmatprep.mubr.bf16.mxu1 %v3200_v7  ;;  %v3340_v6 = vld [vmem:[%s4540_s1 + $0x230] sm:$0xff]  }
  0x4c   :  { %2925 = vmatpush3.bf16.msra.mxu1 %v3223_v11  ;;  %v3278_v7 = vld [vmem:[%s4541_s0 + $0x36c] ss:$36 sps:$4 sm:$0xff]  }
  0x4d   :  { %2926 = vmatprep.subr.bf16.mxu1 %v3238_v18  ;;  %v3283_v11 = vld [vmem:[%s4541_s0 + $0x130] ss:$36 sps:$4 sm:$0xff]   ;;  %v3297_v18 = vld [vmem:[%s4541_s0 + $0x3f8] ss:$36 sps:$4 sm:$0xff]  }
  0x50   :  { %2927 = vmatpush3.bf16.msra.mxu1 %v3239_v19  ;;  %v3298_v19 = vld [vmem:[%s4541_s0 + $0x1c0] ss:$36 sps:$4 sm:$0xff]  }
  0x51   :  { %2928 = vmatprep.subr.bf16.mxu1 %v3254_v26  ;;  %v3310_v26 = vld [vmem:[%s4541_s0 + $0x18] ss:$36 sps:$4 sm:$0xff]  }
  0x52   :  { %1575 = vmatmul.mubr.bf16.gmra.mrb[24].mxu0 %v3202_v12  ;;  %1704 = vmatmul.mubr.bf16.gmra.mrb[24].mxu1 %v3203_v13  ;;  %v3287_v12 = vld [vmem:[%s4541_s0 + $0x3b4] ss:$36 sps:$4 sm:$0xff]   ;;  %v3289_v13 = vld [vmem:[%s4541_s0 + $0x17c] ss:$36 sps:$4 sm:$0xff]  }
  0x53   :  { %1582 = vmatprep.mubr.bf16.mxu0 %v3208_v14  ;;  %1711 = vmatprep.mubr.bf16.mxu1 %v3210_v17  ;;  %v3291_v14 = vld [vmem:[%s4541_s0 + $0x3b0] ss:$36 sps:$4 sm:$0xff]   ;;  %v3295_v17 = vld [vmem:[%s4541_s0 + $0x1c4] ss:$36 sps:$4 sm:$0xff]  }
  0x54   :  { %2929 = vmatpush3.bf16.msra.mxu1 %v3255_v28  ;;  %v3315_v28 = vld [vmem:[%s4541_s0 + $0x29c] ss:$36 sps:$4 sm:$0xff]  }
  0x55   :  { %2930 = vmatprep.subr.bf16.mxu1 %v3269_v33  ;;  %v3323_v33 = vld [vmem:[%s4541_s0 + $0xac] ss:$36 sps:$4 sm:$0xff]  }
  0x58   :  { %2931 = vmatpush3.bf16.msra.mxu1 %v3270_v35  ;;  %v3326_v35 = vld [vmem:[%s4541_s0 + $0xa8] ss:$36 sps:$4 sm:$0xff]  }
  0x59   :  { %2932 = vmatprep.subr.bf16.mxu1 %v3284_v41  ;;  %v3336_v41 = vld [vmem:[%s4541_s0 + $0x13c] ss:$36 sps:$4 sm:$0xff]  }
  0x5a   :  { %1583 = vmatmul.mubr.bf16.gmra.mrb[28].mxu0 %v3212_v20  ;;  %1712 = vmatmul.mubr.bf16.gmra.mrb[28].mxu1 %v3213_v21  ;;  %v3302_v20 = vld [vmem:[%s4541_s0 + $0x444] ss:$36 sps:$4 sm:$0xff]   ;;  %v3304_v21 = vld [vmem:[%s4541_s0 + $0x20c] ss:$36 sps:$4 sm:$0xff]  }
  0x5b   :  { %1590 = vmatprep.mubr.bf16.mxu0 %v3214_v22  ;;  %1719 = vmatprep.mubr.bf16.mxu1 %v3216_v23  ;;  %v3306_v22 = vld [vmem:[%s4541_s0 + $0x440] ss:$36 sps:$4 sm:$0xff]   ;;  %v3307_v23 = vld [vmem:[%s4541_s0 + $0x208] ss:$36 sps:$4 sm:$0xff]  }
  0x5c   :  { %2933 = vmatpush3.bf16.msra.mxu1 %v3285_v42  ;;  %v3338_v42 = vld [vmem:[%s4541_s0 + $0x370] ss:$36 sps:$4 sm:$0xff]  }
  0x5d   :  { %2934 = vmatprep.subr.bf16.mxu1 %v3299_v47  ;;  %v3346_v47 = vld [vmem:[%s4541_s0 + $0x180] ss:$36 sps:$4 sm:$0xff]  }
  0x60   :  { %2935 = vmatpush3.bf16.msra.mxu1 %v3300_v48  ;;  %v3347_v48 = vld [vmem:[%s4541_s0 + $0x404] ss:$36 sps:$4 sm:$0xff]  }
  0x62   :  { %1591 = vmatmul.mubr.bf16.gmra.mrb[32].mxu0 %v3218_v27  ;;  %1720 = vmatmul.mubr.bf16.gmra.mrb[32].mxu1 %v3219_v30  ;;  %v3313_v27 = vld [vmem:[%s4541_s0 + $0x250] ss:$36 sps:$4 sm:$0xff]   ;;  %v3319_v30 = vld [vmem:[%s4541_s0 + $0x298] ss:$36 sps:$4 sm:$0xff]  }
  0x63   :  { %1598 = vmatprep.mubr.bf16.mxu0 %v3224_v31  ;;  %1727 = vmatprep.mubr.bf16.mxu1 %v3226_v32  ;;  %v3320_v31 = vld [vmem:[%s4541_s0 + $0x60] ss:$36 sps:$4 sm:$0xff]  }
  0x64   :  { %v3321_v32 = vld [vmem:[%s4541_s0 + $0x2e4] ss:$36 sps:$4 sm:$0xff]  }
  0x6a   :  { %1599 = vmatmul.mubr.bf16.gmra.mrb[36].mxu0 %v3228_v34  ;;  %1728 = vmatmul.mubr.bf16.gmra.mrb[36].mxu1 %v3229_v36  ;;  %v3325_v34 = vld [vmem:[%s4541_s0 + $0x2e0] ss:$36 sps:$4 sm:$0xff]   ;;  %v3328_v36 = vld [vmem:[%s4541_s0 + $0x32c] ss:$36 sps:$4 sm:$0xff]  }
  0x6b   :  { %1606 = vmatprep.mubr.bf16.mxu0 %v3232_v37  ;;  %1735 = vmatprep.mubr.bf16.mxu1 %v3234_v38  ;;  %v3330_v37 = vld [vmem:[%s4541_s0 + $0xf4] ss:$36 sps:$4 sm:$0xff]   ;;  %v3332_v38 = vld [vmem:[%s4541_s0 + $0x328] ss:$36 sps:$4 sm:$0xff]  }
  0x72   :  { %1607 = vmatmul.mubr.bf16.gmra.mrb[40].mxu0 %v3236_v39  ;;  %1736 = vmatmul.mubr.bf16.gmra.mrb[40].mxu1 %v3237_v40  ;;  %v3333_v39 = vld [vmem:[%s4541_s0 + $0xf0] ss:$36 sps:$4 sm:$0xff]  }
  0x73   :  { %1614 = vmatprep.mubr.bf16.mxu0 %v3240_v43  ;;  %1743 = vmatprep.mubr.bf16.mxu1 %v3242_v44  ;;  %v3334_v40 = vld [vmem:[%s4541_s0 + $0x374] ss:$36 sps:$4 sm:$0xff]   ;;  %v3341_v44 = vld [vmem:[%s4541_s0 + $0x3bc] ss:$36 sps:$4 sm:$0xff]  }
  0x74   :  { %v3339_v43 = vld [vmem:[%s4541_s0 + $0x138] ss:$36 sps:$4 sm:$0xff]  }
  0x7a   :  { %1615 = vmatmul.mubr.bf16.gmra.mrb[44].mxu0 %v3244_v45  ;;  %1744 = vmatmul.mubr.bf16.gmra.mrb[44].mxu1 %v3245_v46  ;;  %v3343_v45 = vld [vmem:[%s4541_s0 + $0x184] ss:$36 sps:$4 sm:$0xff]   ;;  %v3345_v46 = vld [vmem:[%s4541_s0 + $0x3b8] ss:$36 sps:$4 sm:$0xff]  }
  0x7b   :  { %1751 = vmatprep.mubr.bf16.mxu1 %v3248_v49  ;;  %1848 = vmatprep.mubr.bf16.mxu0 %v3252_v50  ;;  %v3349_v49 = vld [vmem:[%s4541_s0 + $0x1cc] ss:$36 sps:$4 sm:$0xff]   ;;  %v3351_v50 = vld [vmem:[%s4541_s0 + $0x400] ss:$36 sps:$4 sm:$0xff]  }
  0x82   :  { %1752 = vmatmul.mubr.bf16.gmra.mrb[48].mxu1 %v3253_v52  ;;  %1849 = vmatmul.mubr.bf16.vlgmr.msra.gmra.mrb[48].mxu0 %v3250_v51  ;;  %v3352_v51 = vld [vmem:[%s4541_s0 + $0x1c8] ss:$36 sps:$4 sm:$0xff]  }
  0x83   :  { %3057 = vmatpush3.bf16.msra.mxu0 %v3256_v29  ;;  %1759 = vmatprep.mubr.bf16.mxu1 %v3257_v53  ;;  %v3317_v29 = vld [vmem:[%s4541_s0 + $0x64] ss:$36 sps:$4 sm:$0xff]   ;;  %v3354_v52 = vld [vmem:[%s4541_s0 + $0x44c] ss:$36 sps:$4 sm:$0xff]   ;;  %v3356_v53 = vld [vmem:[%s4541_s0 + $0x214] ss:$36 sps:$4 sm:$0xff]  }
  0x84   :  { %1856 = vmatprep.mubr.bf16.mxu0 %v3259_v54  ;;  %3058 = vmatprep.subr.bf16.mxu0 %v3271_v55 }
  0x87   :  { %3059 = vmatpush3.bf16.msra.mxu0 %v3271_v55 }
  0x88   :  { %3060 = vmatprep.subr.bf16.mxu0 %v3286_v56 }
  0x8a   :  { %1760 = vmatmul.mubr.bf16.gmra.mrb[52].mxu1 %v3261_v57  ;;  %1857 = vmatmul.mubr.bf16.gmra.mrb[52].mxu0 %v3262_v58  ;;  %v3358_v58 = vld [vmem:[%s4541_s0 + $0x448] ss:$36 sps:$4 sm:$0xff]  }
  0x8b   :  { %1767 = vmatprep.mubr.bf16.mxu1 %v3263_v59  ;;  %1864 = vmatprep.mubr.bf16.mxu0 %v3265_v60  ;;  %v3359_v59 = vld [vmem:[%s4541_s0 + $0x210] ss:$36 sps:$4 sm:$0xff]  }
  0x8c   :  { %3061 = vmatpush3.bf16.msra.mxu0 %v3286_v56 }
  0x8d   :  { %3062 = vmatprep.subr.bf16.mxu0 %v3301_v61 }
  0x90   :  { %3063 = vmatpush3.bf16.msra.mxu0 %v3301_v61 }
  0x91   :  { %3064 = vmatprep.subr.bf16.mxu0 %v3314_v62 }
  0x92   :  { %1768 = vmatmul.mubr.bf16.gmra.mrb[56].mxu1 %v3267_v63  ;;  %1865 = vmatmul.mubr.bf16.gmra.mrb[56].mxu0 %v3268_v0  ;;  %v3360_v0 = vld [vmem:[%s4541_s0 + $0x25c] ss:$36 sps:$4 sm:$0xff]  }
  0x93   :  { %1775 = vmatprep.mubr.bf16.mxu1 %v3272_v1  ;;  %1872 = vmatprep.mubr.bf16.mxu0 %v3274_v2  ;;  %v3362_v1 = vld [vmem:[%s4541_s0 + $0x20] ss:$36 sps:$4 sm:$0xff]  }
  0x94   :  { %3065 = vmatpush3.bf16.msra.mxu0 %v3314_v62 }
  0x95   :  { %3066 = vmatprep.subr.bf16.mxu0 %v3327_v3 }
  0x98   :  { %3067 = vmatpush3.bf16.msra.mxu0 %v3327_v3 }
  0x99   :  { %3068 = vmatprep.subr.bf16.mxu0 %v3340_v6 }
  0x9a   :  { %1776 = vmatmul.mubr.bf16.gmra.mrb[60].mxu1 %v3276_v4  ;;  %1873 = vmatmul.mubr.bf16.gmra.mrb[60].mxu0 %v3277_v5 }
  0x9b   :  { %1783 = vmatprep.mubr.bf16.mxu1 %v3278_v7  ;;  %1880 = vmatprep.mubr.bf16.mxu0 %v3280_v8 }
  0x9c   :  { %3069 = vmatpush3.bf16.msra.mxu0 %v3340_v6 }
  0x9d   :  { %3070 = vmatprep.subr.bf16.mxu0 %v3353_v9 }
  0xa0   :  { %3071 = vmatpush3.bf16.msra.mxu0 %v3353_v9 }
  0xa2   :  { %1784 = vmatmul.mubr.bf16.gmra.mrb[64].mxu1 %v3282_v10  ;;  %1881 = vmatmul.mubr.bf16.gmra.mrb[64].mxu0 %v3283_v11  ;;  %v3363_v10 = vld [vmem:[%s4541_s0 + $0x258] ss:$36 sps:$4 sm:$0xff]   ;;  %v3364_v11 = vld [vmem:[%s4541_s0 + $0x68] ss:$36 sps:$4 sm:$0xff]  }
  0xa3   :  { %1791 = vmatprep.mubr.bf16.mxu1 %v3287_v12  ;;  %1888 = vmatprep.mubr.bf16.mxu0 %v3289_v13 }
  0xaa   :  { %1792 = vmatmul.mubr.bf16.gmra.mrb[68].mxu1 %v3291_v14  ;;  %1889 = vmatmul.mubr.bf16.gmra.mrb[68].mxu0 %v3292_v15 }
  0xab   :  { %1799 = vmatprep.mubr.bf16.mxu1 %v3293_v16  ;;  %1896 = vmatprep.mubr.bf16.mxu0 %v3295_v17  ;;  %v3365_v16 = vld [vmem:[%s4541_s0 + $0x2a4] ss:$36 sps:$4 sm:$0xff]   ;;  %v3367_v17 = vld [vmem:[%s4541_s0 + $0xb0] ss:$36 sps:$4 sm:$0xff]  }
  0xb2   :  { %1800 = vmatmul.mubr.bf16.gmra.mrb[72].mxu1 %v3297_v18  ;;  %1897 = vmatmul.mubr.bf16.gmra.mrb[72].mxu0 %v3298_v19 }
  0xb3   :  { %1807 = vmatprep.mubr.bf16.mxu1 %v3302_v20  ;;  %1904 = vmatprep.mubr.bf16.mxu0 %v3304_v21 }
  0xba   :  { %1808 = vmatmul.mubr.bf16.gmra.mrb[76].mxu1 %v3306_v22  ;;  %1905 = vmatmul.mubr.bf16.gmra.mrb[76].mxu0 %v3307_v23 }
  0xbb   :  { %1912 = vmatprep.mubr.bf16.mxu0 %v3308_v24  ;;  %2009 = vmatprep.mubr.bf16.mxu1 %v3312_v25 }
  0xc2   :  { %1913 = vmatmul.mubr.bf16.gmra.mrb[80].mxu0 %v3313_v27  ;;  %2010 = vmatmul.mubr.bf16.vlgmr.msra.gmra.mrb[80].mxu1 %v3310_v26  ;;  %v3368_v26 = vld [vmem:[%s4541_s0 + $0x2a0] ss:$36 sps:$4 sm:$0xff]   ;;  %v3369_v27 = vld [vmem:[%s4541_s0 + $0xf8] ss:$36 sps:$4 sm:$0xff]  }
  0xc3   :  { %1920 = vmatprep.mubr.bf16.mxu0 %v3315_v28  ;;  %2017 = vmatprep.mubr.bf16.mxu1 %v3317_v29 }
  0xca   :  { %1921 = vmatmul.mubr.bf16.gmra.mrb[84].mxu0 %v3319_v30  ;;  %2018 = vmatmul.mubr.bf16.gmra.mrb[84].mxu1 %v3320_v31 }
  0xcb   :  { %1928 = vmatprep.mubr.bf16.mxu0 %v3321_v32  ;;  %2025 = vmatprep.mubr.bf16.mxu1 %v3323_v33  ;;  %v3370_v32 = vld [vmem:[%s4541_s0 + $0x2ec] ss:$36 sps:$4 sm:$0xff]   ;;  %v3372_v33 = vld [vmem:[%s4541_s0 + $0x140] ss:$36 sps:$4 sm:$0xff]  }
  0xd2   :  { %1929 = vmatmul.mubr.bf16.gmra.mrb[88].mxu0 %v3325_v34  ;;  %2026 = vmatmul.mubr.bf16.gmra.mrb[88].mxu1 %v3326_v35 }
  0xd3   :  { %1936 = vmatprep.mubr.bf16.mxu0 %v3328_v36  ;;  %2033 = vmatprep.mubr.bf16.mxu1 %v3330_v37 }
  0xda   :  { %1937 = vmatmul.mubr.bf16.gmra.mrb[92].mxu0 %v3332_v38  ;;  %2034 = vmatmul.mubr.bf16.gmra.mrb[92].mxu1 %v3333_v39 }
  0xdb   :  { %1944 = vmatprep.mubr.bf16.mxu0 %v3334_v40  ;;  %2041 = vmatprep.mubr.bf16.mxu1 %v3336_v41 }
  0xe2   :  { %1945 = vmatmul.mubr.bf16.gmra.mrb[96].mxu0 %v3338_v42  ;;  %2042 = vmatmul.mubr.bf16.gmra.mrb[96].mxu1 %v3339_v43  ;;  %v3373_v42 = vld [vmem:[%s4541_s0 + $0x2e8] ss:$36 sps:$4 sm:$0xff]  }
  0xe3   :  { %1952 = vmatprep.mubr.bf16.mxu0 %v3341_v44  ;;  %2049 = vmatprep.mubr.bf16.mxu1 %v3343_v45  ;;  %v3374_v43 = vld [vmem:[%s4541_s0 + $0x188] ss:$36 sps:$4 sm:$0xff]  }
  0xea   :  { %1953 = vmatmul.mubr.bf16.gmra.mrb[100].mxu0 %v3345_v46  ;;  %2050 = vmatmul.mubr.bf16.gmra.mrb[100].mxu1 %v3346_v47 }
  0xeb   :  { %1960 = vmatprep.mubr.bf16.mxu0 %v3347_v48  ;;  %2057 = vmatprep.mubr.bf16.mxu1 %v3349_v49  ;;  %v3375_v48 = vld [vmem:[%s4541_s0 + $0x334] ss:$36 sps:$4 sm:$0xff]  }
  0xec   :  { %v3377_v49 = vld [vmem:[%s4541_s0 + $0x1d0] ss:$36 sps:$4 sm:$0xff]  }
  0xf2   :  { %1961 = vmatmul.mubr.bf16.gmra.mrb[104].mxu0 %v3351_v50  ;;  %2058 = vmatmul.mubr.bf16.gmra.mrb[104].mxu1 %v3352_v51 }
  0xf3   :  { %1968 = vmatprep.mubr.bf16.mxu0 %v3354_v52  ;;  %2065 = vmatprep.mubr.bf16.mxu1 %v3356_v53 }
  0xf5   :  { %v2672_v54 = vpop.f32.mrb[0].mxu1  ;;  %v2600_v55 = vpop.f32.mrb[0].mxu0 }
  0xf6   :  { %v2673_v56 = vpop.f32.mrb[1].mxu1  ;;  %v2601_v57 = vpop.f32.mrb[1].mxu0 }
  0xf7   :  { %v3972_v60 = vadd.f32 %v2673_v56, %v2672_v54  ;;  %v2675_v61 = vpop.f32.mrb[2].mxu1  ;;  %v3974_v62 = vadd.f32 %v2601_v57, %v2600_v55  ;;  %v2603_v63 = vpop.f32.mrb[2].mxu0  ;;  %v4049_v54 = vld [vmem:[%s4542_s2] ss:$0 sm:$0xff] }
  0xf8   :  { %v2676_v2 = vpop.f32.mrb[3].mxu1  ;;  %v2604_v3 = vpop.f32.mrb[3].mxu0 }
  0xf9   :  { %v3982_v4 = vadd.f32 %v2676_v2, %v2675_v61  ;;  %v3984_v5 = vadd.f32 %v2604_v3, %v2603_v63  ;;  %v3379_v61 = vld [vmem:[%s4541_s0 + $0x218] ss:$36 sps:$4 sm:$0xff]   ;;  %v1529_v63 = vadd.f32 %v3974_v62, %v4049_v54 }
  0xfa   :  { %1969 = vmatmul.mubr.bf16.gmra.mrb[108].mxu0 %v3358_v58  ;;  %2066 = vmatmul.mubr.bf16.gmra.mrb[108].mxu1 %v3359_v59  ;;  %v3378_v59 = vld [vmem:[%s4541_s0 + $0x330] ss:$36 sps:$4 sm:$0xff]  }
  0xfb   :  { %2073 = vmatprep.mubr.bf16.mxu1 %v3360_v0  ;;  %3072 = vmatprep.mubr.bf16.mxu0 %v3362_v1 }
  0xfd   :  { %v2678_v6 = vpop.f32.mrb[4].mxu1  ;;  %v2606_v7 = vpop.f32.mrb[4].mxu0 }
  0xfe   :  { %v2679_v8 = vpop.f32.mrb[5].mxu1  ;;  %v2607_v9 = vpop.f32.mrb[5].mxu0 }
  0xff   :  { %v3992_v12 = vadd.f32 %v2679_v8, %v2678_v6  ;;  %v2681_v13 = vpop.f32.mrb[6].mxu1  ;;  %v3994_v14 = vadd.f32 %v2607_v9, %v2606_v7  ;;  %v2609_v15 = vpop.f32.mrb[6].mxu0  ;;  %v3380_v6 = vld [vmem:[%s4541_s0 + $0x37c] ss:$36 sps:$4 sm:$0xff]  }
 0x100   :  { %v2682_v18 = vpop.f32.mrb[7].mxu1  ;;  %v2610_v19 = vpop.f32.mrb[7].mxu0  ;;  %v3382_v7 = vld [vmem:[%s4541_s0 + $0x260] ss:$36 sps:$4 sm:$0xff]  }
 0x101   :  { %v4002_v20 = vadd.f32 %v2682_v18, %v2681_v13  ;;  %v4004_v21 = vadd.f32 %v2610_v19, %v2609_v15 }
 0x102   :  { %2074 = vmatmul.mubr.bf16.gmra.mrb[112].mxu1 %v3363_v10  ;;  %3073 = vmatmul.mubr.bf16.vlgmr.msra.gmra.mrb[112].mxu0 %v3364_v11  ;;  %v1532_v10 = vadd.f32 %v3984_v5, %v4049_v54  ;;  %v3384_v5 = vld [vmem:[%s4541_s0 + $0x2a8] ss:$36 sps:$4 sm:$0xff]  }
 0x103   :  { %2081 = vmatprep.mubr.bf16.mxu1 %v3365_v16  ;;  %3076 = vmatprep.mubr.bf16.mxu0 %v3367_v17 }
 0x105   :  { %v2684_v22 = vpop.f32.mrb[8].mxu1  ;;  %v2612_v23 = vpop.f32.mrb[8].mxu0 }
 0x106   :  { %v2685_v24 = vpop.f32.mrb[9].mxu1  ;;  %v2613_v25 = vpop.f32.mrb[9].mxu0 }
 0x107   :  { %v4012_v28 = vadd.f32 %v2685_v24, %v2684_v22  ;;  %v2687_v29 = vpop.f32.mrb[10].mxu1  ;;  %v4014_v30 = vadd.f32 %v2613_v25, %v2612_v23  ;;  %v2615_v31 = vpop.f32.mrb[10].mxu0  ;;  %v3383_v22 = vld [vmem:[%s4541_s0 + $0x378] ss:$36 sps:$4 sm:$0xff]   ;;  %v1537_v23 = vadd.f32 %v3994_v14, %v4049_v54 }
 0x108   :  { %v2688_v34 = vpop.f32.mrb[11].mxu1  ;;  %v2616_v35 = vpop.f32.mrb[11].mxu0 }
 0x109   :  { %v4022_v36 = vadd.f32 %v2688_v34, %v2687_v29  ;;  %v4024_v37 = vadd.f32 %v2616_v35, %v2615_v31  ;;  %v3385_v29 = vld [vmem:[%s4541_s0 + $0x3c4] ss:$36 sps:$4 sm:$0xff]   ;;  %v3387_v31 = vld [vmem:[%s4541_s0 + $0x2f0] ss:$36 sps:$4 sm:$0xff]   ;;  %v1540_v34 = vadd.f32 %v4004_v21, %v4049_v54  ;;  %v3389_v21 = vld [vmem:[%s4541_s0 + $0x338] ss:$36 sps:$4 sm:$0xff]  }
 0x10a   :  { %2082 = vmatmul.mubr.bf16.gmra.mrb[116].mxu1 %v3368_v26  ;;  %3077 = vmatmul.mubr.bf16.gmra.mrb[116].mxu0 %v3369_v27 }
 0x10b   :  { %2089 = vmatprep.mubr.bf16.mxu1 %v3370_v32  ;;  %3080 = vmatprep.mubr.bf16.mxu0 %v3372_v33 }
 0x10d   :  { %v2690_v38 = vpop.f32.mrb[12].mxu1  ;;  %v2618_v39 = vpop.f32.mrb[12].mxu0 }
 0x10e   :  { %v2691_v40 = vpop.f32.mrb[13].mxu1  ;;  %v2619_v41 = vpop.f32.mrb[13].mxu0 }
 0x10f   :  { %v4032_v44 = vadd.f32 %v2691_v40, %v2690_v38  ;;  %v2693_v45 = vpop.f32.mrb[14].mxu1  ;;  %v4034_v46 = vadd.f32 %v2619_v41, %v2618_v39  ;;  %v2621_v47 = vpop.f32.mrb[14].mxu0 }
 0x110   :  { %v2694_v50 = vpop.f32.mrb[15].mxu1  ;;  %v2622_v51 = vpop.f32.mrb[15].mxu0 }
 0x111   :  { %v4042_v52 = vadd.f32 %v2694_v50, %v2693_v45  ;;  %v4044_v53 = vadd.f32 %v2622_v51, %v2621_v47  ;;  %v3388_v45 = vld [vmem:[%s4541_s0 + $0x3c0] ss:$36 sps:$4 sm:$0xff]   ;;  %v1545_v47 = vadd.f32 %v4014_v30, %v4049_v54 }
 0x112   :  { %2090 = vmatmul.mubr.bf16.gmra.mrb[120].mxu1 %v3373_v42  ;;  %3081 = vmatmul.mubr.bf16.gmra.mrb[120].mxu0 %v3374_v43 }
 0x113   :  { %2097 = vmatprep.mubr.bf16.mxu1 %v3375_v48  ;;  %3084 = vmatprep.mubr.bf16.mxu0 %v3377_v49 }
 0x115   :  { %v2712_v55 = vpop.f32.mrb[16].mxu1  ;;  %v2624_v56 = vpop.f32.mrb[16].mxu0 }
 0x116   :  { %v2713_v57 = vpop.f32.mrb[17].mxu1  ;;  %v2625_v58 = vpop.f32.mrb[17].mxu0 }
 0x117   :  { %v2714_v0 = vadd.f32 %v2713_v57, %v2712_v55  ;;  %v2715_v1 = vpop.f32.mrb[18].mxu1  ;;  %v4059_v2 = vadd.f32 %v2625_v58, %v2624_v56  ;;  %v2627_v3 = vpop.f32.mrb[18].mxu0  ;;  %v3390_v55 = vld [vmem:[%s4541_s0 + $0x40c] ss:$36 sps:$4 sm:$0xff]   ;;  %v3392_v56 = vld [vmem:[%s4541_s0 + $0x380] ss:$36 sps:$4 sm:$0xff]  }
 0x118   :  { %v2716_v8 = vpop.f32.mrb[19].mxu1  ;;  %v2628_v9 = vpop.f32.mrb[19].mxu0 }
 0x119   :  { %v4069_v11 = vadd.f32 %v2714_v0, %v1529_v63  ;;  %v2717_v62 = vadd.f32 %v2716_v8, %v2715_v1  ;;  %v4071_v13 = vadd.f32 %v2628_v9, %v2627_v3  ;;  %v3393_v8 = vld [vmem:[%s4541_s0 + $0x408] ss:$36 sps:$4 sm:$0xff]   ;;  %v1553_v9 = vadd.f32 %v4034_v46, %v4049_v54 }
 0x11a   :  { %2098 = vmatmul.mubr.bf16.gmra.mrb[124].mxu1 %v3378_v59  ;;  %3085 = vmatmul.mubr.bf16.gmra.mrb[124].mxu0 %v3379_v61  ;;  %v1548_v59 = vadd.f32 %v4024_v37, %v4049_v54  ;;  %v3394_v37 = vld [vmem:[%s4541_s0 + $0x3c8] ss:$36 sps:$4 sm:$0xff]  }
 0x11b   :  { %v4073_v15 = vadd.f32 %v2717_v62, %v1532_v10  ;;  %2105 = vmatprep.mubr.bf16.mxu1 %v3380_v6  ;;  %3088 = vmatprep.mubr.bf16.mxu0 %v3382_v7 }
 0x11d   :  { %v2718_v16 = vpop.f32.mrb[20].mxu1  ;;  %v2630_v17 = vpop.f32.mrb[20].mxu0 }
 0x11e   :  { %v2719_v18 = vpop.f32.mrb[21].mxu1  ;;  %v2631_v19 = vpop.f32.mrb[21].mxu0 }
 0x11f   :  { %v2720_v24 = vadd.f32 %v2719_v18, %v2718_v16  ;;  %v2721_v25 = vpop.f32.mrb[22].mxu1  ;;  %v4083_v26 = vadd.f32 %v2631_v19, %v2630_v17  ;;  %v2633_v27 = vpop.f32.mrb[22].mxu0  ;;  %v3395_v18 = vld [vmem:[%s4541_s0 + $0x454] ss:$36 sps:$4 sm:$0xff]  }
 0x120   :  { %v2722_v32 = vpop.f32.mrb[23].mxu1  ;;  %v2634_v33 = vpop.f32.mrb[23].mxu0  ;;  %v3397_v19 = vld [vmem:[%s4541_s0 + $0x410] ss:$36 sps:$4 sm:$0xff]  }
 0x121   :  { %v4093_v35 = vadd.f32 %v2720_v24, %v1537_v23  ;;  %v2723_v14 = vadd.f32 %v2722_v32, %v2721_v25  ;;  %v4095_v38 = vadd.f32 %v2634_v33, %v2633_v27  ;;  %v1556_v23 = vadd.f32 %v4044_v53, %v4049_v54  ;;  %v3399_v53 = vld [vmem:[%s4541_s0 + $0x458] ss:$36 sps:$4 sm:$0xff]  }
 0x122   :  { %2106 = vmatmul.mubr.bf16.gmra.mrb[128].mxu1 %v3383_v22  ;;  %3089 = vmatmul.mubr.bf16.gmra.mrb[128].mxu0 %v3384_v5 }
 0x123   :  { %v4097_v39 = vadd.f32 %v2723_v14, %v1540_v34  ;;  %2113 = vmatprep.mubr.bf16.mxu1 %v3385_v29  ;;  %3092 = vmatprep.mubr.bf16.mxu0 %v3387_v31  ;;  %v3398_v34 = vld [vmem:[%s4541_s0 + $0x450] ss:$36 sps:$4 sm:$0xff]   ;;  %v1561_v14 = vadd.f32 %v4059_v2, %v4049_v54 }
 0x125   :  { %v2724_v40 = vpop.f32.mrb[24].mxu1  ;;  %v2636_v41 = vpop.f32.mrb[24].mxu0 }
 0x126   :  { %v2725_v42 = vpop.f32.mrb[25].mxu1  ;;  %v2637_v43 = vpop.f32.mrb[25].mxu0 }
 0x127   :  { %v2726_v48 = vadd.f32 %v2725_v42, %v2724_v40  ;;  %v2727_v49 = vpop.f32.mrb[26].mxu1  ;;  %v4107_v50 = vadd.f32 %v2637_v43, %v2636_v41  ;;  %v2639_v51 = vpop.f32.mrb[26].mxu0 }
 0x128   :  { %v2728_v57 = vpop.f32.mrb[27].mxu1  ;;  %v2640_v58 = vpop.f32.mrb[27].mxu0 }
 0x129   :  { %v4117_v61 = vadd.f32 %v2726_v48, %v1545_v47  ;;  %v2729_v30 = vadd.f32 %v2728_v57, %v2727_v49  ;;  %v4119_v63 = vadd.f32 %v2640_v58, %v2639_v51  ;;  %v1564_v47 = vadd.f32 %v4071_v13, %v4049_v54 }
 0x12a   :  { %2114 = vmatmul.mubr.bf16.gmra.mrb[132].mxu1 %v3388_v45  ;;  %3093 = vmatmul.mubr.bf16.gmra.mrb[132].mxu0 %v3389_v21 }
 0x12b   :  { %v4121_v0 = vadd.f32 %v2729_v30, %v1548_v59  ;;  %2121 = vmatprep.mubr.bf16.mxu1 %v3390_v55  ;;  %3096 = vmatprep.mubr.bf16.mxu0 %v3392_v56  ;;  %v1569_v59 = vadd.f32 %v4083_v26, %v4049_v54 }
 0x12d   :  { %v2730_v1 = vpop.f32.mrb[28].mxu1  ;;  %v2642_v3 = vpop.f32.mrb[28].mxu0 }
 0x12e   :  { %v2731_v6 = vpop.f32.mrb[29].mxu1  ;;  %v2643_v7 = vpop.f32.mrb[29].mxu0 }
 0x12f   :  { %v2732_v10 = vadd.f32 %v2731_v6, %v2730_v1  ;;  %v2733_v62 = vpop.f32.mrb[30].mxu1  ;;  %v4131_v16 = vadd.f32 %v2643_v7, %v2642_v3  ;;  %v2645_v17 = vpop.f32.mrb[30].mxu0 }
 0x130   :  { %v2734_v22 = vpop.f32.mrb[31].mxu1  ;;  %v2646_v5 = vpop.f32.mrb[31].mxu0 }
 0x131   :  { %v4141_v24 = vadd.f32 %v2732_v10, %v1553_v9  ;;  %v2735_v46 = vadd.f32 %v2734_v22, %v2733_v62  ;;  %v4143_v25 = vadd.f32 %v2646_v5, %v2645_v17  ;;  %v1577_v22 = vadd.f32 %v4107_v50, %v4049_v54 }
 0x132   :  { %2122 = vmatmul.mubr.bf16.gmra.mrb[136].mxu1 %v3393_v8  ;;  %3097 = vmatmul.mubr.bf16.gmra.mrb[136].mxu0 %v3394_v37  ;;  %v1572_v8 = vadd.f32 %v4095_v38, %v4049_v54 }
 0x133   :  { %v4145_v27 = vadd.f32 %v2735_v46, %v1556_v23  ;;  %2129 = vmatprep.mubr.bf16.mxu1 %v3395_v18  ;;  %3100 = vmatprep.mubr.bf16.mxu0 %v3397_v19 }
 0x135   :  { %v2736_v29 = vpop.f32.mrb[32].mxu1  ;;  %v2648_v31 = vpop.f32.mrb[32].mxu0 }
 0x136   :  { %v2737_v32 = vpop.f32.mrb[33].mxu1  ;;  %v2649_v33 = vpop.f32.mrb[33].mxu0 }
 0x137   :  { %v2738_v40 = vadd.f32 %v2737_v32, %v2736_v29  ;;  %v2739_v41 = vpop.f32.mrb[34].mxu1  ;;  %v4155_v42 = vadd.f32 %v2649_v33, %v2648_v31  ;;  %v2651_v43 = vpop.f32.mrb[34].mxu0  ;;  %v1580_v32 = vadd.f32 %v4119_v63, %v4049_v54 }
 0x138   :  { %v2740_v45 = vpop.f32.mrb[35].mxu1  ;;  %v2652_v21 = vpop.f32.mrb[35].mxu0 }
 0x139   :  { %v4159_v48 = vadd.f32 %v2738_v40, %v1561_v14  ;;  %v2741_v49 = vadd.f32 %v2740_v45, %v2739_v41  ;;  %v2653_v51 = vadd.f32 %v2652_v21, %v2651_v43  ;;  %v1585_v45 = vadd.f32 %v4131_v16, %v4049_v54 }
 0x13a   :  { %2130 = vmatmul.mubr.bf16.gmra.mrb[140].mxu1 %v3398_v34  ;;  %3101 = vmatmul.mubr.bf16.gmra.mrb[140].mxu0 %v3399_v53 }
 0x13b   :  { %v4161_v55 = vadd.f32 %v2741_v49, %v1564_v47 }
 0x13d   :  { %v2742_v56 = vpop.f32.mrb[36].mxu1  ;;  %v2654_v2 = vpop.f32.mrb[36].mxu0 }
 0x13e   :  { %v2743_v57 = vpop.f32.mrb[37].mxu1  ;;  %v2655_v58 = vpop.f32.mrb[37].mxu0 }
 0x13f   :  { %v2744_v30 = vadd.f32 %v2743_v57, %v2742_v56  ;;  %v2745_v1 = vpop.f32.mrb[38].mxu1  ;;  %v4165_v3 = vadd.f32 %v2655_v58, %v2654_v2  ;;  %v2657_v13 = vpop.f32.mrb[38].mxu0  ;;  %v1588_v57 = vadd.f32 %v4143_v25, %v4049_v54  ;;  %v1596_v25 = vadd.f32 %v2653_v51, %v4049_v54 }
 0x140   :  { %v2746_v6 = vpop.f32.mrb[39].mxu1  ;;  %v2658_v7 = vpop.f32.mrb[39].mxu0 }
 0x141   :  { %v4169_v37 = vadd.f32 %v2744_v30, %v1569_v59  ;;  %v2747_v9 = vadd.f32 %v2746_v6, %v2745_v1  ;;  %v2659_v10 = vadd.f32 %v2658_v7, %v2657_v13  ;;  %v1601_v51 = vadd.f32 %v4165_v3, %v4049_v54 }
 0x143   :  { %v4171_v62 = vadd.f32 %v2747_v9, %v1572_v8  ;;  %v1593_v8 = vadd.f32 %v4155_v42, %v4049_v54 }
 0x145   :  { %v2748_v17 = vpop.f32.mrb[40].mxu1  ;;  %v2660_v18 = vpop.f32.mrb[40].mxu0 }
 0x146   :  { %v2749_v19 = vpop.f32.mrb[41].mxu1  ;;  %v2661_v26 = vpop.f32.mrb[41].mxu0 }
 0x147   :  { %v2750_v5 = vadd.f32 %v2749_v19, %v2748_v17  ;;  %v2751_v23 = vpop.f32.mrb[42].mxu1  ;;  %v4175_v46 = vadd.f32 %v2661_v26, %v2660_v18  ;;  %v2663_v29 = vpop.f32.mrb[42].mxu0 }
 0x148   :  { %v2752_v31 = vpop.f32.mrb[43].mxu1  ;;  %v2664_v38 = vpop.f32.mrb[43].mxu0 }
 0x149   :  { %v4179_v33 = vadd.f32 %v2750_v5, %v1577_v22  ;;  %v2753_v34 = vadd.f32 %v2752_v31, %v2751_v23  ;;  %v4181_v53 = vadd.f32 %v2664_v38, %v2663_v29 }
 0x14b   :  { %v4183_v14 = vadd.f32 %v2753_v34, %v1580_v32 }
 0x14d   :  { %v2754_v40 = vpop.f32.mrb[44].mxu1  ;;  %v2666_v41 = vpop.f32.mrb[44].mxu0 }
 0x14e   :  { %v2755_v50 = vpop.f32.mrb[45].mxu1  ;;  %v2667_v43 = vpop.f32.mrb[45].mxu0 }
 0x14f   :  { %v2756_v21 = vadd.f32 %v2755_v50, %v2754_v40  ;;  %v2757_v47 = vpop.f32.mrb[46].mxu1  ;;  %v4187_v49 = vadd.f32 %v2667_v43, %v2666_v41  ;;  %v2669_v56 = vpop.f32.mrb[46].mxu0 }
 0x150   :  { %v2758_v63 = vpop.f32.mrb[47].mxu1  ;;  %v2670_v2 = vpop.f32.mrb[47].mxu0 }
 0x151   :  { %v4191_v58 = vadd.f32 %v2756_v21, %v1585_v45  ;;  %v2759_v59 = vadd.f32 %v2758_v63, %v2757_v47  ;;  %v4193_v30 = vadd.f32 %v2670_v2, %v2669_v56 }
 0x153   :  { %v4195_v1 = vadd.f32 %v2759_v59, %v1588_v57 }
 0x155   :  { %v2760_v13 = vpop.f32.mrb[48].mxu1  ;;  %v2824_v6 = vpop.f32.mrb[48].mxu0 }
 0x156   :  { %v2761_v16 = vpop.f32.mrb[49].mxu1  ;;  %v2825_v7 = vpop.f32.mrb[49].mxu0 }
 0x157   :  { %v2762_v9 = vadd.f32 %v2761_v16, %v2760_v13  ;;  %v2826_v17 = vadd.f32 %v2825_v7, %v2824_v6  ;;  %v2763_v18 = vpop.f32.mrb[50].mxu1  ;;  %v2827_v19 = vpop.f32.mrb[50].mxu0 }
 0x158   :  { %v2764_v26 = vpop.f32.mrb[51].mxu1  ;;  %v2828_v22 = vpop.f32.mrb[51].mxu0 }
 0x159   :  { %v4200_v5 = vadd.f32 %v2762_v9, %v1593_v8  ;;  %v4203_v23 = vadd.f32 %v2826_v17, %v4069_v11  ;;  %v2765_v29 = vadd.f32 %v2764_v26, %v2763_v18  ;;  %v2829_v31 = vadd.f32 %v2828_v22, %v2827_v19 }
 0x15a   :  { %v1604_v11 = vadd.f32 %v2659_v10, %v4049_v54  ;;  %v1609_v10 = vadd.f32 %v4175_v46, %v4049_v54 }
 0x15b   :  { %v4205_v38 = vadd.f32 %v2765_v29, %v1596_v25  ;;  %v4208_v32 = vadd.f32 %v2829_v31, %v4073_v15 }
 0x15d   :  { %v2766_v42 = vpop.f32.mrb[52].mxu1  ;;  %v2830_v34 = vpop.f32.mrb[52].mxu0 }
 0x15e   :  { %v2767_v40 = vpop.f32.mrb[53].mxu1  ;;  %v2831_v41 = vpop.f32.mrb[53].mxu0 }
 0x15f   :  { %v2768_v50 = vadd.f32 %v2767_v40, %v2766_v42  ;;  %v2832_v43 = vadd.f32 %v2831_v41, %v2830_v34  ;;  %v2769_v45 = vpop.f32.mrb[54].mxu1  ;;  %v2833_v21 = vpop.f32.mrb[54].mxu0 }
 0x160   :  { %v2770_v47 = vpop.f32.mrb[55].mxu1  ;;  %v2834_v56 = vpop.f32.mrb[55].mxu0 }
 0x161   :  { %v4213_v63 = vadd.f32 %v2768_v50, %v1601_v51  ;;  %v4216_v15 = vadd.f32 %v2832_v43, %v4093_v35  ;;  %v2771_v2 = vadd.f32 %v2770_v47, %v2769_v45  ;;  %v2835_v57 = vadd.f32 %v2834_v56, %v2833_v21 }
 0x162   :  { %v1612_v35 = vadd.f32 %v4181_v53, %v4049_v54  ;;  %v1617_v53 = vadd.f32 %v4187_v49, %v4049_v54 }
 0x163   :  { %v4218_v59 = vadd.f32 %v2771_v2, %v1604_v11  ;;  %v4221_v13 = vadd.f32 %v2835_v57, %v4097_v39 }
 0x165   :  { %v2772_v3 = vpop.f32.mrb[56].mxu1  ;;  %v2836_v6 = vpop.f32.mrb[56].mxu0 }
 0x166   :  { %v2773_v16 = vpop.f32.mrb[57].mxu1  ;;  %v2837_v7 = vpop.f32.mrb[57].mxu0 }
 0x167   :  { %v2774_v8 = vadd.f32 %v2773_v16, %v2772_v3  ;;  %v2838_v9 = vadd.f32 %v2837_v7, %v2836_v6  ;;  %v2775_v17 = vpop.f32.mrb[58].mxu1  ;;  %v2839_v18 = vpop.f32.mrb[58].mxu0 }
 0x168   :  { %v2776_v19 = vpop.f32.mrb[59].mxu1  ;;  %v2840_v25 = vpop.f32.mrb[59].mxu0 }
 0x169   :  { %v4227_v26 = vadd.f32 %v2774_v8, %v1609_v10  ;;  %v4230_v39 = vadd.f32 %v2838_v9, %v4117_v61  ;;  %v2777_v22 = vadd.f32 %v2776_v19, %v2775_v17  ;;  %v2841_v29 = vadd.f32 %v2840_v25, %v2839_v18 }
 0x16a   :  { %v1620_v61 = vadd.f32 %v4193_v30, %v4049_v54  ;;  %v1625_v30 = vadd.f32 %v3972_v60, %v4049_v54 }
 0x16b   :  { %v4232_v31 = vadd.f32 %v2777_v22, %v1612_v35  ;;  %v4235_v46 = vadd.f32 %v2841_v29, %v4121_v0 }
 0x16d   :  { %v2778_v42 = vpop.f32.mrb[60].mxu1  ;;  %v2842_v34 = vpop.f32.mrb[60].mxu0 }
 0x16e   :  { %v2779_v40 = vpop.f32.mrb[61].mxu1  ;;  %v2843_v41 = vpop.f32.mrb[61].mxu0 }
 0x16f   :  { %v2780_v51 = vadd.f32 %v2779_v40, %v2778_v42  ;;  %v2844_v50 = vadd.f32 %v2843_v41, %v2842_v34  ;;  %v2781_v43 = vpop.f32.mrb[62].mxu1  ;;  %v2845_v45 = vpop.f32.mrb[62].mxu0 }
 0x170   :  { %v2782_v21 = vpop.f32.mrb[63].mxu1  ;;  %v2846_v11 = vpop.f32.mrb[63].mxu0 }
 0x171   :  { %v4241_v47 = vadd.f32 %v2780_v51, %v1617_v53  ;;  %v4244_v0 = vadd.f32 %v2844_v50, %v4141_v24  ;;  %v2783_v56 = vadd.f32 %v2782_v21, %v2781_v43  ;;  %v2847_v2 = vadd.f32 %v2846_v11, %v2845_v45 }
 0x172   :  { %v1628_v24 = vadd.f32 %v3982_v4, %v4049_v54  ;;  %v1633_v4 = vadd.f32 %v3992_v12, %v4049_v54 }
 0x173   :  { %v4246_v57 = vadd.f32 %v2783_v56, %v1620_v61  ;;  %v4249_v49 = vadd.f32 %v2847_v2, %v4145_v27 }
 0x175   :  { %v2784_v3 = vpop.f32.mrb[64].mxu1  ;;  %v2848_v6 = vpop.f32.mrb[64].mxu0 }
 0x176   :  { %v2785_v16 = vpop.f32.mrb[65].mxu1  ;;  %v2849_v7 = vpop.f32.mrb[65].mxu0 }
 0x177   :  { %v2786_v10 = vadd.f32 %v2785_v16, %v2784_v3  ;;  %v2850_v8 = vadd.f32 %v2849_v7, %v2848_v6  ;;  %v2787_v9 = vpop.f32.mrb[66].mxu1  ;;  %v2851_v17 = vpop.f32.mrb[66].mxu0 }
 0x178   :  { %v2788_v18 = vpop.f32.mrb[67].mxu1  ;;  %v2852_v35 = vpop.f32.mrb[67].mxu0 }
 0x179   :  { %v4255_v19 = vadd.f32 %v2786_v10, %v1625_v30  ;;  %v4258_v27 = vadd.f32 %v2850_v8, %v4159_v48  ;;  %v2789_v25 = vadd.f32 %v2788_v18, %v2787_v9  ;;  %v2853_v22 = vadd.f32 %v2852_v35, %v2851_v17 }
 0x17a   :  { %v1636_v48 = vadd.f32 %v4002_v20, %v4049_v54  ;;  %v1641_v20 = vadd.f32 %v4012_v28, %v4049_v54 }
 0x17b   :  { %v4260_v29 = vadd.f32 %v2789_v25, %v1628_v24  ;;  %v4263_v60 = vadd.f32 %v2853_v22, %v4161_v55 }
 0x17d   :  { %v2790_v42 = vpop.f32.mrb[68].mxu1  ;;  %v2854_v34 = vpop.f32.mrb[68].mxu0 }
 0x17e   :  { %v2791_v40 = vpop.f32.mrb[69].mxu1  ;;  %v2855_v41 = vpop.f32.mrb[69].mxu0 }
 0x17f   :  { %v2792_v53 = vadd.f32 %v2791_v40, %v2790_v42  ;;  %v2856_v51 = vadd.f32 %v2855_v41, %v2854_v34  ;;  %v2793_v50 = vpop.f32.mrb[70].mxu1  ;;  %v2857_v43 = vpop.f32.mrb[70].mxu0 }
 0x180   :  { %v2794_v45 = vpop.f32.mrb[71].mxu1  ;;  %v2858_v61 = vpop.f32.mrb[71].mxu0 }
 0x181   :  { %v4269_v21 = vadd.f32 %v2792_v53, %v1633_v4  ;;  %v4272_v55 = vadd.f32 %v2856_v51, %v4169_v37  ;;  %v2795_v11 = vadd.f32 %v2794_v45, %v2793_v50  ;;  %v2859_v56 = vadd.f32 %v2858_v61, %v2857_v43 }
 0x182   :  { %v1644_v37 = vadd.f32 %v4022_v36, %v4049_v54  ;;  %v1649_v36 = vadd.f32 %v4032_v44, %v4049_v54 }
 0x183   :  { %v4274_v2 = vadd.f32 %v2795_v11, %v1636_v48  ;;  %v4277_v12 = vadd.f32 %v2859_v56, %v4171_v62 }
 0x185   :  { %v2796_v3 = vpop.f32.mrb[72].mxu1  ;;  %v2860_v6 = vpop.f32.mrb[72].mxu0 }
 0x186   :  { %v2797_v16 = vpop.f32.mrb[73].mxu1  ;;  %v2861_v7 = vpop.f32.mrb[73].mxu0 }
 0x187   :  { %v2798_v30 = vadd.f32 %v2797_v16, %v2796_v3  ;;  %v2862_v10 = vadd.f32 %v2861_v7, %v2860_v6  ;;  %v2799_v8 = vpop.f32.mrb[74].mxu1  ;;  %v2863_v9 = vpop.f32.mrb[74].mxu0 }
 0x188   :  { %v2800_v17 = vpop.f32.mrb[75].mxu1  ;;  %v2864_v24 = vpop.f32.mrb[75].mxu0 }
 0x189   :  { %v4283_v18 = vadd.f32 %v2798_v30, %v1641_v20  ;;  %v4286_v62 = vadd.f32 %v2862_v10, %v4179_v33  ;;  %v2801_v35 = vadd.f32 %v2800_v17, %v2799_v8  ;;  %v2865_v25 = vadd.f32 %v2864_v24, %v2863_v9 }
 0x18a   :  { %v1652_v33 = vadd.f32 %v4042_v52, %v4049_v54 }
 0x18b   :  { %v4288_v22 = vadd.f32 %v2801_v35, %v1644_v37  ;;  %v4291_v28 = vadd.f32 %v2865_v25, %v4183_v14 }
 0x18d   :  { %v2802_v42 = vpop.f32.mrb[76].mxu1  ;;  %v2866_v34 = vpop.f32.mrb[76].mxu0 }
 0x18e   :  { %v2803_v40 = vpop.f32.mrb[77].mxu1  ;;  %v2867_v41 = vpop.f32.mrb[77].mxu0 }
 0x18f   :  { %v2804_v4 = vadd.f32 %v2803_v40, %v2802_v42  ;;  %v2868_v53 = vadd.f32 %v2867_v41, %v2866_v34  ;;  %v2805_v51 = vpop.f32.mrb[78].mxu1  ;;  %v2869_v50 = vpop.f32.mrb[78].mxu0 }
 0x190   :  { %v2806_v43 = vpop.f32.mrb[79].mxu1  ;;  %v2870_v48 = vpop.f32.mrb[79].mxu0 }
 0x191   :  { %v4297_v45 = vadd.f32 %v2804_v4, %v1649_v36  ;;  %v4300_v14 = vadd.f32 %v2868_v53, %v4191_v58  ;;  %v2807_v61 = vadd.f32 %v2806_v43, %v2805_v51  ;;  %v2871_v11 = vadd.f32 %v2870_v48, %v2869_v50 }
 0x193   :  { %v4302_v56 = vadd.f32 %v2807_v61, %v1652_v33  ;;  %v4305_v44 = vadd.f32 %v2871_v11, %v4195_v1 }
 0x195   :  { %v2872_v3 = vpop.f32.mrb[80].mxu0  ;;  %v2936_v6 = vpop.f32.mrb[80].mxu1 }
 0x196   :  { %v2873_v16 = vpop.f32.mrb[81].mxu0  ;;  %v2937_v7 = vpop.f32.mrb[81].mxu1 }
 0x197   :  { %v2874_v20 = vadd.f32 %v2873_v16, %v2872_v3  ;;  %v2938_v52 = vadd.f32 %v2937_v7, %v2936_v6  ;;  %v2875_v54 = vpop.f32.mrb[82].mxu0  ;;  %v2939_v30 = vpop.f32.mrb[82].mxu1 }
 0x198   :  { %v2876_v10 = vpop.f32.mrb[83].mxu0  ;;  %v2940_v8 = vpop.f32.mrb[83].mxu1 }
 0x199   :  { %v4308_v58 = vadd.f32 %v2874_v20, %v4200_v5  ;;  %v2877_v9 = vadd.f32 %v2876_v10, %v2875_v54  ;;  %v2941_v37 = vadd.f32 %v2940_v8, %v2939_v30  ;;  %v4311_v17 = vadd.f32 %v2938_v52, %v4203_v23 }
 0x19b   :  { %v4314_v1 = vadd.f32 %v2877_v9, %v4205_v38  ;;  %v4317_v24 = vadd.f32 %v2941_v37, %v4208_v32 }
 0x19d   :  { %v2878_v35 = vpop.f32.mrb[84].mxu0  ;;  %v2942_v25 = vpop.f32.mrb[84].mxu1 }
 0x19e   :  { %v2879_v42 = vpop.f32.mrb[85].mxu0  ;;  %v2943_v34 = vpop.f32.mrb[85].mxu1 }
 0x19f   :  { %v2880_v40 = vadd.f32 %v2879_v42, %v2878_v35  ;;  %v2944_v41 = vadd.f32 %v2943_v34, %v2942_v25  ;;  %v2881_v36 = vpop.f32.mrb[86].mxu0  ;;  %v2945_v5 = vpop.f32.mrb[86].mxu1 }
 0x1a0   :  { %v2882_v4 = vpop.f32.mrb[87].mxu0  ;;  %v2946_v53 = vpop.f32.mrb[87].mxu1 }
 0x1a1   :  { %v4320_v51 = vadd.f32 %v2880_v40, %v4213_v63  ;;  %v2883_v23 = vadd.f32 %v2882_v4, %v2881_v36  ;;  %v2947_v50 = vadd.f32 %v2946_v53, %v2945_v5  ;;  %v4323_v38 = vadd.f32 %v2944_v41, %v4216_v15 }
 0x1a3   :  { %v4326_v32 = vadd.f32 %v2883_v23, %v4218_v59  ;;  %v4329_v33 = vadd.f32 %v2947_v50, %v4221_v13 }
 0x1a5   :  { %v2884_v43 = vpop.f32.mrb[88].mxu0  ;;  %v2948_v48 = vpop.f32.mrb[88].mxu1 }
 0x1a6   :  { %v2885_v61 = vpop.f32.mrb[89].mxu0  ;;  %v2949_v11 = vpop.f32.mrb[89].mxu1 }
 0x1a7   :  { %v2886_v3 = vadd.f32 %v2885_v61, %v2884_v43  ;;  %v2950_v6 = vadd.f32 %v2949_v11, %v2948_v48  ;;  %v2887_v16 = vpop.f32.mrb[90].mxu0  ;;  %v2951_v63 = vpop.f32.mrb[90].mxu1 }
 0x1a8   :  { %v2888_v7 = vpop.f32.mrb[91].mxu0  ;;  %v2952_v20 = vpop.f32.mrb[91].mxu1 }
 0x1a9   :  { %v4332_v52 = vadd.f32 %v2886_v3, %v4227_v26  ;;  %v2889_v15 = vadd.f32 %v2888_v7, %v2887_v16  ;;  %v2953_v54 = vadd.f32 %v2952_v20, %v2951_v63  ;;  %v4335_v59 = vadd.f32 %v2950_v6, %v4230_v39 }
 0x1ab   :  { %v4338_v13 = vadd.f32 %v2889_v15, %v4232_v31  ;;  %v4341_v30 = vadd.f32 %v2953_v54, %v4235_v46 }
 0x1ad   :  { %v2890_v10 = vpop.f32.mrb[92].mxu0  ;;  %v2954_v8 = vpop.f32.mrb[92].mxu1 }
 0x1ae   :  { %v2891_v9 = vpop.f32.mrb[93].mxu0  ;;  %v2955_v37 = vpop.f32.mrb[93].mxu1 }
 0x1af   :  { %v2892_v35 = vadd.f32 %v2891_v9, %v2890_v10  ;;  %v2956_v25 = vadd.f32 %v2955_v37, %v2954_v8  ;;  %v2893_v42 = vpop.f32.mrb[94].mxu0  ;;  %v2957_v26 = vpop.f32.mrb[94].mxu1 }
 0x1b0   :  { %v2894_v34 = vpop.f32.mrb[95].mxu0  ;;  %v2958_v40 = vpop.f32.mrb[95].mxu1 }
 0x1b1   :  { %v4344_v41 = vadd.f32 %v2892_v35, %v4241_v47  ;;  %v2895_v39 = vadd.f32 %v2894_v34, %v2893_v42  ;;  %v2959_v36 = vadd.f32 %v2958_v40, %v2957_v26  ;;  %v4347_v31 = vadd.f32 %v2956_v25, %v4244_v0 }
 0x1b3   :  { %v4350_v46 = vadd.f32 %v2895_v39, %v4246_v57  ;;  %v4353_v5 = vadd.f32 %v2959_v36, %v4249_v49 }
 0x1b5   :  { %v2896_v4 = vpop.f32.mrb[96].mxu0  ;;  %v2960_v53 = vpop.f32.mrb[96].mxu1 }
 0x1b6   :  { %v2897_v23 = vpop.f32.mrb[97].mxu0  ;;  %v2961_v50 = vpop.f32.mrb[97].mxu1 }
 0x1b7   :  { %v2898_v43 = vadd.f32 %v2897_v23, %v2896_v4  ;;  %v2962_v48 = vadd.f32 %v2961_v50, %v2960_v53  ;;  %v2899_v61 = vpop.f32.mrb[98].mxu0  ;;  %v2963_v47 = vpop.f32.mrb[98].mxu1 }
 0x1b8   :  { %v2900_v11 = vpop.f32.mrb[99].mxu0  ;;  %v2964_v3 = vpop.f32.mrb[99].mxu1 }
 0x1b9   :  { %v4356_v6 = vadd.f32 %v2898_v43, %v4255_v19  ;;  %v2901_v0 = vadd.f32 %v2900_v11, %v2899_v61  ;;  %v2965_v16 = vadd.f32 %v2964_v3, %v2963_v47  ;;  %v4359_v57 = vadd.f32 %v2962_v48, %v4258_v27 }
 0x1bb   :  { %v4362_v49 = vadd.f32 %v2901_v0, %v4260_v29  ;;  %v4365_v63 = vadd.f32 %v2965_v16, %v4263_v60 }
 0x1bd   :  { %v2902_v7 = vpop.f32.mrb[100].mxu0  ;;  %v2966_v20 = vpop.f32.mrb[100].mxu1 }
 0x1be   :  { %v2903_v15 = vpop.f32.mrb[101].mxu0  ;;  %v2967_v54 = vpop.f32.mrb[101].mxu1 }
 0x1bf   :  { %v2904_v10 = vadd.f32 %v2903_v15, %v2902_v7  ;;  %v2968_v8 = vadd.f32 %v2967_v54, %v2966_v20  ;;  %v2905_v9 = vpop.f32.mrb[102].mxu0  ;;  %v2969_v19 = vpop.f32.mrb[102].mxu1 }
 0x1c0   :  { %v2906_v37 = vpop.f32.mrb[103].mxu0  ;;  %v2970_v35 = vpop.f32.mrb[103].mxu1 }
 0x1c1   :  { %v4368_v25 = vadd.f32 %v2904_v10, %v4269_v21  ;;  %v2907_v27 = vadd.f32 %v2906_v37, %v2905_v9  ;;  %v2971_v42 = vadd.f32 %v2970_v35, %v2969_v19  ;;  %v4371_v29 = vadd.f32 %v2968_v8, %v4272_v55 }
 0x1c3   :  { %v4374_v60 = vadd.f32 %v2907_v27, %v4274_v2  ;;  %v4377_v26 = vadd.f32 %v2971_v42, %v4277_v12 }
 0x1c5   :  { %v2908_v34 = vpop.f32.mrb[104].mxu0  ;;  %v2972_v40 = vpop.f32.mrb[104].mxu1 }
 0x1c6   :  { %v2909_v39 = vpop.f32.mrb[105].mxu0  ;;  %v2973_v36 = vpop.f32.mrb[105].mxu1 }
 0x1c7   :  { %v2910_v4 = vadd.f32 %v2909_v39, %v2908_v34  ;;  %v2974_v53 = vadd.f32 %v2973_v36, %v2972_v40  ;;  %v2911_v23 = vpop.f32.mrb[106].mxu0  ;;  %v2975_v21 = vpop.f32.mrb[106].mxu1 }
 0x1c8   :  { %v2912_v50 = vpop.f32.mrb[107].mxu0  ;;  %v2976_v43 = vpop.f32.mrb[107].mxu1 }
 0x1c9   :  { %v4380_v48 = vadd.f32 %v2910_v4, %v4283_v18  ;;  %v2913_v55 = vadd.f32 %v2912_v50, %v2911_v23  ;;  %v2977_v61 = vadd.f32 %v2976_v43, %v2975_v21  ;;  %v4383_v2 = vadd.f32 %v2974_v53, %v4286_v62 }
 0x1cb   :  { %v4386_v12 = vadd.f32 %v2913_v55, %v4288_v22  ;;  %v4389_v47 = vadd.f32 %v2977_v61, %v4291_v28 }
 0x1cd   :  { %v2914_v11 = vpop.f32.mrb[108].mxu0  ;;  %v2978_v3 = vpop.f32.mrb[108].mxu1 }
 0x1ce   :  { %v2915_v0 = vpop.f32.mrb[109].mxu0  ;;  %v2979_v16 = vpop.f32.mrb[109].mxu1 }
 0x1cf   :  { %v2916_v7 = vadd.f32 %v2915_v0, %v2914_v11  ;;  %v2980_v20 = vadd.f32 %v2979_v16, %v2978_v3  ;;  %v2917_v15 = vpop.f32.mrb[110].mxu0  ;;  %v2981_v18 = vpop.f32.mrb[110].mxu1 }
 0x1d0   :  { %v2918_v54 = vpop.f32.mrb[111].mxu0  ;;  %v2982_v10 = vpop.f32.mrb[111].mxu1 }
 0x1d1   :  { %v4392_v8 = vadd.f32 %v2916_v7, %v4297_v45  ;;  %v2919_v62 = vadd.f32 %v2918_v54, %v2917_v15  ;;  %v2983_v9 = vadd.f32 %v2982_v10, %v2981_v18  ;;  %v4395_v22 = vadd.f32 %v2980_v20, %v4300_v14 }
 0x1d3   :  { %v4398_v28 = vadd.f32 %v2919_v62, %v4302_v56  ;;  %v4401_v19 = vadd.f32 %v2983_v9, %v4305_v44 }
 0x1d5   :  { %v2984_v37 = vpop.f32.mrb[112].mxu1  ;;  %v3074_v35 = vpop.f32.mrb[112].mxu0 }
 0x1d6   :  { %v2181_v27 = vadd.f32 %v3074_v35, %v4323_v38  ;;  %v2985_v42 = vpop.f32.mrb[113].mxu1  ;;  %v2172_v34 = vpop.f32.mrb[113].mxu0 }
 0x1d7   :  { %v2986_v40 = vadd.f32 %v2985_v42, %v2984_v37  ;;  %v2173_v45 = vadd.f32 %v2172_v34, %v4311_v17  ;;  %v2987_v39 = vpop.f32.mrb[114].mxu1  ;;  %v3075_v36 = vpop.f32.mrb[114].mxu0 }
 0x1d8   :  { %v2301_v4 = vmax.f32 %v2181_v27, 0.0  ;;  %v2184_v14 = vadd.f32 %v3075_v36, %v4329_v33  ;;  %v2988_v53 = vpop.f32.mrb[115].mxu1  ;;  %v2175_v56 = vpop.f32.mrb[115].mxu0 }
 0x1d9   :  { %v2299_v23 = vmax.f32 %v2173_v45, 0.0  ;;  %v2989_v21 = vadd.f32 %v2988_v53, %v2987_v39  ;;  %v2176_v44 = vadd.f32 %v2175_v56, %v4317_v24  ;;  %v4408_v50 = vadd.f32 %v2986_v40, %v4308_v58 }
 0x1da   :  { %2333 = vst [vmem:[%s4543_s3 + $0x10] sm:$0xff] %v2301_v4  ;;  %v2302_v38 = vmax.f32 %v2184_v14, 0.0 }
 0x1db   :  { %2331 = vst [vmem:[%s4543_s3] sm:$0xff] %v2299_v23  ;;  %v2300_v17 = vmax.f32 %v2176_v44, 0.0  ;;  %v4417_v33 = vadd.f32 %v2989_v21, %v4314_v1 }
 0x1dc   :  { %2334 = vst [vmem:[%s4543_s3 + $0x18] sm:$0xff] %v2302_v38 }
 0x1dd   :  { %2332 = vst [vmem:[%s4543_s3 + $0x8] sm:$0xff] %v2300_v17  ;;  %v2990_v58 = vpop.f32.mrb[116].mxu1  ;;  %v3078_v24 = vpop.f32.mrb[116].mxu0 }
 0x1de   :  { %v2197_v43 = vadd.f32 %v3078_v24, %v4347_v31  ;;  %v2991_v55 = vpop.f32.mrb[117].mxu1  ;;  %v2188_v61 = vpop.f32.mrb[117].mxu0 }
 0x1df   :  { %v2992_v11 = vadd.f32 %v2991_v55, %v2990_v58  ;;  %v2189_v3 = vadd.f32 %v2188_v61, %v4335_v59  ;;  %v2993_v0 = vpop.f32.mrb[118].mxu1  ;;  %v3079_v1 = vpop.f32.mrb[118].mxu0 }
 0x1e0   :  { %v2305_v16 = vmax.f32 %v2197_v43, 0.0  ;;  %v2200_v7 = vadd.f32 %v3079_v1, %v4353_v5  ;;  %v2994_v20 = vpop.f32.mrb[119].mxu1  ;;  %v2191_v15 = vpop.f32.mrb[119].mxu0 }
 0x1e1   :  { %v2303_v18 = vmax.f32 %v2189_v3, 0.0  ;;  %v2995_v54 = vadd.f32 %v2994_v20, %v2993_v0  ;;  %v2192_v10 = vadd.f32 %v2191_v15, %v4341_v30  ;;  %v2084_v62 = vadd.f32 %v2992_v11, %v4320_v51 }
 0x1e2   :  { %2337 = vst [vmem:[%s4543_s3 + $0x30] sm:$0xff] %v2305_v16  ;;  %v2306_v31 = vmax.f32 %v2200_v7, 0.0 }
 0x1e3   :  { %2335 = vst [vmem:[%s4543_s3 + $0x20] sm:$0xff] %v2303_v18  ;;  %v2304_v59 = vmax.f32 %v2192_v10, 0.0  ;;  %v2087_v5 = vadd.f32 %v2995_v54, %v4326_v32 }
 0x1e4   :  { %2338 = vst [vmem:[%s4543_s3 + $0x38] sm:$0xff] %v2306_v31 }
 0x1e5   :  { %2336 = vst [vmem:[%s4543_s3 + $0x28] sm:$0xff] %v2304_v59  ;;  %v2996_v51 = vpop.f32.mrb[120].mxu1  ;;  %v3082_v30 = vpop.f32.mrb[120].mxu0 }
 0x1e6   :  { %v2213_v9 = vadd.f32 %v3082_v30, %v4371_v29  ;;  %v2997_v37 = vpop.f32.mrb[121].mxu1  ;;  %v2204_v35 = vpop.f32.mrb[121].mxu0 }
 0x1e7   :  { %v2998_v27 = vadd.f32 %v2997_v37, %v2996_v51  ;;  %v2205_v42 = vadd.f32 %v2204_v35, %v4359_v57  ;;  %v2999_v34 = vpop.f32.mrb[122].mxu1  ;;  %v3083_v40 = vpop.f32.mrb[122].mxu0 }
 0x1e8   :  { %v2309_v32 = vmax.f32 %v2213_v9, 0.0  ;;  %v2216_v45 = vadd.f32 %v3083_v40, %v4377_v26  ;;  %v3000_v39 = vpop.f32.mrb[123].mxu1  ;;  %v2207_v36 = vpop.f32.mrb[123].mxu0 }
 0x1e9   :  { %v2307_v4 = vmax.f32 %v2205_v42, 0.0  ;;  %v3001_v14 = vadd.f32 %v3000_v39, %v2999_v34  ;;  %v2208_v53 = vadd.f32 %v2207_v36, %v4365_v63  ;;  %v2092_v56 = vadd.f32 %v2998_v27, %v4332_v52 }
 0x1ea   :  { %2341 = vst [vmem:[%s4543_s3 + $0x50] sm:$0xff] %v2309_v32  ;;  %v2310_v29 = vmax.f32 %v2216_v45, 0.0 }
 0x1eb   :  { %2339 = vst [vmem:[%s4543_s3 + $0x40] sm:$0xff] %v2307_v4  ;;  %v2308_v57 = vmax.f32 %v2208_v53, 0.0  ;;  %v4455_v26 = vadd.f32 %v3001_v14, %v4338_v13 }
 0x1ec   :  { %2342 = vst [vmem:[%s4543_s3 + $0x58] sm:$0xff] %v2310_v29 }
 0x1ed   :  { %2340 = vst [vmem:[%s4543_s3 + $0x48] sm:$0xff] %v2308_v57  ;;  %v3002_v52 = vpop.f32.mrb[124].mxu1  ;;  %v3086_v63 = vpop.f32.mrb[124].mxu0 }
 0x1ee   :  { %v2229_v23 = vadd.f32 %v3086_v63, %v4395_v22  ;;  %v3003_v21 = vpop.f32.mrb[125].mxu1  ;;  %v2220_v44 = vpop.f32.mrb[125].mxu0 }
 0x1ef   :  { %v3004_v38 = vadd.f32 %v3003_v21, %v3002_v52  ;;  %v2221_v17 = vadd.f32 %v2220_v44, %v4383_v2  ;;  %v3005_v58 = vpop.f32.mrb[126].mxu1  ;;  %v3087_v13 = vpop.f32.mrb[126].mxu0 }
 0x1f0   :  { %v2313_v24 = vmax.f32 %v2229_v23, 0.0  ;;  %v2232_v43 = vadd.f32 %v3087_v13, %v4401_v19  ;;  %v3006_v55 = vpop.f32.mrb[127].mxu1  ;;  %v2223_v61 = vpop.f32.mrb[127].mxu0 }
 0x1f1   :  { %v2311_v11 = vmax.f32 %v2221_v17, 0.0  ;;  %v3007_v3 = vadd.f32 %v3006_v55, %v3005_v58  ;;  %v2224_v0 = vadd.f32 %v2223_v61, %v4389_v47  ;;  %v2100_v1 = vadd.f32 %v3004_v38, %v4344_v41 }
 0x1f2   :  { %2345 = vst [vmem:[%s4543_s3 + $0x70] sm:$0xff] %v2313_v24  ;;  %v2314_v22 = vmax.f32 %v2232_v43, 0.0 }
 0x1f3   :  { %2343 = vst [vmem:[%s4543_s3 + $0x60] sm:$0xff] %v2311_v11  ;;  %v2312_v2 = vmax.f32 %v2224_v0, 0.0  ;;  %v2103_v19 = vadd.f32 %v3007_v3, %v4350_v46 }
 0x1f4   :  { %2346 = vst [vmem:[%s4543_s3 + $0x78] sm:$0xff] %v2314_v22 }
 0x1f5   :  { %2344 = vst [vmem:[%s4543_s3 + $0x68] sm:$0xff] %v2312_v2  ;;  %v3008_v41 = vpop.f32.mrb[128].mxu1  ;;  %v3090_v47 = vpop.f32.mrb[128].mxu0 }
 0x1f6   :  { %v2245_v16 = vadd.f32 %v3090_v47, %v2084_v62  ;;  %v3009_v7 = vpop.f32.mrb[129].mxu1  ;;  %v2236_v20 = vpop.f32.mrb[129].mxu0 }
 0x1f7   :  { %v3010_v15 = vadd.f32 %v3009_v7, %v3008_v41  ;;  %v2237_v18 = vadd.f32 %v2236_v20, %v4408_v50  ;;  %v3011_v54 = vpop.f32.mrb[130].mxu1  ;;  %v3091_v10 = vpop.f32.mrb[130].mxu0 }
 0x1f8   :  { %v2317_v31 = vmax.f32 %v2245_v16, 0.0  ;;  %v2248_v46 = vadd.f32 %v3091_v10, %v2087_v5  ;;  %v3012_v59 = vpop.f32.mrb[131].mxu1  ;;  %v2239_v51 = vpop.f32.mrb[131].mxu0 }
 0x1f9   :  { %v2315_v30 = vmax.f32 %v2237_v18, 0.0  ;;  %v3013_v9 = vadd.f32 %v3012_v59, %v3011_v54  ;;  %v2240_v37 = vadd.f32 %v2239_v51, %v4417_v33  ;;  %v2108_v35 = vadd.f32 %v3010_v15, %v4356_v6 }
 0x1fa   :  { %2349 = vst [vmem:[%s4543_s3 + $0x90] sm:$0xff] %v2317_v31  ;;  %v2318_v62 = vmax.f32 %v2248_v46, 0.0 }
 0x1fb   :  { %2347 = vst [vmem:[%s4543_s3 + $0x80] sm:$0xff] %v2315_v30  ;;  %v2316_v50 = vmax.f32 %v2240_v37, 0.0  ;;  %v2111_v5 = vadd.f32 %v3013_v9, %v4362_v49 }
 0x1fc   :  { %2350 = vst [vmem:[%s4543_s3 + $0x98] sm:$0xff] %v2318_v62 }
 0x1fd   :  { %2348 = vst [vmem:[%s4543_s3 + $0x88] sm:$0xff] %v2316_v50  ;;  %v3014_v6 = vpop.f32.mrb[132].mxu1  ;;  %v3094_v33 = vpop.f32.mrb[132].mxu0 }
 0x1fe   :  { %v2261_v27 = vadd.f32 %v3094_v33, %v2100_v1  ;;  %v3015_v42 = vpop.f32.mrb[133].mxu1  ;;  %v2252_v34 = vpop.f32.mrb[133].mxu0 }
 0x1ff   :  { %v3016_v40 = vadd.f32 %v3015_v42, %v3014_v6  ;;  %v2253_v32 = vadd.f32 %v2252_v34, %v2092_v56  ;;  %v3017_v45 = vpop.f32.mrb[134].mxu1  ;;  %v3095_v39 = vpop.f32.mrb[134].mxu0 }
 0x200   :  { %v2321_v36 = vmax.f32 %v2261_v27, 0.0  ;;  %v2264_v4 = vadd.f32 %v3095_v39, %v2103_v19  ;;  %v3018_v49 = vpop.f32.mrb[135].mxu1  ;;  %v2255_v14 = vpop.f32.mrb[135].mxu0 }
 0x201   :  { %v2319_v53 = vmax.f32 %v2253_v32, 0.0  ;;  %v3019_v29 = vadd.f32 %v3018_v49, %v3017_v45  ;;  %v2256_v57 = vadd.f32 %v2255_v14, %v4455_v26  ;;  %v2116_v52 = vadd.f32 %v3016_v40, %v4368_v25 }
 0x202   :  { %2353 = vst [vmem:[%s4543_s3 + $0xb0] sm:$0xff] %v2321_v36  ;;  %v2322_v63 = vmax.f32 %v2264_v4, 0.0 }
 0x203   :  { %2351 = vst [vmem:[%s4543_s3 + $0xa0] sm:$0xff] %v2319_v53  ;;  %v2320_v56 = vmax.f32 %v2256_v57, 0.0  ;;  %v2119_v23 = vadd.f32 %v3019_v29, %v4374_v60 }
 0x204   :  { %2354 = vst [vmem:[%s4543_s3 + $0xb8] sm:$0xff] %v2322_v63 }
 0x205   :  { %2352 = vst [vmem:[%s4543_s3 + $0xa8] sm:$0xff] %v2320_v56  ;;  %v3020_v25 = vpop.f32.mrb[136].mxu1  ;;  %v3098_v26 = vpop.f32.mrb[136].mxu0 }
 0x206   :  { %v2277_v21 = vadd.f32 %v3098_v26, %v2116_v52  ;;  %v3021_v44 = vpop.f32.mrb[137].mxu1  ;;  %v2268_v38 = vpop.f32.mrb[137].mxu0 }
 0x207   :  { %v3022_v17 = vadd.f32 %v3021_v44, %v3020_v25  ;;  %v2269_v58 = vadd.f32 %v2268_v38, %v2108_v35  ;;  %v3023_v13 = vpop.f32.mrb[138].mxu1  ;;  %v3099_v24 = vpop.f32.mrb[138].mxu0 }
 0x208   :  { %v2325_v43 = vmax.f32 %v2277_v21, 0.0  ;;  %v2280_v55 = vadd.f32 %v3099_v24, %v2119_v23  ;;  %v3024_v60 = vpop.f32.mrb[139].mxu1  ;;  %v2271_v61 = vpop.f32.mrb[139].mxu0 }
 0x209   :  { %v2323_v11 = vmax.f32 %v2269_v58, 0.0  ;;  %v3025_v3 = vadd.f32 %v3024_v60, %v3023_v13  ;;  %v2272_v0 = vadd.f32 %v2271_v61, %v2111_v5  ;;  %v2124_v1 = vadd.f32 %v3022_v17, %v4380_v48 }
 0x20a   :  { %2357 = vst [vmem:[%s4543_s3 + $0xd0] sm:$0xff] %v2325_v43  ;;  %v2326_v22 = vmax.f32 %v2280_v55, 0.0 }
 0x20b   :  { %2355 = vst [vmem:[%s4543_s3 + $0xc0] sm:$0xff] %v2323_v11  ;;  %v2324_v2 = vmax.f32 %v2272_v0, 0.0  ;;  %v2127_v19 = vadd.f32 %v3025_v3, %v4386_v12 }
 0x20c   :  { %2358 = vst [vmem:[%s4543_s3 + $0xd8] sm:$0xff] %v2326_v22 }
 0x20d   :  { %2356 = vst [vmem:[%s4543_s3 + $0xc8] sm:$0xff] %v2324_v2  ;;  %v3026_v48 = vpop.f32.mrb[140].mxu1  ;;  %v3102_v41 = vpop.f32.mrb[140].mxu0 }
 0x20e   :  { %v3027_v47 = vpop.f32.mrb[141].mxu1  ;;  %v2284_v16 = vpop.f32.mrb[141].mxu0 }
 0x20f   :  { %v3028_v7 = vadd.f32 %v3027_v47, %v3026_v48  ;;  %v2285_v20 = vadd.f32 %v2284_v16, %v2124_v1  ;;  %v3029_v15 = vpop.f32.mrb[142].mxu1  ;;  %v3103_v18 = vpop.f32.mrb[142].mxu0 }
 0x210   :  { %v3030_v54 = vpop.f32.mrb[143].mxu1  ;;  %v2287_v10 = vpop.f32.mrb[143].mxu0 }
 0x211   :  { %v2132_v12 = vadd.f32 %v3028_v7, %v4392_v8  ;;  %v2327_v31 = vmax.f32 %v2285_v20, 0.0  ;;  %v3031_v46 = vadd.f32 %v3030_v54, %v3029_v15  ;;  %v2288_v59 = vadd.f32 %v2287_v10, %v2127_v19 }
 0x213   :  { %v2293_v51 = vadd.f32 %v3102_v41, %v2132_v12  ;;  %2359 = vst [vmem:[%s4543_s3 + $0xe0] sm:$0xff] %v2327_v31  ;;  %v2135_v30 = vadd.f32 %v3031_v46, %v4398_v28  ;;  %v2328_v9 = vmax.f32 %v2288_v59, 0.0 }
 0x215   :  { %v2329_v37 = vmax.f32 %v2293_v51, 0.0  ;;  %v2296_v35 = vadd.f32 %v3103_v18, %v2135_v30  ;;  %2360 = vst [vmem:[%s4543_s3 + $0xe8] sm:$0xff] %v2328_v9 }
 0x217   :  { %2361 = vst [vmem:[%s4543_s3 + $0xf0] sm:$0xff] %v2329_v37  ;;  %v2330_v8 = vmax.f32 %v2296_v35, 0.0 }
 0x219   :  { %2362 = vst [vmem:[%s4543_s3 + $0xf8] sm:$0xff] %v2330_v8 }

// kernel: lpips_forward.6
= control target key start
LH: loop header
LB: loop body
LE: loop exit
PB: predicated region body
PF: predicated region fallthrough
CT: control target
= control target key end

     0   :  { %s1986_s1 = inlined_call_operand.vmem [shape: bf16[1152,128], index: 1, kind: input, shape index: {}]   ;;  %s1987_s0 = inlined_call_operand.vmem [shape: bf16[64,1152], index: 0, kind: input, shape index: {}]   ;;  %s1988_s2 = inlined_call_operand.vmem [shape: f32[1,128], index: 2, kind: input, shape index: {}]   ;;  %s1989_s3 = inlined_call_operand.vmem [shape: f32[64,128], index: 3, kind: output, shape index: {}]  }
   0x1   :  { %v1488_v0 = vld [vmem:[%s1986_s1 + $0x40] sm:$0xff]   ;;  %v1492_v4 = vld [vmem:[%s1986_s1 + $0x48] sm:$0xff]   ;;  %v1496_v8 = vld [vmem:[%s1986_s1 + $0x50] sm:$0xff]  }
   0x2   :  { %v1489_v1 = vld [vmem:[%s1986_s1 + $0xc0] sm:$0xff]   ;;  %1276 = vmatprep.subr.bf16.mxu0 %v1488_v0  ;;  %v1493_v5 = vld [vmem:[%s1986_s1 + $0xc8] sm:$0xff]   ;;  %v1497_v9 = vld [vmem:[%s1986_s1 + $0xd0] sm:$0xff]  }
   0x3   :  { %v1490_v2 = vld [vmem:[%s1986_s1] sm:$0xff]   ;;  %1316 = vmatprep.subr.bf16.mxu1 %v1489_v1  ;;  %v1494_v6 = vld [vmem:[%s1986_s1 + $0x8] sm:$0xff]   ;;  %v1498_v10 = vld [vmem:[%s1986_s1 + $0x10] sm:$0xff]  }
   0x4   :  { %v1491_v3 = vld [vmem:[%s1986_s1 + $0x80] sm:$0xff]   ;;  %1277 = vmatpush3.bf16.msra.mxu0 %v1490_v2  ;;  %v1495_v7 = vld [vmem:[%s1986_s1 + $0x88] sm:$0xff]   ;;  %v1499_v11 = vld [vmem:[%s1986_s1 + $0x90] sm:$0xff]  }
   0x5   :  { %1317 = vmatpush3.bf16.msra.mxu1 %v1491_v3  ;;  %1278 = vmatprep.subr.bf16.mxu0 %v1492_v4  ;;  %v1500_v12 = vld [vmem:[%s1986_s1 + $0x58] sm:$0xff]   ;;  %v1504_v16 = vld [vmem:[%s1986_s1 + $0x60] sm:$0xff]   ;;  %v1508_v20 = vld [vmem:[%s1986_s1 + $0x68] sm:$0xff]  }
   0x6   :  { %1318 = vmatprep.subr.bf16.mxu1 %v1493_v5  ;;  %v1501_v13 = vld [vmem:[%s1986_s1 + $0xd8] sm:$0xff]   ;;  %v1505_v17 = vld [vmem:[%s1986_s1 + $0xe0] sm:$0xff]   ;;  %v1509_v21 = vld [vmem:[%s1986_s1 + $0xe8] sm:$0xff]  }
   0x7   :  { %v1502_v14 = vld [vmem:[%s1986_s1 + $0x18] sm:$0xff]   ;;  %v1506_v18 = vld [vmem:[%s1986_s1 + $0x20] sm:$0xff]   ;;  %v1510_v22 = vld [vmem:[%s1986_s1 + $0x28] sm:$0xff]  }
   0x8   :  { %1279 = vmatpush3.bf16.msra.mxu0 %v1494_v6  ;;  %v1503_v15 = vld [vmem:[%s1986_s1 + $0x98] sm:$0xff]   ;;  %v1507_v19 = vld [vmem:[%s1986_s1 + $0xa0] sm:$0xff]   ;;  %v1511_v23 = vld [vmem:[%s1986_s1 + $0xa8] sm:$0xff]  }
   0x9   :  { %1319 = vmatpush3.bf16.msra.mxu1 %v1495_v7  ;;  %1280 = vmatprep.subr.bf16.mxu0 %v1496_v8  ;;  %v1512_v24 = vld [vmem:[%s1986_s1 + $0x70] sm:$0xff]   ;;  %v1516_v28 = vld [vmem:[%s1986_s1 + $0x78] sm:$0xff]   ;;  %v1520_v32 = vld [vmem:[%s1987_s0] ss:$36 sps:$4 sm:$0xff]  }
   0xa   :  { %1320 = vmatprep.subr.bf16.mxu1 %v1497_v9  ;;  %v1513_v25 = vld [vmem:[%s1986_s1 + $0xf0] sm:$0xff]   ;;  %v1517_v29 = vld [vmem:[%s1986_s1 + $0xf8] sm:$0xff]   ;;  %v1522_v33 = vld [vmem:[%s1987_s0 + $0x4] ss:$36 sps:$4 sm:$0xff]  }
   0xb   :  { %v1514_v26 = vld [vmem:[%s1986_s1 + $0x30] sm:$0xff]   ;;  %v1518_v30 = vld [vmem:[%s1986_s1 + $0x38] sm:$0xff]   ;;  %v1523_v34 = vld [vmem:[%s1987_s0 + $0x8] ss:$36 sps:$4 sm:$0xff]   ;;  %854 = vmatprep.mubr.bf16.mxu0 %v1522_v33 }
   0xc   :  { %1281 = vmatpush3.bf16.msra.mxu0 %v1498_v10  ;;  %v1515_v27 = vld [vmem:[%s1986_s1 + $0xb0] sm:$0xff]   ;;  %v1519_v31 = vld [vmem:[%s1986_s1 + $0xb8] sm:$0xff]   ;;  %v1526_v36 = vld [vmem:[%s1986_s1 + $0x140] sm:$0xff]  }
   0xd   :  { %1321 = vmatpush3.bf16.msra.mxu1 %v1499_v11  ;;  %1282 = vmatprep.subr.bf16.mxu0 %v1500_v12  ;;  %v1525_v35 = vld [vmem:[%s1987_s0 + $0xc] ss:$36 sps:$4 sm:$0xff]   ;;  %v1527_v37 = vld [vmem:[%s1986_s1 + $0x1c0] sm:$0xff]   ;;  %v1536_v45 = vld [vmem:[%s1987_s0 + $0x54] ss:$36 sps:$4 sm:$0xff]  }
   0xe   :  { %1322 = vmatprep.subr.bf16.mxu1 %v1501_v13  ;;  %919 = vmatprep.mubr.bf16.mxu1 %v1525_v35  ;;  %v1528_v38 = vld [vmem:[%s1986_s1 + $0x100] sm:$0xff]   ;;  %v1530_v40 = vld [vmem:[%s1986_s1 + $0x148] sm:$0xff]   ;;  %v1539_v47 = vld [vmem:[%s1987_s0 + $0x50] ss:$36 sps:$4 sm:$0xff]  }
   0xf   :  { %v1529_v39 = vld [vmem:[%s1986_s1 + $0x180] sm:$0xff]   ;;  %v1531_v41 = vld [vmem:[%s1986_s1 + $0x1c8] sm:$0xff]   ;;  %v1540_v48 = vld [vmem:[%s1986_s1 + $0x150] sm:$0xff]  }
  0x10   :  { %1283 = vmatpush3.bf16.msra.mxu0 %v1502_v14  ;;  %v1532_v42 = vld [vmem:[%s1986_s1 + $0x108] sm:$0xff]   ;;  %v1541_v49 = vld [vmem:[%s1986_s1 + $0x1d0] sm:$0xff]   ;;  %v1544_v52 = vld [vmem:[%s1986_s1 + $0x158] sm:$0xff]  }
  0x11   :  { %1323 = vmatpush3.bf16.msra.mxu1 %v1503_v15  ;;  %1284 = vmatprep.subr.bf16.mxu0 %v1504_v16  ;;  %v1533_v43 = vld [vmem:[%s1986_s1 + $0x188] sm:$0xff]   ;;  %v1542_v50 = vld [vmem:[%s1986_s1 + $0x110] sm:$0xff]   ;;  %v1545_v53 = vld [vmem:[%s1986_s1 + $0x1d8] sm:$0xff]  }
  0x12   :  { %1324 = vmatprep.subr.bf16.mxu1 %v1505_v17  ;;  %v1534_v44 = vld [vmem:[%s1987_s0 + $0x4c] ss:$36 sps:$4 sm:$0xff]   ;;  %v1546_v54 = vld [vmem:[%s1986_s1 + $0x118] sm:$0xff]   ;;  %v1554_v60 = vld [vmem:[%s1986_s1 + $0x160] sm:$0xff]  }
  0x13   :  { %v1538_v46 = vld [vmem:[%s1987_s0 + $0x48] ss:$36 sps:$4 sm:$0xff]   ;;  %v1543_v51 = vld [vmem:[%s1986_s1 + $0x190] sm:$0xff]   ;;  %v1547_v55 = vld [vmem:[%s1986_s1 + $0x198] sm:$0xff]  }
  0x14   :  { %1285 = vmatpush3.bf16.msra.mxu0 %v1506_v18  ;;  %v1548_v56 = vld [vmem:[%s1987_s0 + $0x94] ss:$36 sps:$4 sm:$0xff]   ;;  %v1550_v57 = vld [vmem:[%s1987_s0 + $0x9c] ss:$36 sps:$4 sm:$0xff]   ;;  %v1558_v0 = vld [vmem:[%s1986_s1 + $0x168] sm:$0xff]  }
  0x15   :  { %1325 = vmatpush3.bf16.msra.mxu1 %v1507_v19  ;;  %1286 = vmatprep.subr.bf16.mxu0 %v1508_v20  ;;  %v1552_v58 = vld [vmem:[%s1987_s0 + $0x90] ss:$36 sps:$4 sm:$0xff]   ;;  %v1553_v59 = vld [vmem:[%s1987_s0 + $0x98] ss:$36 sps:$4 sm:$0xff]   ;;  %v1555_v61 = vld [vmem:[%s1986_s1 + $0x1e0] sm:$0xff]  }
  0x16   :  { %1326 = vmatprep.subr.bf16.mxu1 %v1509_v21  ;;  %v1556_v62 = vld [vmem:[%s1986_s1 + $0x120] sm:$0xff]   ;;  %v1559_v1 = vld [vmem:[%s1986_s1 + $0x1e8] sm:$0xff]   ;;  %v1566_v6 = vld [vmem:[%s1987_s0 + $0xd8] ss:$36 sps:$4 sm:$0xff]  }
  0x17   :  { %v1557_v63 = vld [vmem:[%s1986_s1 + $0x1a0] sm:$0xff]   ;;  %v1560_v2 = vld [vmem:[%s1986_s1 + $0x128] sm:$0xff]   ;;  %v1568_v8 = vld [vmem:[%s1986_s1 + $0x170] sm:$0xff]  }
  0x18   :  { %1287 = vmatpush3.bf16.msra.mxu0 %v1510_v22  ;;  %v1561_v3 = vld [vmem:[%s1986_s1 + $0x1a8] sm:$0xff]   ;;  %v1562_v4 = vld [vmem:[%s1987_s0 + $0xdc] ss:$36 sps:$4 sm:$0xff]   ;;  %v1569_v9 = vld [vmem:[%s1986_s1 + $0x1f0] sm:$0xff]  }
  0x19   :  { %1327 = vmatpush3.bf16.msra.mxu1 %v1511_v23  ;;  %1288 = vmatprep.subr.bf16.mxu0 %v1512_v24  ;;  %v1564_v5 = vld [vmem:[%s1987_s0 + $0xe4] ss:$36 sps:$4 sm:$0xff]   ;;  %v1570_v10 = vld [vmem:[%s1986_s1 + $0x130] sm:$0xff]   ;;  %v1572_v12 = vld [vmem:[%s1986_s1 + $0x178] sm:$0xff]  }
  0x1a   :  { %1328 = vmatprep.subr.bf16.mxu1 %v1513_v25  ;;  %v1567_v7 = vld [vmem:[%s1987_s0 + $0xe0] ss:$36 sps:$4 sm:$0xff]   ;;  %v1571_v11 = vld [vmem:[%s1986_s1 + $0x1b0] sm:$0xff]   ;;  %v1573_v13 = vld [vmem:[%s1986_s1 + $0x1f8] sm:$0xff]  }
  0x1b   :  { %v1574_v14 = vld [vmem:[%s1986_s1 + $0x138] sm:$0xff]   ;;  %v1576_v16 = vld [vmem:[%s1987_s0 + $0x10] ss:$36 sps:$4 sm:$0xff]   ;;  %v1582_v20 = vld [vmem:[%s1986_s1 + $0x200] sm:$0xff]  }
  0x1c   :  { %1289 = vmatpush3.bf16.msra.mxu0 %v1514_v26  ;;  %v1575_v15 = vld [vmem:[%s1986_s1 + $0x1b8] sm:$0xff]   ;;  %v1583_v21 = vld [vmem:[%s1986_s1 + $0x208] sm:$0xff]   ;;  %v1589_v25 = vld [vmem:[%s1987_s0 + $0x60] ss:$36 sps:$4 sm:$0xff]  }
  0x1d   :  { %1329 = vmatpush3.bf16.msra.mxu1 %v1515_v27  ;;  %1290 = vmatprep.subr.bf16.mxu0 %v1516_v28  ;;  %v1578_v17 = vld [vmem:[%s1987_s0 + $0x14] ss:$36 sps:$4 sm:$0xff]   ;;  %v1581_v19 = vld [vmem:[%s1987_s0 + $0x1c] ss:$36 sps:$4 sm:$0xff]   ;;  %v1586_v23 = vld [vmem:[%s1987_s0 + $0x64] ss:$36 sps:$4 sm:$0xff]  }
  0x1e   :  { %1330 = vmatprep.subr.bf16.mxu1 %v1517_v29  ;;  %v1579_v18 = vld [vmem:[%s1987_s0 + $0x18] ss:$36 sps:$4 sm:$0xff]   ;;  %v1590_v26 = vld [vmem:[%s1986_s1 + $0x210] sm:$0xff]   ;;  %v1592_v27 = vld [vmem:[%s1987_s0 + $0xa4] ss:$36 sps:$4 sm:$0xff]  }
  0x1f   :  { %v1584_v22 = vld [vmem:[%s1987_s0 + $0x5c] ss:$36 sps:$4 sm:$0xff]   ;;  %v1594_v28 = vld [vmem:[%s1987_s0 + $0xac] ss:$36 sps:$4 sm:$0xff]  }
  0x20   :  { %1291 = vmatpush3.bf16.msra.mxu0 %v1518_v30  ;;  %v1588_v24 = vld [vmem:[%s1987_s0 + $0x58] ss:$36 sps:$4 sm:$0xff]   ;;  %v1596_v30 = vld [vmem:[%s1987_s0 + $0xa0] ss:$36 sps:$4 sm:$0xff]   ;;  %v1600_v33 = vld [vmem:[%s1987_s0 + $0xec] ss:$36 sps:$4 sm:$0xff]  }
  0x21   :  { %1331 = vmatpush3.bf16.msra.mxu1 %v1519_v31  ;;  %1356 = vmatprep.subr.bf16.mxu0 %v1526_v36  ;;  %v1591_v29 = vld [vmem:[%s1986_s1 + $0x218] sm:$0xff]   ;;  %v1597_v31 = vld [vmem:[%s1987_s0 + $0xa8] ss:$36 sps:$4 sm:$0xff]  }
  0x22   :  { %1396 = vmatprep.subr.bf16.mxu1 %v1527_v37  ;;  %v1599_v35 = vld [vmem:[%s1986_s1 + $0x228] sm:$0xff]   ;;  %v1606_v37 = vld [vmem:[%s1986_s1 + $0x230] sm:$0xff]  }
  0x23   :  { %855 = vmatmul.mubr.bf16.vlgmr.msra.gmra.mrb[0].mxu0 %v1520_v32  ;;  %v1598_v32 = vld [vmem:[%s1986_s1 + $0x220] sm:$0xff]   ;;  %v1604_v36 = vld [vmem:[%s1987_s0 + $0xe8] ss:$36 sps:$4 sm:$0xff]  }
  0x24   :  { %920 = vmatmul.mubr.bf16.vlgmr.msra.gmra.mrb[0].mxu1 %v1523_v34  ;;  %1357 = vmatpush3.bf16.msra.mxu0 %v1528_v38  ;;  %v1602_v34 = vld [vmem:[%s1987_s0 + $0xf4] ss:$36 sps:$4 sm:$0xff]  }
  0x25   :  { %1397 = vmatpush3.bf16.msra.mxu1 %v1529_v39  ;;  %1358 = vmatprep.subr.bf16.mxu0 %v1530_v40  ;;  %v1605_v38 = vld [vmem:[%s1987_s0 + $0xf0] ss:$36 sps:$4 sm:$0xff]   ;;  %v1608_v39 = vld [vmem:[%s1987_s0 + $0x20] ss:$36 sps:$4 sm:$0xff]  }
  0x26   :  { %1398 = vmatprep.subr.bf16.mxu1 %v1531_v41  ;;  %862 = vmatprep.mubr.bf16.mxu0 %v1534_v44  ;;  %v1609_v40 = vld [vmem:[%s1987_s0 + $0xb0] ss:$36 sps:$4 sm:$0xff]   ;;  %v1607_v41 = vld [vmem:[%s1986_s1 + $0x238] sm:$0xff]  }
  0x27   :  { %927 = vmatprep.mubr.bf16.mxu1 %v1536_v45 }
  0x28   :  { %1359 = vmatpush3.bf16.msra.mxu0 %v1532_v42  ;;  %v1610_v42 = vld [vmem:[%s1987_s0 + $0x68] ss:$36 sps:$4 sm:$0xff]  }
  0x29   :  { %1399 = vmatpush3.bf16.msra.mxu1 %v1533_v43  ;;  %1360 = vmatprep.subr.bf16.mxu0 %v1540_v48  ;;  %v1611_v43 = vld [vmem:[%s1987_s0 + $0xf8] ss:$36 sps:$4 sm:$0xff]  }
  0x2a   :  { %1400 = vmatprep.subr.bf16.mxu1 %v1541_v49 }
  0x2b   :  { %863 = vmatmul.mubr.bf16.gmra.mrb[4].mxu0 %v1538_v46  ;;  %v1167_v46 = vld [vmem:[%s1988_s2] ss:$0 sm:$0xff] }
  0x2c   :  { %928 = vmatmul.mubr.bf16.gmra.mrb[4].mxu1 %v1539_v47  ;;  %1361 = vmatpush3.bf16.msra.mxu0 %v1542_v50 }
  0x2d   :  { %1401 = vmatpush3.bf16.msra.mxu1 %v1543_v51  ;;  %1362 = vmatprep.subr.bf16.mxu0 %v1544_v52 }
  0x2e   :  { %1402 = vmatprep.subr.bf16.mxu1 %v1545_v53  ;;  %870 = vmatprep.mubr.bf16.mxu0 %v1548_v56 }
  0x2f   :  { %935 = vmatprep.mubr.bf16.mxu1 %v1550_v57 }
  0x30   :  { %1363 = vmatpush3.bf16.msra.mxu0 %v1546_v54 }
  0x31   :  { %1403 = vmatpush3.bf16.msra.mxu1 %v1547_v55  ;;  %1364 = vmatprep.subr.bf16.mxu0 %v1554_v60 }
  0x32   :  { %1404 = vmatprep.subr.bf16.mxu1 %v1555_v61 }
  0x33   :  { %871 = vmatmul.mubr.bf16.gmra.mrb[8].mxu0 %v1552_v58 }
  0x34   :  { %936 = vmatmul.mubr.bf16.gmra.mrb[8].mxu1 %v1553_v59  ;;  %1365 = vmatpush3.bf16.msra.mxu0 %v1556_v62 }
  0x35   :  { %1405 = vmatpush3.bf16.msra.mxu1 %v1557_v63  ;;  %1366 = vmatprep.subr.bf16.mxu0 %v1558_v0 }
  0x36   :  { %1406 = vmatprep.subr.bf16.mxu1 %v1559_v1  ;;  %878 = vmatprep.mubr.bf16.mxu0 %v1562_v4 }
  0x37   :  { %943 = vmatprep.mubr.bf16.mxu1 %v1564_v5 }
  0x38   :  { %1367 = vmatpush3.bf16.msra.mxu0 %v1560_v2 }
  0x39   :  { %1407 = vmatpush3.bf16.msra.mxu1 %v1561_v3  ;;  %1368 = vmatprep.subr.bf16.mxu0 %v1568_v8 }
  0x3a   :  { %1408 = vmatprep.subr.bf16.mxu1 %v1569_v9 }
  0x3b   :  { %879 = vmatmul.mubr.bf16.gmra.mrb[12].mxu0 %v1566_v6 }
  0x3c   :  { %944 = vmatmul.mubr.bf16.gmra.mrb[12].mxu1 %v1567_v7  ;;  %1369 = vmatpush3.bf16.msra.mxu0 %v1570_v10 }
  0x3d   :  { %1409 = vmatpush3.bf16.msra.mxu1 %v1571_v11  ;;  %1370 = vmatprep.subr.bf16.mxu0 %v1572_v12 }
  0x3e   :  { %1410 = vmatprep.subr.bf16.mxu1 %v1573_v13  ;;  %984 = vmatprep.mubr.bf16.mxu0 %v1578_v17 }
  0x3f   :  { %1049 = vmatprep.mubr.bf16.mxu1 %v1581_v19 }
  0x40   :  { %1371 = vmatpush3.bf16.msra.mxu0 %v1574_v14 }
  0x41   :  { %1411 = vmatpush3.bf16.msra.mxu1 %v1575_v15  ;;  %1448 = vmatprep.subr.bf16.mxu0 %v1582_v20 }
  0x42   :  { %1472 = vmatprep.subr.bf16.mxu1 %v1582_v20 }
  0x43   :  { %985 = vmatmul.mubr.bf16.vlgmr.msra.gmra.mrb[16].mxu0 %v1576_v16 }
  0x44   :  { %1050 = vmatmul.mubr.bf16.vlgmr.msra.gmra.mrb[16].mxu1 %v1579_v18  ;;  %1449 = vmatpush3.bf16.msra.mxu0 %v1582_v20 }
  0x45   :  { %1480 = vmatpush3.bf16.msra.mxu1 %v1582_v20  ;;  %1450 = vmatprep.subr.bf16.mxu0 %v1583_v21 }
  0x46   :  { %1473 = vmatprep.subr.bf16.mxu1 %v1583_v21  ;;  %992 = vmatprep.mubr.bf16.mxu0 %v1584_v22 }
  0x47   :  { %1057 = vmatprep.mubr.bf16.mxu1 %v1586_v23 }
  0x48   :  { %1451 = vmatpush3.bf16.msra.mxu0 %v1583_v21 }
  0x49   :  { %1481 = vmatpush3.bf16.msra.mxu1 %v1583_v21  ;;  %1452 = vmatprep.subr.bf16.mxu0 %v1590_v26 }
  0x4a   :  { %1474 = vmatprep.subr.bf16.mxu1 %v1590_v26 }
  0x4b   :  { %993 = vmatmul.mubr.bf16.gmra.mrb[20].mxu0 %v1588_v24 }
  0x4c   :  { %1058 = vmatmul.mubr.bf16.gmra.mrb[20].mxu1 %v1589_v25  ;;  %1000 = vmatprep.mubr.bf16.mxu0 %v1592_v27 }
  0x4d   :  { %1453 = vmatpush3.bf16.msra.mxu0 %v1590_v26  ;;  %1065 = vmatprep.mubr.bf16.mxu1 %v1594_v28 }
  0x4e   :  { %1482 = vmatpush3.bf16.msra.mxu1 %v1590_v26  ;;  %1454 = vmatprep.subr.bf16.mxu0 %v1591_v29 }
  0x4f   :  { %1475 = vmatprep.subr.bf16.mxu1 %v1591_v29 }
  0x51   :  { %1455 = vmatpush3.bf16.msra.mxu0 %v1591_v29 }
  0x52   :  { %1483 = vmatpush3.bf16.msra.mxu1 %v1591_v29  ;;  %1456 = vmatprep.subr.bf16.mxu0 %v1598_v32 }
  0x53   :  { %1001 = vmatmul.mubr.bf16.gmra.mrb[24].mxu0 %v1596_v30  ;;  %1476 = vmatprep.subr.bf16.mxu1 %v1598_v32 }
  0x54   :  { %1066 = vmatmul.mubr.bf16.gmra.mrb[24].mxu1 %v1597_v31  ;;  %1008 = vmatprep.mubr.bf16.mxu0 %v1600_v33 }
  0x55   :  { %1457 = vmatpush3.bf16.msra.mxu0 %v1598_v32  ;;  %1073 = vmatprep.mubr.bf16.mxu1 %v1602_v34 }
  0x56   :  { %1484 = vmatpush3.bf16.msra.mxu1 %v1598_v32  ;;  %1458 = vmatprep.subr.bf16.mxu0 %v1599_v35 }
  0x57   :  { %1477 = vmatprep.subr.bf16.mxu1 %v1599_v35 }
  0x59   :  { %1459 = vmatpush3.bf16.msra.mxu0 %v1599_v35 }
  0x5a   :  { %1485 = vmatpush3.bf16.msra.mxu1 %v1599_v35  ;;  %1460 = vmatprep.subr.bf16.mxu0 %v1606_v37 }
  0x5b   :  { %1009 = vmatmul.mubr.bf16.gmra.mrb[28].mxu0 %v1604_v36  ;;  %1478 = vmatprep.subr.bf16.mxu1 %v1606_v37 }
  0x5c   :  { %1074 = vmatmul.mubr.bf16.gmra.mrb[28].mxu1 %v1605_v38  ;;  %1464 = vmatprep.mubr.bf16.mxu0 %v1608_v39 }
  0x5d   :  { %1461 = vmatpush3.bf16.msra.mxu0 %v1606_v37  ;;  %1468 = vmatprep.mubr.bf16.mxu1 %v1609_v40 }
  0x5e   :  { %1486 = vmatpush3.bf16.msra.mxu1 %v1606_v37  ;;  %1462 = vmatprep.subr.bf16.mxu0 %v1607_v41 }
  0x5f   :  { %1479 = vmatprep.subr.bf16.mxu1 %v1607_v41 }
  0x61   :  { %1463 = vmatpush3.bf16.msra.mxu0 %v1607_v41 }
  0x62   :  { %1487 = vmatpush3.bf16.msra.mxu1 %v1607_v41 }
  0x64   :  { %1465 = vmatmul.mubr.bf16.vlgmr.msra.gmra.mrb[32].mxu0 %v1610_v42 }
  0x65   :  { %1469 = vmatmul.mubr.bf16.vlgmr.msra.gmra.mrb[32].mxu1 %v1611_v43 }
  0xf6   :  { %v1292_v44 = vpop.f32.mrb[0].mxu0 }
  0xf7   :  { %v1332_v45 = vpop.f32.mrb[0].mxu1  ;;  %v1293_v47 = vpop.f32.mrb[1].mxu0 }
  0xf8   :  { %v1294_v48 = vadd.f32 %v1293_v47, %v1292_v44  ;;  %v1333_v49 = vpop.f32.mrb[1].mxu1  ;;  %v1295_v50 = vpop.f32.mrb[2].mxu0 }
  0xf9   :  { %v1334_v51 = vadd.f32 %v1333_v49, %v1332_v45  ;;  %v1335_v52 = vpop.f32.mrb[2].mxu1  ;;  %v1296_v53 = vpop.f32.mrb[3].mxu0 }
  0xfa   :  { %v857_v54 = vadd.f32 %v1294_v48, %v1167_v46  ;;  %v1297_v55 = vadd.f32 %v1296_v53, %v1295_v50  ;;  %v1336_v56 = vpop.f32.mrb[3].mxu1 }
  0xfb   :  { %v1337_v57 = vadd.f32 %v1336_v56, %v1335_v52 }
  0xfc   :  { %v922_v58 = vadd.f32 %v1334_v51, %v857_v54  ;;  %v860_v59 = vadd.f32 %v1297_v55, %v1167_v46 }
  0xfe   :  { %v925_v60 = vadd.f32 %v1337_v57, %v860_v59  ;;  %v1298_v61 = vpop.f32.mrb[4].mxu0 }
  0xff   :  { %v1338_v62 = vpop.f32.mrb[4].mxu1  ;;  %v1299_v63 = vpop.f32.mrb[5].mxu0 }
 0x100   :  { %v1300_v0 = vadd.f32 %v1299_v63, %v1298_v61  ;;  %v1339_v1 = vpop.f32.mrb[5].mxu1  ;;  %v1301_v2 = vpop.f32.mrb[6].mxu0 }
 0x101   :  { %v1340_v3 = vadd.f32 %v1339_v1, %v1338_v62  ;;  %v1341_v4 = vpop.f32.mrb[6].mxu1  ;;  %v1302_v5 = vpop.f32.mrb[7].mxu0 }
 0x102   :  { %v865_v6 = vadd.f32 %v1300_v0, %v1167_v46  ;;  %v1303_v7 = vadd.f32 %v1302_v5, %v1301_v2  ;;  %v1342_v8 = vpop.f32.mrb[7].mxu1 }
 0x103   :  { %v1343_v9 = vadd.f32 %v1342_v8, %v1341_v4 }
 0x104   :  { %v930_v10 = vadd.f32 %v1340_v3, %v865_v6  ;;  %v868_v11 = vadd.f32 %v1303_v7, %v1167_v46 }
 0x106   :  { %v933_v12 = vadd.f32 %v1343_v9, %v868_v11  ;;  %v1304_v13 = vpop.f32.mrb[8].mxu0 }
 0x107   :  { %v1344_v14 = vpop.f32.mrb[8].mxu1  ;;  %v1305_v15 = vpop.f32.mrb[9].mxu0 }
 0x108   :  { %v1306_v16 = vadd.f32 %v1305_v15, %v1304_v13  ;;  %v1345_v17 = vpop.f32.mrb[9].mxu1  ;;  %v1307_v18 = vpop.f32.mrb[10].mxu0 }
 0x109   :  { %v1346_v19 = vadd.f32 %v1345_v17, %v1344_v14  ;;  %v1347_v20 = vpop.f32.mrb[10].mxu1  ;;  %v1308_v21 = vpop.f32.mrb[11].mxu0 }
 0x10a   :  { %v873_v22 = vadd.f32 %v1306_v16, %v1167_v46  ;;  %v1309_v23 = vadd.f32 %v1308_v21, %v1307_v18  ;;  %v1348_v24 = vpop.f32.mrb[11].mxu1 }
 0x10b   :  { %v1349_v25 = vadd.f32 %v1348_v24, %v1347_v20 }
 0x10c   :  { %v938_v26 = vadd.f32 %v1346_v19, %v873_v22  ;;  %v876_v27 = vadd.f32 %v1309_v23, %v1167_v46 }
 0x10e   :  { %v941_v28 = vadd.f32 %v1349_v25, %v876_v27  ;;  %v1310_v29 = vpop.f32.mrb[12].mxu0 }
 0x10f   :  { %v1350_v30 = vpop.f32.mrb[12].mxu1  ;;  %v1311_v31 = vpop.f32.mrb[13].mxu0 }
 0x110   :  { %v1351_v32 = vpop.f32.mrb[13].mxu1  ;;  %v1312_v33 = vadd.f32 %v1311_v31, %v1310_v29  ;;  %v1313_v35 = vpop.f32.mrb[14].mxu0 }
 0x111   :  { %v1352_v34 = vadd.f32 %v1351_v32, %v1350_v30  ;;  %v1353_v36 = vpop.f32.mrb[14].mxu1  ;;  %v1314_v37 = vpop.f32.mrb[15].mxu0 }
 0x112   :  { %v1354_v38 = vpop.f32.mrb[15].mxu1  ;;  %v881_v39 = vadd.f32 %v1312_v33, %v1167_v46  ;;  %v1315_v40 = vadd.f32 %v1314_v37, %v1313_v35 }
 0x113   :  { %v1355_v41 = vadd.f32 %v1354_v38, %v1353_v36 }
 0x114   :  { %v946_v42 = vadd.f32 %v1352_v34, %v881_v39  ;;  %v884_v43 = vadd.f32 %v1315_v40, %v1167_v46 }
 0x116   :  { %v949_v44 = vadd.f32 %v1355_v41, %v884_v43  ;;  %v1372_v45 = vpop.f32.mrb[16].mxu0 }
 0x117   :  { %v1373_v47 = vpop.f32.mrb[17].mxu0  ;;  %v1412_v48 = vpop.f32.mrb[16].mxu1 }
 0x118   :  { %v1374_v49 = vadd.f32 %v1373_v47, %v1372_v45  ;;  %v1375_v50 = vpop.f32.mrb[18].mxu0  ;;  %v1413_v51 = vpop.f32.mrb[17].mxu1 }
 0x119   :  { %v1376_v52 = vpop.f32.mrb[19].mxu0  ;;  %v1414_v54 = vadd.f32 %v1413_v51, %v1412_v48  ;;  %v1415_v55 = vpop.f32.mrb[18].mxu1 }
 0x11a   :  { %v987_v53 = vadd.f32 %v1374_v49, %v922_v58  ;;  %v1377_v56 = vadd.f32 %v1376_v52, %v1375_v50  ;;  %v1416_v57 = vpop.f32.mrb[19].mxu1 }
 0x11b   :  { %v1417_v61 = vadd.f32 %v1416_v57, %v1415_v55 }
 0x11c   :  { %v990_v59 = vadd.f32 %v1377_v56, %v925_v60  ;;  %v1052_v62 = vadd.f32 %v1414_v54, %v987_v53 }
 0x11e   :  { %v1378_v63 = vpop.f32.mrb[20].mxu0  ;;  %v1959_v0 = vadd.f32 %v1417_v61, %v990_v59 }
 0x11f   :  { %v1379_v46 = vpop.f32.mrb[21].mxu0  ;;  %v1418_v1 = vpop.f32.mrb[20].mxu1 }
 0x120   :  { %v1380_v2 = vadd.f32 %v1379_v46, %v1378_v63  ;;  %v1381_v3 = vpop.f32.mrb[22].mxu0  ;;  %v1419_v4 = vpop.f32.mrb[21].mxu1 }
 0x121   :  { %v1382_v5 = vpop.f32.mrb[23].mxu0  ;;  %v1420_v7 = vadd.f32 %v1419_v4, %v1418_v1  ;;  %v1421_v8 = vpop.f32.mrb[22].mxu1 }
 0x122   :  { %v995_v6 = vadd.f32 %v1380_v2, %v930_v10  ;;  %v1383_v58 = vadd.f32 %v1382_v5, %v1381_v3  ;;  %v1422_v9 = vpop.f32.mrb[23].mxu1 }
 0x123   :  { %v1423_v13 = vadd.f32 %v1422_v9, %v1421_v8 }
 0x124   :  { %v998_v11 = vadd.f32 %v1383_v58, %v933_v12  ;;  %v1060_v14 = vadd.f32 %v1420_v7, %v995_v6 }
 0x126   :  { %v1384_v60 = vpop.f32.mrb[24].mxu0  ;;  %v1063_v15 = vadd.f32 %v1423_v13, %v998_v11 }
 0x127   :  { %v1385_v16 = vpop.f32.mrb[25].mxu0  ;;  %v1424_v17 = vpop.f32.mrb[24].mxu1 }
 0x128   :  { %v1386_v18 = vadd.f32 %v1385_v16, %v1384_v60  ;;  %v1387_v19 = vpop.f32.mrb[26].mxu0  ;;  %v1425_v20 = vpop.f32.mrb[25].mxu1 }
 0x129   :  { %v1388_v21 = vpop.f32.mrb[27].mxu0  ;;  %v1426_v23 = vadd.f32 %v1425_v20, %v1424_v17  ;;  %v1427_v24 = vpop.f32.mrb[26].mxu1 }
 0x12a   :  { %v1003_v22 = vadd.f32 %v1386_v18, %v938_v26  ;;  %v1389_v25 = vadd.f32 %v1388_v21, %v1387_v19  ;;  %v1428_v10 = vpop.f32.mrb[27].mxu1 }
 0x12b   :  { %v1429_v29 = vadd.f32 %v1428_v10, %v1427_v24 }
 0x12c   :  { %v1006_v27 = vadd.f32 %v1389_v25, %v941_v28  ;;  %v1068_v30 = vadd.f32 %v1426_v23, %v1003_v22 }
 0x12e   :  { %v1390_v31 = vpop.f32.mrb[28].mxu0  ;;  %v1071_v12 = vadd.f32 %v1429_v29, %v1006_v27 }
 0x12f   :  { %v1391_v32 = vpop.f32.mrb[29].mxu0  ;;  %v1430_v33 = vpop.f32.mrb[28].mxu1 }
 0x130   :  { %v1392_v34 = vadd.f32 %v1391_v32, %v1390_v31  ;;  %v1393_v35 = vpop.f32.mrb[30].mxu0  ;;  %v1431_v36 = vpop.f32.mrb[29].mxu1 }
 0x131   :  { %v1394_v37 = vpop.f32.mrb[31].mxu0  ;;  %v1432_v39 = vadd.f32 %v1431_v36, %v1430_v33  ;;  %v1433_v40 = vpop.f32.mrb[30].mxu1 }
 0x132   :  { %v1011_v38 = vadd.f32 %v1392_v34, %v946_v42  ;;  %v1395_v41 = vadd.f32 %v1394_v37, %v1393_v35  ;;  %v1434_v26 = vpop.f32.mrb[31].mxu1 }
 0x133   :  { %v1435_v45 = vadd.f32 %v1434_v26, %v1433_v40 }
 0x134   :  { %v1014_v43 = vadd.f32 %v1395_v41, %v949_v44  ;;  %v1076_v47 = vadd.f32 %v1432_v39, %v1011_v38 }
 0x136   :  { %v1079_v48 = vadd.f32 %v1435_v45, %v1014_v43 }
 0x137   :  { %v1466_v28 = vpop.f32.mrb[32].mxu0 }
 0x138   :  { %v1125_v49 = vadd.f32 %v1466_v28, %v1060_v14  ;;  %v1470_v50 = vpop.f32.mrb[32].mxu1  ;;  %v1116_v51 = vpop.f32.mrb[33].mxu0 }
 0x139   :  { %v1141_v52 = vadd.f32 %v1470_v50, %v1076_v47  ;;  %v1117_v53 = vadd.f32 %v1116_v51, %v1052_v62  ;;  %v1132_v54 = vpop.f32.mrb[33].mxu1  ;;  %v1467_v55 = vpop.f32.mrb[34].mxu0 }
 0x13a   :  { %v1149_v56 = vmax.f32 %v1125_v49, 0.0  ;;  %v1133_v57 = vadd.f32 %v1132_v54, %v1068_v30  ;;  %v1128_v59 = vadd.f32 %v1467_v55, %v1063_v15  ;;  %v1471_v42 = vpop.f32.mrb[34].mxu1  ;;  %v1119_v61 = vpop.f32.mrb[35].mxu0 }
 0x13b   :  { %v1153_v63 = vmax.f32 %v1141_v52, 0.0  ;;  %v1147_v46 = vmax.f32 %v1117_v53, 0.0  ;;  %v1144_v1 = vadd.f32 %v1471_v42, %v1079_v48  ;;  %v1120_v44 = vadd.f32 %v1119_v61, %v1959_v0  ;;  %v1135_v2 = vpop.f32.mrb[35].mxu1 }
 0x13c   :  { %1157 = vst [vmem:[%s1989_s3 + $0x10] sm:$0xff] %v1149_v56  ;;  %v1151_v3 = vmax.f32 %v1133_v57, 0.0  ;;  %v1150_v4 = vmax.f32 %v1128_v59, 0.0  ;;  %v1136_v62 = vadd.f32 %v1135_v2, %v1071_v12 }
 0x13d   :  { %1161 = vst [vmem:[%s1989_s3 + $0x30] sm:$0xff] %v1153_v63  ;;  %1155 = vst [vmem:[%s1989_s3] sm:$0xff] %v1147_v46  ;;  %v1154_v5 = vmax.f32 %v1144_v1, 0.0  ;;  %v1148_v6 = vmax.f32 %v1120_v44, 0.0 }
 0x13e   :  { %1159 = vst [vmem:[%s1989_s3 + $0x20] sm:$0xff] %v1151_v3  ;;  %1158 = vst [vmem:[%s1989_s3 + $0x18] sm:$0xff] %v1150_v4  ;;  %v1152_v0 = vmax.f32 %v1136_v62, 0.0 }
 0x13f   :  { %1162 = vst [vmem:[%s1989_s3 + $0x38] sm:$0xff] %v1154_v5  ;;  %1156 = vst [vmem:[%s1989_s3 + $0x8] sm:$0xff] %v1148_v6 }
 0x140   :  { %1160 = vst [vmem:[%s1989_s3 + $0x28] sm:$0xff] %v1152_v0 }

// kernel: lpips_forward.7
= control target key start
LH: loop header
LB: loop body
LE: loop exit
PB: predicated region body
PF: predicated region fallthrough
CT: control target
= control target key end

     0   :  { %s2478_s24 = smov 0   ;;  %s3977_s0 = inlined_call_operand.vmem [shape: f32[2,256,128], index: 0, kind: input, shape index: {}]   ;;  %s3978_s1 = inlined_call_operand.vmem [shape: f32[2,256,128], index: 1, kind: input, shape index: {}]   ;;  %s3979_s2 = inlined_call_operand.vmem [shape: f32[2,64,128], index: 2, kind: input, shape index: {}]   ;;  %s3980_s3 = inlined_call_operand.vmem [shape: f32[2,64,128], index: 3, kind: input, shape index: {}]   ;;  %s3981_s4 = inlined_call_operand.vmem [shape: f32[2,16,128], index: 4, kind: input, shape index: {}]   ;;  %s3982_s5 = inlined_call_operand.vmem [shape: f32[2,16,128], index: 5, kind: input, shape index: {}]   ;;  %s3983_s6 = inlined_call_operand.vmem [shape: f32[3,128], index: 6, kind: input, shape index: {}]   ;;  %s3984_s7 = inlined_call_operand.vmem [shape: f32[2,8,128], index: 7, kind: output, shape index: {}]  }
   0x1 LB: > { %s1976_s25 = sadd.s32 4294967295, %s2436_s24   ;;  %p1980_p0 = scmp.ge.s32.totalorder %s2436_s24, 1  ;;  %s2436_s24 = sphi %s2478_s24, %s17_s24  }
   0x2   : > { %p287_p1 = scmp.lt.s32.totalorder %s2436_s24, 3 }
   0x4   : > { %p288_p2 = pnand %p1980_p0, %p287_p1 }
   0x5   : > { %p343_p3 = scmp.lt.s32.totalorder (!%p288_p2), %s1976_s25, 1 }
   0x6   : > { %291 = sbr.rel (%p288_p2) target bundleno = 593 (0x251), region = 48 }
   0xd   : > { %s3991_s25 = smov (!%p343_p3, %s1976_s25), 1 }
   0xe   : > { %s1999_s26 = sshll.u32 %s3991_s25, 8  ;;  %s2001_s10 = sshll.u32 %s3991_s25, 6 }
   0xf   : > { %s2492_s29 = scalar_lea.vmem %s3977_s0, %s1999_s26  ;;  %s2513_s9 = scalar_lea.vmem %s3978_s1, %s1999_s26 }
  0x10   : > { %v380_v0 = vld [vmem:[%s2492_s29 + $0x10] sm:$0xff]  ;;  %v2496_v1 = vld [vmem:[%s2492_s29] sm:$0xff]  ;;  %v381_v2 = vld [vmem:[%s2492_s29 + $0x18] sm:$0xff]  ;;  %s2559_s13 = scalar_lea.vmem %s3979_s2, %s2001_s10  ;;  %s2566_s16 = scalar_lea.vmem %s3980_s3, %s2001_s10 }
  0x11   : > { %v396_v3 = vmul.f32 %v380_v0, %v380_v0  ;;  %v394_v4 = vmul.f32 %v2496_v1, %v2496_v1  ;;  %v2502_v5 = vld [vmem:[%s2492_s29 + $0x8] sm:$0xff]  ;;  %v397_v6 = vmul.f32 %v381_v2, %v381_v2  ;;  %v382_v9 = vld [vmem:[%s2492_s29 + $0x20] sm:$0xff]  ;;  %v385_v12 = vld [vmem:[%s2492_s29 + $0x38] sm:$0xff]  ;;  %s2003_s17 = sshll.u32 %s3991_s25, 4  ;;  %s1993_s11 = sshll.u32 %s3991_s25, 3 }
  0x12   : > { %v395_v7 = vmul.f32 %v2502_v5, %v2502_v5  ;;  %v383_v8 = vld [vmem:[%s2492_s29 + $0x28] sm:$0xff]  ;;  %v398_v11 = vmul.f32 %v382_v9, %v382_v9  ;;  %v384_v13 = vld [vmem:[%s2492_s29 + $0x30] sm:$0xff]  ;;  %v401_v14 = vmul.f32 %v385_v12, %v385_v12  ;;  %v2519_v17 = vld [vmem:[%s2513_s9] sm:$0xff]  ;;  %s2625_s20 = scalar_lea.vmem %s3981_s4, %s2003_s17  ;;  %s2639_s23 = scalar_lea.vmem %s3982_s5, %s2003_s17 }
  0x13   : > { %406 = vadd.xlane.f32.xlu1 %v396_v3  ;;  %402 = vadd.xlane.f32.xlu0 %v394_v4  ;;  %v399_v10 = vmul.f32 %v383_v8, %v383_v8  ;;  %v400_v15 = vmul.f32 %v384_v13, %v384_v13  ;;  %v2516_v16 = vld [vmem:[%s2513_s9 + $0x8] sm:$0xff]  ;;  %v490_v19 = vmul.f32 %v2519_v17, %v2519_v17  ;;  %v389_v20 = vld [vmem:[%s2513_s9 + $0x18] sm:$0xff]  ;;  %v388_v21 = vld [vmem:[%s2513_s9 + $0x10] sm:$0xff]  ;;  %s376_s14 = scalar_lea.vmem %s3984_s7, %s1993_s11 }
  0x14   : > { %v491_v18 = vmul.f32 %v2516_v16, %v2516_v16  ;;  %v493_v22 = vmul.f32 %v389_v20, %v389_v20  ;;  %v492_v23 = vmul.f32 %v388_v21, %v388_v21  ;;  %v391_v24 = vld [vmem:[%s2513_s9 + $0x28] sm:$0xff]  ;;  %v390_v25 = vld [vmem:[%s2513_s9 + $0x20] sm:$0xff]  ;;  %v393_v28 = vld [vmem:[%s2513_s9 + $0x38] sm:$0xff] }
  0x15   : > { %v495_v26 = vmul.f32 %v391_v24, %v391_v24  ;;  %v494_v27 = vmul.f32 %v390_v25, %v390_v25  ;;  %v392_v29 = vld [vmem:[%s2513_s9 + $0x30] sm:$0xff]  ;;  %v497_v30 = vmul.f32 %v393_v28, %v393_v28  ;;  %v660_v32 = vld [vmem:[%s2492_s29 + $0x40] sm:$0xff]  ;;  %v661_v33 = vld [vmem:[%s2492_s29 + $0x48] sm:$0xff] }
  0x16   : > { %v496_v31 = vmul.f32 %v392_v29, %v392_v29  ;;  %v676_v34 = vmul.f32 %v660_v32, %v660_v32  ;;  %v677_v35 = vmul.f32 %v661_v33, %v661_v33  ;;  %v668_v36 = vld [vmem:[%s2513_s9 + $0x40] sm:$0xff]  ;;  %v669_v37 = vld [vmem:[%s2513_s9 + $0x48] sm:$0xff]  ;;  %v662_v40 = vld [vmem:[%s2492_s29 + $0x50] sm:$0xff] }
  0x17   : > { %408 = vadd.xlane.f32.xlu1 %v397_v6  ;;  %404 = vadd.xlane.f32.xlu0 %v395_v7  ;;  %v772_v38 = vmul.f32 %v668_v36, %v668_v36  ;;  %v773_v39 = vmul.f32 %v669_v37, %v669_v37  ;;  %v670_v41 = vld [vmem:[%s2513_s9 + $0x50] sm:$0xff]  ;;  %v678_v42 = vmul.f32 %v662_v40, %v662_v40  ;;  %v938_v44 = vld [vmem:[%s2492_s29 + $0x80] sm:$0xff]  ;;  %v939_v45 = vld [vmem:[%s2492_s29 + $0x88] sm:$0xff] }
  0x18   : > { %v774_v43 = vmul.f32 %v670_v41, %v670_v41  ;;  %v954_v46 = vmul.f32 %v938_v44, %v938_v44  ;;  %v955_v47 = vmul.f32 %v939_v45, %v939_v45  ;;  %v946_v48 = vld [vmem:[%s2513_s9 + $0x80] sm:$0xff]  ;;  %v947_v49 = vld [vmem:[%s2513_s9 + $0x88] sm:$0xff]  ;;  %v663_v52 = vld [vmem:[%s2492_s29 + $0x58] sm:$0xff] }
  0x19   : > { %v1050_v50 = vmul.f32 %v946_v48, %v946_v48  ;;  %v1051_v51 = vmul.f32 %v947_v49, %v947_v49  ;;  %v671_v53 = vld [vmem:[%s2513_s9 + $0x58] sm:$0xff]  ;;  %v679_v54 = vmul.f32 %v663_v52, %v663_v52  ;;  %v940_v56 = vld [vmem:[%s2492_s29 + $0x90] sm:$0xff]  ;;  %v1216_v60 = vld [vmem:[%s2492_s29 + $0xc0] sm:$0xff] }
  0x1a   : > { %v775_v55 = vmul.f32 %v671_v53, %v671_v53  ;;  %v948_v57 = vld [vmem:[%s2513_s9 + $0x90] sm:$0xff]  ;;  %v956_v58 = vmul.f32 %v940_v56, %v940_v56  ;;  %v1217_v61 = vld [vmem:[%s2492_s29 + $0xc8] sm:$0xff]  ;;  %v1232_v62 = vmul.f32 %v1216_v60, %v1216_v60  ;;  %v1224_v0 = vld [vmem:[%s2513_s9 + $0xc0] sm:$0xff] }
  0x1b   : > { %412 = vadd.xlane.f32.xlu1 %v399_v10  ;;  %410 = vadd.xlane.f32.xlu0 %v398_v11  ;;  %v1052_v59 = vmul.f32 %v948_v57, %v948_v57  ;;  %v1233_v63 = vmul.f32 %v1217_v61, %v1217_v61  ;;  %v1225_v2 = vld [vmem:[%s2513_s9 + $0xc8] sm:$0xff]  ;;  %v1328_v3 = vmul.f32 %v1224_v0, %v1224_v0  ;;  %v664_v6 = vld [vmem:[%s2492_s29 + $0x60] sm:$0xff]  ;;  %v941_v10 = vld [vmem:[%s2492_s29 + $0x98] sm:$0xff] }
  0x1c   : > { %v1329_v4 = vmul.f32 %v1225_v2, %v1225_v2  ;;  %v672_v7 = vld [vmem:[%s2513_s9 + $0x60] sm:$0xff]  ;;  %v680_v8 = vmul.f32 %v664_v6, %v664_v6  ;;  %v949_v11 = vld [vmem:[%s2513_s9 + $0x98] sm:$0xff]  ;;  %v957_v12 = vmul.f32 %v941_v10, %v941_v10  ;;  %v1498_v21 = vld [vmem:[%s2559_s13 + $0x8] sm:$0xff] }
  0x1d   : > { %v776_v9 = vmul.f32 %v672_v7, %v672_v7  ;;  %v1053_v13 = vmul.f32 %v949_v11, %v949_v11  ;;  %v1497_v20 = vld [vmem:[%s2559_s13] sm:$0xff]  ;;  %v1506_v25 = vld [vmem:[%s2566_s16 + $0x8] sm:$0xff]  ;;  %v1219_v36 = vld [vmem:[%s2492_s29 + $0xd8] sm:$0xff] }
  0x1e   : > { %v1505_v24 = vld [vmem:[%s2566_s16] sm:$0xff]  ;;  %v665_v28 = vld [vmem:[%s2492_s29 + $0x68] sm:$0xff]  ;;  %v1227_v37 = vld [vmem:[%s2513_s9 + $0xd8] sm:$0xff] }
  0x1f   : > { %416 = vadd.xlane.f32.xlu1 %v401_v14  ;;  %414 = vadd.xlane.f32.xlu0 %v400_v15  ;;  %v1218_v14 = vld [vmem:[%s2492_s29 + $0xd0] sm:$0xff]  ;;  %v673_v29 = vld [vmem:[%s2513_s9 + $0x68] sm:$0xff]  ;;  %v942_v32 = vld [vmem:[%s2492_s29 + $0xa0] sm:$0xff] }
  0x20   : > { %v1226_v15 = vld [vmem:[%s2513_s9 + $0xd0] sm:$0xff]  ;;  %v950_v33 = vld [vmem:[%s2513_s9 + $0xa0] sm:$0xff]  ;;  %v943_v48 = vld [vmem:[%s2492_s29 + $0xa8] sm:$0xff] }
  0x21   : > { %v1499_v40 = vld [vmem:[%s2559_s13 + $0x10] sm:$0xff]  ;;  %v951_v49 = vld [vmem:[%s2513_s9 + $0xa8] sm:$0xff]  ;;  %v1220_v52 = vld [vmem:[%s2492_s29 + $0xe0] sm:$0xff] }
  0x22   : > { %v1507_v41 = vld [vmem:[%s2566_s16 + $0x10] sm:$0xff]  ;;  %v1228_v53 = vld [vmem:[%s2513_s9 + $0xe0] sm:$0xff]  ;;  %v1500_v56 = vld [vmem:[%s2559_s13 + $0x18] sm:$0xff] }
  0x23   : > { %500 = vadd.xlane.f32.xlu1 %v491_v18  ;;  %498 = vadd.xlane.f32.xlu0 %v490_v19  ;;  %v1234_v18 = vmul.f32 %v1218_v14, %v1218_v14  ;;  %v1330_v19 = vmul.f32 %v1226_v15, %v1226_v15  ;;  %v666_v44 = vld [vmem:[%s2492_s29 + $0x70] sm:$0xff]  ;;  %v1508_v57 = vld [vmem:[%s2566_s16 + $0x18] sm:$0xff]  ;;  %v1221_v6 = vld [vmem:[%s2492_s29 + $0xe8] sm:$0xff] }
  0x24   : > { %v674_v45 = vld [vmem:[%s2513_s9 + $0x70] sm:$0xff]  ;;  %v667_v60 = vld [vmem:[%s2492_s29 + $0x78] sm:$0xff]  ;;  %v1229_v7 = vld [vmem:[%s2513_s9 + $0xe8] sm:$0xff] }
  0x25   : > { %v675_v61 = vld [vmem:[%s2513_s9 + $0x78] sm:$0xff]  ;;  %v944_v0 = vld [vmem:[%s2492_s29 + $0xb0] sm:$0xff]  ;;  %v1501_v10 = vld [vmem:[%s2559_s13 + $0x20] sm:$0xff] }
  0x26   : > { %v952_v2 = vld [vmem:[%s2513_s9 + $0xb0] sm:$0xff]  ;;  %v1509_v11 = vld [vmem:[%s2566_s16 + $0x20] sm:$0xff]  ;;  %v945_v14 = vld [vmem:[%s2492_s29 + $0xb8] sm:$0xff] }
  0x27   : > { %504 = vadd.xlane.f32.xlu1 %v493_v22  ;;  %502 = vadd.xlane.f32.xlu0 %v492_v23  ;;  %v1513_v22 = vmul.f32 %v1497_v20, %v1497_v20  ;;  %v1514_v23 = vmul.f32 %v1498_v21, %v1498_v21  ;;  %v953_v15 = vld [vmem:[%s2513_s9 + $0xb8] sm:$0xff]  ;;  %v1222_v20 = vld [vmem:[%s2492_s29 + $0xf0] sm:$0xff] }
  0x28   : > { %v1230_v21 = vld [vmem:[%s2513_s9 + $0xf0] sm:$0xff] }
  0x2b   : > { %508 = vadd.xlane.f32.xlu1 %v495_v26  ;;  %506 = vadd.xlane.f32.xlu0 %v494_v27  ;;  %v1609_v26 = vmul.f32 %v1505_v24, %v1505_v24  ;;  %v1610_v27 = vmul.f32 %v1506_v25, %v1506_v25  ;;  %v1502_v24 = vld [vmem:[%s2559_s13 + $0x28] sm:$0xff] }
  0x2c   : > { %v1510_v25 = vld [vmem:[%s2566_s16 + $0x28] sm:$0xff] }
  0x2f   : > { %512 = vadd.xlane.f32.xlu1 %v497_v30  ;;  %510 = vadd.xlane.f32.xlu0 %v496_v31  ;;  %v681_v30 = vmul.f32 %v665_v28, %v665_v28  ;;  %v777_v31 = vmul.f32 %v673_v29, %v673_v29 }
  0x33   : > { %684 = vadd.xlane.f32.xlu1 %v676_v34  ;;  %686 = vadd.xlane.f32.xlu0 %v677_v35  ;;  %v958_v34 = vmul.f32 %v942_v32, %v942_v32  ;;  %v1054_v35 = vmul.f32 %v950_v33, %v950_v33 }
  0x37   : > { %780 = vadd.xlane.f32.xlu1 %v772_v38  ;;  %782 = vadd.xlane.f32.xlu0 %v773_v39  ;;  %v1235_v38 = vmul.f32 %v1219_v36, %v1219_v36  ;;  %v1331_v39 = vmul.f32 %v1227_v37, %v1227_v37  ;;  %v1503_v36 = vld [vmem:[%s2559_s13 + $0x30] sm:$0xff] }
  0x38   : > { %v1511_v37 = vld [vmem:[%s2566_s16 + $0x30] sm:$0xff] }
  0x3b   : > { %688 = vadd.xlane.f32.xlu1 %v678_v42  ;;  %784 = vadd.xlane.f32.xlu0 %v774_v43  ;;  %v1515_v42 = vmul.f32 %v1499_v40, %v1499_v40  ;;  %v1611_v43 = vmul.f32 %v1507_v41, %v1507_v41 }
  0x3f   : > { %962 = vadd.xlane.f32.xlu1 %v954_v46  ;;  %964 = vadd.xlane.f32.xlu0 %v955_v47  ;;  %v682_v46 = vmul.f32 %v666_v44, %v666_v44  ;;  %v778_v47 = vmul.f32 %v674_v45, %v674_v45 }
  0x43   : > { %1058 = vadd.xlane.f32.xlu1 %v1050_v50  ;;  %1060 = vadd.xlane.f32.xlu0 %v1051_v51  ;;  %v959_v50 = vmul.f32 %v943_v48, %v943_v48  ;;  %v1055_v51 = vmul.f32 %v951_v49, %v951_v49  ;;  %v1782_v49 = vld [vmem:[%s2625_s20] sm:$0xff] }
  0x47   : > { %690 = vadd.xlane.f32.xlu1 %v679_v54  ;;  %786 = vadd.xlane.f32.xlu0 %v775_v55  ;;  %v1236_v54 = vmul.f32 %v1220_v52, %v1220_v52  ;;  %v1332_v55 = vmul.f32 %v1228_v53, %v1228_v53  ;;  %v1786_v53 = vmul.f32 %v1782_v49, %v1782_v49 }
  0x4b   : > { %966 = vadd.xlane.f32.xlu1 %v956_v58  ;;  %1062 = vadd.xlane.f32.xlu0 %v1052_v59  ;;  %v1516_v58 = vmul.f32 %v1500_v56, %v1500_v56  ;;  %v1612_v59 = vmul.f32 %v1508_v57, %v1508_v57  ;;  %v1784_v57 = vld [vmem:[%s2639_s23] sm:$0xff] }
  0x4f   : > { %1240 = vadd.xlane.f32.xlu1 %v1232_v62  ;;  %1242 = vadd.xlane.f32.xlu0 %v1233_v63  ;;  %v683_v62 = vmul.f32 %v667_v60, %v667_v60  ;;  %v779_v63 = vmul.f32 %v675_v61, %v675_v61 }
  0x53   : > { %1336 = vadd.xlane.f32.xlu1 %v1328_v3  ;;  %1338 = vadd.xlane.f32.xlu0 %v1329_v4  ;;  %v960_v3 = vmul.f32 %v944_v0, %v944_v0  ;;  %v1056_v4 = vmul.f32 %v952_v2, %v952_v2 }
  0x57   : > { %692 = vadd.xlane.f32.xlu1 %v680_v8  ;;  %788 = vadd.xlane.f32.xlu0 %v776_v9  ;;  %v1237_v8 = vmul.f32 %v1221_v6, %v1221_v6  ;;  %v1333_v9 = vmul.f32 %v1229_v7, %v1229_v7 }
  0x5b   : > { %968 = vadd.xlane.f32.xlu1 %v957_v12  ;;  %1064 = vadd.xlane.f32.xlu0 %v1053_v13  ;;  %v1517_v12 = vmul.f32 %v1501_v10, %v1501_v10  ;;  %v1613_v13 = vmul.f32 %v1509_v11, %v1509_v11 }
  0x5f   : > { %1244 = vadd.xlane.f32.xlu1 %v1234_v18  ;;  %1340 = vadd.xlane.f32.xlu0 %v1330_v19  ;;  %v961_v18 = vmul.f32 %v945_v14, %v945_v14  ;;  %v1057_v19 = vmul.f32 %v953_v15, %v953_v15 }
  0x63   : > { %1521 = vadd.xlane.f32.xlu1 %v1513_v22  ;;  %1523 = vadd.xlane.f32.xlu0 %v1514_v23  ;;  %v1238_v22 = vmul.f32 %v1222_v20, %v1222_v20  ;;  %v1334_v23 = vmul.f32 %v1230_v21, %v1230_v21 }
  0x67   : > { %1617 = vadd.xlane.f32.xlu1 %v1609_v26  ;;  %1619 = vadd.xlane.f32.xlu0 %v1610_v27  ;;  %v1518_v26 = vmul.f32 %v1502_v24, %v1502_v24  ;;  %v1614_v27 = vmul.f32 %v1510_v25, %v1510_v25 }
  0x6b   : > { %694 = vadd.xlane.f32.xlu1 %v681_v30  ;;  %790 = vadd.xlane.f32.xlu0 %v777_v31  ;;  %v1223_v30 = vld [vmem:[%s2492_s29 + $0xf8] sm:$0xff] }
  0x6c   : > { %v1231_v31 = vld [vmem:[%s2513_s9 + $0xf8] sm:$0xff]  ;;  %v1239_v32 = vmul.f32 %v1223_v30, %v1223_v30 }
  0x6d   : > { %v1335_v33 = vmul.f32 %v1231_v31, %v1231_v31 }
  0x6f   : > { %970 = vadd.xlane.f32.xlu1 %v958_v34  ;;  %1066 = vadd.xlane.f32.xlu0 %v1054_v35 }
  0x73   : > { %1246 = vadd.xlane.f32.xlu1 %v1235_v38  ;;  %1342 = vadd.xlane.f32.xlu0 %v1331_v39  ;;  %v1519_v38 = vmul.f32 %v1503_v36, %v1503_v36  ;;  %v1615_v39 = vmul.f32 %v1511_v37, %v1511_v37 }
  0x77   : > { %1525 = vadd.xlane.f32.xlu1 %v1515_v42  ;;  %1621 = vadd.xlane.f32.xlu0 %v1611_v43  ;;  %v1504_v42 = vld [vmem:[%s2559_s13 + $0x38] sm:$0xff] }
  0x78   : > { %v1512_v43 = vld [vmem:[%s2566_s16 + $0x38] sm:$0xff]  ;;  %v1520_v45 = vmul.f32 %v1504_v42, %v1504_v42 }
  0x7b   : > { %696 = vadd.xlane.f32.xlu1 %v682_v46  ;;  %792 = vadd.xlane.f32.xlu0 %v778_v47  ;;  %v1616_v46 = vmul.f32 %v1512_v43, %v1512_v43 }
  0x7f   : > { %972 = vadd.xlane.f32.xlu1 %v959_v50  ;;  %1068 = vadd.xlane.f32.xlu0 %v1055_v51  ;;  %v1783_v50 = vld [vmem:[%s2625_s20 + $0x8] sm:$0xff] }
  0x83   : > { %1248 = vadd.xlane.f32.xlu1 %v1236_v54  ;;  %1344 = vadd.xlane.f32.xlu0 %v1332_v55  ;;  %v1787_v54 = vmul.f32 %v1783_v50, %v1783_v50 }
  0x87   : > { %1527 = vadd.xlane.f32.xlu1 %v1516_v58  ;;  %1623 = vadd.xlane.f32.xlu0 %v1612_v59  ;;  %v1785_v58 = vld [vmem:[%s2639_s23 + $0x8] sm:$0xff] }
  0x88   : > { %v1811_v0 = vmul.f32 %v1785_v58, %v1785_v58 }
  0x8b   : > { %698 = vadd.xlane.f32.xlu1 %v683_v62  ;;  %794 = vadd.xlane.f32.xlu0 %v779_v63  ;;  %v1810_v63 = vmul.f32 %v1784_v57, %v1784_v57 }
  0x8f   : > { %974 = vadd.xlane.f32.xlu1 %v960_v3  ;;  %1070 = vadd.xlane.f32.xlu0 %v1056_v4 }
  0x93   : > { %1250 = vadd.xlane.f32.xlu1 %v1237_v8  ;;  %1346 = vadd.xlane.f32.xlu0 %v1333_v9 }
  0x97   : > { %1529 = vadd.xlane.f32.xlu1 %v1517_v12  ;;  %1625 = vadd.xlane.f32.xlu0 %v1613_v13 }
  0x9b   : > { %976 = vadd.xlane.f32.xlu1 %v961_v18  ;;  %1072 = vadd.xlane.f32.xlu0 %v1057_v19 }
  0x9f   : > { %1252 = vadd.xlane.f32.xlu1 %v1238_v22  ;;  %1348 = vadd.xlane.f32.xlu0 %v1334_v23 }
  0xa0   : > { %v2600_v28 = vpop.xlane.xlu1 %406  ;;  %v2602_v29 = vpop.xlane.xlu0 %402 }
  0xa1   : > { %2013 = vrsqrt.f32 %v2600_v28  ;;  %vm434_vm0 = vcmp.eq.f32.partialorder %v2600_v28, inf  ;;  %v437_v61 = vand.u32 2147483648, %v2600_v28  ;;  %vm436_vm1 = vcmp.eq.f32.partialorder %v2600_v28, 0.0 }
  0xa2   : > { %2015 = vrsqrt.f32 %v2602_v29  ;;  %vm420_vm2 = vcmp.eq.f32.partialorder %v2602_v29, inf  ;;  %v423_v9 = vand.u32 2147483648, %v2602_v29  ;;  %vm422_vm4 = vcmp.eq.f32.partialorder %v2602_v29, 0.0 }
  0xa3   : > { %1531 = vadd.xlane.f32.xlu1 %v1518_v26  ;;  %1627 = vadd.xlane.f32.xlu0 %v1614_v27 }
  0xa4   : > { %v2608_v34 = vpop.xlane.xlu1 %408  ;;  %v2610_v35 = vpop.xlane.xlu0 %404 }
  0xa5   : > { %vm427_vm5 = vcmp.eq.f32.partialorder %v2610_v35, inf  ;;  %vm441_vm6 = vcmp.eq.f32.partialorder %v2608_v34, inf  ;;  %vm429_vm7 = vcmp.eq.f32.partialorder %v2610_v35, 0.0  ;;  %v430_v27 = vand.u32 2147483648, %v2610_v35 }
  0xa6   : > { %vm443_vm11 = vcmp.eq.f32.partialorder %v2608_v34, 0.0  ;;  %v444_v57 = vand.u32 2147483648, %v2608_v34 }
  0xa7   : > { %1254 = vadd.xlane.f32.xlu1 %v1239_v32  ;;  %1350 = vadd.xlane.f32.xlu0 %v1335_v33 }
  0xa8   : > { %v2615_v40 = vpop.xlane.xlu1 %412  ;;  %v2617_v41 = vpop.xlane.xlu0 %410 }
  0xa9   : > { %2017 = vrsqrt.f32 %v2615_v40  ;;  %vm455_vm3 = vcmp.eq.f32.partialorder %v2615_v40, inf  ;;  %v458_v13 = vand.u32 2147483648, %v2615_v40  ;;  %vm457_vm8 = vcmp.eq.f32.partialorder %v2615_v40, 0.0 }
  0xaa   : > { %2019 = vrsqrt.f32 %v2610_v35 }
  0xab   : > { %v2014_v44 = vpop.eup %2013  ;;  %1533 = vadd.xlane.f32.xlu1 %v1519_v38  ;;  %1629 = vadd.xlane.f32.xlu0 %v1615_v39 }
  0xac   : > { %v2628_v47 = vpop.xlane.xlu1 %416  ;;  %v2630_v48 = vpop.xlane.xlu0 %414  ;;  %v433_v51 = vmul.f32 %v2014_v44, %v2600_v28 }
  0xad   : > { %2021 = vrsqrt.f32 %v2628_v47  ;;  %v2016_v52 = vpop.eup %2015  ;;  %vm469_vm9 = vcmp.eq.f32.partialorder %v2628_v47, inf  ;;  %v472_v25 = vand.u32 2147483648, %v2628_v47  ;;  %vm471_vm10 = vcmp.eq.f32.partialorder %v2628_v47, 0.0 }
  0xae   : > { %2023 = vrsqrt.f32 %v2630_v48  ;;  %v435_v59 = vsel %vm434_vm0, %v2600_v28, %v433_v51  ;;  %v419_v60 = vmul.f32 %v2016_v52, %v2602_v29  ;;  %vm462_vm13 = vcmp.eq.f32.partialorder %v2630_v48, inf }
  0xaf   : > { %1535 = vadd.xlane.f32.xlu1 %v1520_v45  ;;  %1631 = vadd.xlane.f32.xlu0 %v1616_v46  ;;  %2025 = vrsqrt.f32 %v2608_v34  ;;  %v438_v6 = vsel %vm436_vm1, %v437_v61, %v435_v59  ;;  %v465_v46 = vand.u32 2147483648, %v2630_v48  ;;  %vm464_vm0 = vcmp.eq.f32.partialorder %v2630_v48, 0.0 }
  0xb0   : > { %v2644_v55 = vpop.xlane.xlu1 %500  ;;  %v2646_v56 = vpop.xlane.xlu0 %498  ;;  %v421_v7 = vsel %vm420_vm2, %v2602_v29, %v419_v60  ;;  %v476_v12 = vadd.f32 1e-10, %v438_v6 }
  0xb1   : > { %2027 = vrsqrt.f32 %v2644_v55  ;;  %v424_v19 = vsel %vm422_vm4, %v423_v9, %v421_v7  ;;  %vm523_vm12 = vcmp.eq.f32.partialorder %v2644_v55, inf  ;;  %v526_v44 = vand.u32 2147483648, %v2644_v55 }
  0xb2   : > { %2029 = vrsqrt.f32 %v2646_v56  ;;  %v474_v28 = vadd.f32 1e-10, %v424_v19  ;;  %vm525_vm14 = vcmp.eq.f32.partialorder %v2644_v55, 0.0  ;;  %vm516_vm15 = vcmp.eq.f32.partialorder %v2646_v56, inf }
  0xb3   : > { %v2018_v62 = vpop.eup %2017  ;;  %1788 = vadd.xlane.f32.xlu1 %v1786_v53  ;;  %1790 = vadd.xlane.f32.xlu0 %v1787_v54  ;;  %2031 = vrsqrt.f32 %v2617_v41  ;;  %vm518_vm1 = vcmp.eq.f32.partialorder %v2646_v56, 0.0 }
  0xb4   : > { %v454_v2 = vmul.f32 %v2018_v62, %v2615_v40  ;;  %v2658_v3 = vpop.xlane.xlu1 %504  ;;  %v2660_v4 = vpop.xlane.xlu0 %502 }
  0xb5   : > { %v2020_v8 = vpop.eup %2019  ;;  %vm537_vm2 = vcmp.eq.f32.partialorder %v2658_v3, inf }
  0xb6   : > { %v456_v11 = vsel %vm455_vm3, %v2615_v40, %v454_v2  ;;  %v426_v22 = vmul.f32 %v2020_v8, %v2610_v35  ;;  %vm530_vm3 = vcmp.eq.f32.partialorder %v2660_v4, inf }
  0xb7   : > { %v2022_v10 = vpop.eup %2021  ;;  %1812 = vadd.xlane.f32.xlu1 %v1810_v63  ;;  %1814 = vadd.xlane.f32.xlu0 %v1811_v0  ;;  %v459_v23 = vsel %vm457_vm8, %v458_v13, %v456_v11  ;;  %vm532_vm8 = vcmp.eq.f32.partialorder %v2660_v4, 0.0 }
  0xb8   : > { %v468_v14 = vmul.f32 %v2022_v10, %v2628_v47  ;;  %v2671_v15 = vpop.xlane.xlu1 %508  ;;  %v2673_v18 = vpop.xlane.xlu0 %506  ;;  %v479_v38 = vadd.f32 1e-10, %v459_v23  ;;  %v428_v39 = vsel %vm427_vm5, %v2610_v35, %v426_v22  ;;  %v519_v35 = vand.u32 2147483648, %v2646_v56 }
  0xb9   : > { %v2024_v20 = vpop.eup %2023  ;;  %2033 = vrsqrt.f32 %v2671_v15  ;;  %v431_v50 = vsel %vm429_vm7, %v430_v27, %v428_v39  ;;  %v533_v10 = vand.u32 2147483648, %v2660_v4  ;;  %vm551_vm4 = vcmp.eq.f32.partialorder %v2671_v15, inf }
  0xba   : > { %v2026_v21 = vpop.eup %2025  ;;  %v470_v24 = vsel %vm469_vm9, %v2628_v47, %v468_v14  ;;  %2035 = vrcp.f32 %v476_v12  ;;  %v461_v31 = vmul.f32 %v2024_v20, %v2630_v48  ;;  %vm553_vm5 = vcmp.eq.f32.partialorder %v2671_v15, 0.0 }
  0xbb   : > { %v2028_v26 = vpop.eup %2027  ;;  %v473_v30 = vsel %vm471_vm10, %v472_v25, %v470_v24  ;;  %2037 = vrsqrt.f32 %v2658_v3  ;;  %v440_v37 = vmul.f32 %v2026_v21, %v2608_v34  ;;  %v554_v20 = vand.u32 2147483648, %v2671_v15 }
  0xbc   : > { %v2030_v29 = vpop.eup %2029  ;;  %v522_v32 = vmul.f32 %v2028_v26, %v2644_v55  ;;  %v2689_v33 = vpop.xlane.xlu1 %512  ;;  %v481_v43 = vadd.f32 1e-10, %v473_v30  ;;  %v463_v45 = vsel %vm462_vm13, %v2630_v48, %v461_v31  ;;  %v475_v48 = vadd.f32 1e-10, %v431_v50 }
  0xbd   : > { %v2691_v36 = vpop.xlane.xlu0 %510  ;;  %2039 = vrsqrt.f32 %v2689_v33  ;;  %v515_v42 = vmul.f32 %v2030_v29, %v2646_v56  ;;  %v2032_v52 = vpop.eup %2031  ;;  %v442_v53 = vsel %vm441_vm6, %v2608_v34, %v440_v37  ;;  %v466_v58 = vsel %vm464_vm0, %v465_v46, %v463_v45 }
  0xbe   : > { %v524_v40 = vsel %vm523_vm12, %v2644_v55, %v522_v32  ;;  %2041 = vrsqrt.f32 %v2660_v4  ;;  %v2732_v63 = vmul.f32 %v2032_v52, %v2617_v41  ;;  %v2737_v2 = vsel %vm443_vm11, %v444_v57, %v442_v53 }
  0xbf   : > { %2043 = vrcp.f32 %v474_v28  ;;  %v527_v51 = vsel %vm525_vm14, %v526_v44, %v524_v40  ;;  %v517_v54 = vsel %vm516_vm15, %v2646_v56, %v515_v42  ;;  %v480_v6 = vadd.f32 1e-10, %v466_v58 }
  0xc0   : > { %2045 = vrsqrt.f32 %v2691_v36  ;;  %v2708_v47 = vpop.xlane.xlu1 %684  ;;  %v571_v61 = vadd.f32 1e-10, %v527_v51  ;;  %v520_v0 = vsel %vm518_vm1, %v519_v35, %v517_v54  ;;  %vm565_vm6 = vcmp.eq.f32.partialorder %v2689_v33, inf }
  0xc1   : > { %v2710_v49 = vpop.xlane.xlu0 %686  ;;  %2047 = vrcp.f32 %v479_v38  ;;  %v570_v14 = vadd.f32 1e-10, %v520_v0  ;;  %vm567_vm7 = vcmp.eq.f32.partialorder %v2689_v33, 0.0  ;;  %v568_v26 = vand.u32 2147483648, %v2689_v33 }
  0xc2   : > { %2049 = vrsqrt.f32 %v2673_v18  ;;  %vm558_vm9 = vcmp.eq.f32.partialorder %v2691_v36, inf  ;;  %vm560_vm10 = vcmp.eq.f32.partialorder %v2691_v36, 0.0  ;;  %v561_v39 = vand.u32 2147483648, %v2691_v36 }
  0xc3   : > { %v2034_v55 = vpop.eup %2033  ;;  %2051 = vrcp.f32 %v481_v43  ;;  %vm702_vm11 = vcmp.eq.f32.partialorder %v2708_v47, inf  ;;  %v705_v45 = vand.u32 2147483648, %v2708_v47  ;;  %vm709_vm12 = vcmp.eq.f32.partialorder %v2710_v49, inf }
  0xc4   : > { %2053 = vrsqrt.f32 %v2708_v47  ;;  %v2725_v59 = vpop.xlane.xlu1 %780  ;;  %v2729_v62 = vpop.eup %2035  ;;  %v550_v7 = vmul.f32 %v2034_v55, %v2671_v15  ;;  %vm704_vm13 = vcmp.eq.f32.partialorder %v2708_v47, 0.0 }
  0xc5   : > { %v2727_v60 = vpop.xlane.xlu0 %782  ;;  %2055 = vrsqrt.f32 %v2710_v49  ;;  %v2038_v56 = vpop.eup %2037  ;;  %vm798_vm14 = vcmp.eq.f32.partialorder %v2725_v59, inf  ;;  %v801_v58 = vand.u32 2147483648, %v2725_v59  ;;  %vm800_vm1 = vcmp.eq.f32.partialorder %v2725_v59, 0.0 }
  0xc6   : > { %2057 = vrsqrt.f32 %v2725_v59  ;;  %v536_v22 = vmul.f32 %v2038_v56, %v2658_v3  ;;  %v552_v23 = vsel %vm551_vm4, %v2671_v15, %v550_v7  ;;  %vm805_vm15 = vcmp.eq.f32.partialorder %v2727_v60, inf }
  0xc7   : > { %v2040_v8 = vpop.eup %2039  ;;  %2059 = vrcp.f32 %v571_v61  ;;  %v555_v37 = vsel %vm553_vm5, %v554_v20, %v552_v23  ;;  %v808_v56 = vand.u32 2147483648, %v2727_v60 }
  0xc8   : > { %v2042_v11 = vpop.eup %2041  ;;  %v564_v34 = vmul.f32 %v2040_v8, %v2689_v33  ;;  %v2747_v12 = vpop.xlane.xlu1 %688  ;;  %2061 = vrcp.f32 %v475_v48  ;;  %v2784_v42 = vsel %vm537_vm2, %v2658_v3, %v536_v22  ;;  %v575_v50 = vadd.f32 1e-10, %v555_v37 }
  0xc9   : > { %v2749_v13 = vpop.xlane.xlu0 %784  ;;  %v2044_v19 = vpop.eup %2043  ;;  %2063 = vrsqrt.f32 %v2727_v60  ;;  %v529_v29 = vmul.f32 %v2042_v11, %v2660_v4  ;;  %vm716_vm0 = vcmp.eq.f32.partialorder %v2747_v12, inf }
  0xca   : > { %v2046_v21 = vpop.eup %2045  ;;  %2065 = vrcp.f32 %v480_v6  ;;  %v566_v25 = vsel %vm565_vm6, %v2689_v33, %v564_v34  ;;  %v712_v33 = vand.u32 2147483648, %v2710_v49  ;;  %v586_v53 = vmul.f32 %v2044_v19, %v2496_v1 }
  0xcb   : > { %v2758_v24 = vpop.eup %2047  ;;  %v557_v27 = vmul.f32 %v2046_v21, %v2691_v36  ;;  %2067 = vrsqrt.f32 %v2747_v12  ;;  %v569_v43 = vsel %vm567_vm7, %v568_v26, %v566_v25  ;;  %v531_v46 = vsel %vm530_vm3, %v2660_v4, %v529_v29 }
  0xcc   : > { %v2764_v28 = vpop.eup %2049  ;;  %v2770_v30 = vpop.xlane.xlu1 %962  ;;  %2069 = vrcp.f32 %v570_v14  ;;  %v577_v55 = vadd.f32 1e-10, %v569_v43  ;;  %v719_v1 = vand.u32 2147483648, %v2747_v12  ;;  %v815_v8 = vand.u32 2147483648, %v2749_v13 }
  0xcd   : > { %v2772_v31 = vpop.xlane.xlu0 %964  ;;  %v2774_v32 = vpop.eup %2051  ;;  %v559_v38 = vsel %vm558_vm9, %v2691_v36, %v557_v27  ;;  %2071 = vrsqrt.f32 %v2749_v13  ;;  %vm812_vm2 = vcmp.eq.f32.partialorder %v2749_v13, inf  ;;  %v2832_v22 = vsel %vm532_vm8, %v533_v10, %v531_v46 }
  0xce   : > { %v2054_v40 = vpop.eup %2053  ;;  %2073 = vrsqrt.f32 %v2770_v30  ;;  %v562_v44 = vsel %vm560_vm10, %v561_v39, %v559_v38  ;;  %vm980_vm3 = vcmp.eq.f32.partialorder %v2770_v30, inf  ;;  %v983_v26 = vand.u32 2147483648, %v2770_v30  ;;  %v2854_v39 = vld [vmem:[%s3983_s6] ss:$0 sm:$0xff] }
  0xcf   : > { %v2056_v15 = vpop.eup %2055  ;;  %2075 = vrsqrt.f32 %v2772_v31  ;;  %v701_v57 = vmul.f32 %v2054_v40, %v2708_v47  ;;  %v576_v48 = vadd.f32 1e-10, %v562_v44  ;;  %vm987_vm4 = vcmp.eq.f32.partialorder %v2772_v31, inf }
  0xd0   : > { %v2058_v36 = vpop.eup %2057  ;;  %v2798_v51 = vpop.xlane.xlu1 %1058  ;;  %v708_v61 = vmul.f32 %v2056_v15, %v2710_v49  ;;  %vm711_vm6 = vcmp.eq.f32.partialorder %v2710_v49, 0.0  ;;  %vm807_vm8 = vcmp.eq.f32.partialorder %v2727_v60, 0.0 }
  0xd1   : > { %v2800_v52 = vpop.xlane.xlu0 %1060  ;;  %v2060_v54 = vpop.eup %2059  ;;  %2077 = vrsqrt.f32 %v2798_v51  ;;  %v797_v7 = vmul.f32 %v2058_v36, %v2725_v59  ;;  %v703_v20 = vsel %vm702_vm11, %v2708_v47, %v701_v57  ;;  %vm1076_vm5 = vcmp.eq.f32.partialorder %v2798_v51, inf }
  0xd2   : > { %v2062_v35 = vpop.eup %2061  ;;  %2079 = vrsqrt.f32 %v2800_v52  ;;  %v595_v14 = vmul.f32 %v2060_v54, %v2516_v16  ;;  %v2837_v16 = vsel %vm709_vm12, %v2710_v49, %v708_v61  ;;  %v706_v36 = vsel %vm704_vm13, %v705_v45, %v703_v20 }
  0xd3   : > { %v2064_v0 = vpop.eup %2063  ;;  %2081 = vrcp.f32 %v575_v50  ;;  %v587_v21 = vmul.f32 %v2062_v35, %v2502_v5  ;;  %v799_v29 = vsel %vm798_vm14, %v2725_v59, %v797_v7  ;;  %v1079_v54 = vand.u32 2147483648, %v2798_v51 }
  0xd4   : > { %v2813_v6 = vpop.eup %2065  ;;  %v2818_v11 = vpop.xlane.xlu1 %690  ;;  %2083 = vrcp.f32 %v577_v55  ;;  %v804_v25 = vmul.f32 %v2064_v0, %v2727_v60  ;;  %vm1083_vm7 = vcmp.eq.f32.partialorder %v2800_v52, inf }
  0xd5   : > { %v2820_v34 = vpop.xlane.xlu0 %786  ;;  %v2068_v19 = vpop.eup %2067  ;;  %2085 = vrcp.f32 %v576_v48  ;;  %v603_v4 = vsub.f32 %v587_v21, %v595_v14  ;;  %v756_v14 = vadd.f32 1e-10, %v706_v36 }
  0xd6   : > { %v2070_v23 = vpop.eup %2069  ;;  %2087 = vrsqrt.f32 %v2818_v11  ;;  %v715_v37 = vmul.f32 %v2068_v19, %v2747_v12  ;;  %v2870_v46 = vsel %vm805_vm15, %v2727_v60, %v804_v25 }
  0xd7   : > { %v2072_v5 = vpop.eup %2071  ;;  %v594_v10 = vmul.f32 %v2070_v23, %v2519_v17  ;;  %2089 = vrsqrt.f32 %v2820_v34  ;;  %v611_v15 = vmul.f32 %v603_v4, %v603_v4  ;;  %v802_v23 = vsel %vm800_vm1, %v801_v58, %v799_v29 }
  0xd8   : > { %v2074_v27 = vpop.eup %2073  ;;  %v2856_v40 = vpop.xlane.xlu1 %966  ;;  %v811_v50 = vmul.f32 %v2072_v5, %v2749_v13  ;;  %v2882_v35 = vsel %vm716_vm0, %v2747_v12, %v715_v37 }
  0xd9   : > { %v2858_v43 = vpop.xlane.xlu0 %1062  ;;  %v2076_v17 = vpop.eup %2075  ;;  %v602_v44 = vsub.f32 %v586_v53, %v594_v10  ;;  %2091 = vrsqrt.f32 %v2856_v40  ;;  %v979_v55 = vmul.f32 %v2074_v27, %v2770_v30  ;;  %v623_v47 = vmul.f32 %v2854_v39, %v611_v15 }
  0xda   : > { %2093 = vrsqrt.f32 %v2858_v43  ;;  %v986_v48 = vmul.f32 %v2076_v17, %v2772_v31  ;;  %v2903_v5 = vsel %vm812_vm2, %v2749_v13, %v811_v50  ;;  %vm994_vm9 = vcmp.eq.f32.partialorder %v2856_v40, inf }
  0xdb   : > { %v610_v45 = vmul.f32 %v602_v44, %v602_v44  ;;  %v2078_v57 = vpop.eup %2077  ;;  %632 = vadd.xlane.f32.xlu1 %v623_v47  ;;  %v2913_v59 = vsel %vm980_vm3, %v2770_v30, %v979_v55  ;;  %vm996_vm10 = vcmp.eq.f32.partialorder %v2856_v40, 0.0  ;;  %v997_v58 = vand.u32 2147483648, %v2856_v40 }
  0xdc   : > { %v2886_v0 = vpop.xlane.xlu1 %1240  ;;  %v2080_v19 = vpop.eup %2079  ;;  %v1075_v4 = vmul.f32 %v2078_v57, %v2798_v51  ;;  %vm1090_vm11 = vcmp.eq.f32.partialorder %v2858_v43, inf  ;;  %v2923_v29 = vsel %vm987_vm4, %v2772_v31, %v986_v48  ;;  %v852_v44 = vadd.f32 1e-10, %v802_v23 }
  0xdd   : > { %v2888_v7 = vpop.xlane.xlu0 %1242  ;;  %v622_v21 = vmul.f32 %v2854_v39, %v610_v45  ;;  %2095 = vrsqrt.f32 %v2886_v0  ;;  %v2897_v25 = vpop.eup %2081  ;;  %v1082_v37 = vmul.f32 %v2080_v19, %v2800_v52  ;;  %vm1092_vm12 = vcmp.eq.f32.partialorder %v2858_v43, 0.0 }
  0xde   : > { %2097 = vrsqrt.f32 %v2888_v7  ;;  %v2908_v10 = vpop.eup %2083  ;;  %v1093_v50 = vand.u32 2147483648, %v2858_v43  ;;  %vm1258_vm13 = vcmp.eq.f32.partialorder %v2886_v0, inf  ;;  %v2937_v47 = vsel %vm1076_vm5, %v2798_v51, %v1075_v4 }
  0xdf   : > { %630 = vadd.xlane.f32.xlu0 %v622_v21  ;;  %v2918_v27 = vpop.eup %2085  ;;  %2099 = vrcp.f32 %v756_v14  ;;  %vm1260_vm14 = vcmp.eq.f32.partialorder %v2886_v0, 0.0  ;;  %v1261_v45 = vand.u32 2147483648, %v2886_v0  ;;  %vm1265_vm15 = vcmp.eq.f32.partialorder %v2888_v7, inf }
  0xe0   : > { %v2926_v17 = vpop.xlane.xlu1 %1336  ;;  %v2088_v36 = vpop.eup %2087  ;;  %vm1267_vm0 = vcmp.eq.f32.partialorder %v2888_v7, 0.0  ;;  %v713_v48 = vsel %vm711_vm6, %v712_v33, %v2837_v16  ;;  %v2952_v14 = vsel %vm1083_vm7, %v2800_v52, %v1082_v37  ;;  %v1268_v23 = vand.u32 2147483648, %v2888_v7 }
  0xe1   : > { %v2928_v15 = vpop.xlane.xlu0 %1338  ;;  %2101 = vrsqrt.f32 %v2926_v17  ;;  %v2090_v55 = vpop.eup %2089  ;;  %v2955_v19 = vmul.f32 %v2088_v36, %v2818_v11  ;;  %vm1354_vm1 = vcmp.eq.f32.partialorder %v2926_v17, inf  ;;  %v1357_v33 = vand.u32 2147483648, %v2926_v17 }
  0xe2   : > { %2103 = vrsqrt.f32 %v2928_v15  ;;  %v2964_v49 = vmul.f32 %v2090_v55, %v2820_v34  ;;  %vm1356_vm2 = vcmp.eq.f32.partialorder %v2926_v17, 0.0  ;;  %vm1361_vm3 = vcmp.eq.f32.partialorder %v2928_v15, inf }
  0xe3   : > { %v2092_v57 = vpop.eup %2091  ;;  %2105 = vrcp.f32 %v852_v44  ;;  %v757_v36 = vadd.f32 1e-10, %v713_v48  ;;  %vm1363_vm4 = vcmp.eq.f32.partialorder %v2928_v15, 0.0  ;;  %v1364_v61 = vand.u32 2147483648, %v2928_v15 }
  0xe4   : > { %v993_v21 = vmul.f32 %v2092_v57, %v2856_v40  ;;  %v2959_v4 = vpop.xlane.xlu1 %692  ;;  %v2094_v20 = vpop.eup %2093 }
  0xe5   : > { %v2961_v44 = vpop.xlane.xlu0 %788  ;;  %2107 = vrsqrt.f32 %v2959_v4  ;;  %v1089_v37 = vmul.f32 %v2094_v20, %v2858_v43  ;;  %v809_v20 = vsel %vm807_vm8, %v808_v56, %v2870_v46  ;;  %vm730_vm5 = vcmp.eq.f32.partialorder %v2959_v4, inf }
  0xe6   : > { %v995_v16 = vsel %vm994_vm9, %v2856_v40, %v993_v21  ;;  %2109 = vrsqrt.f32 %v2961_v44  ;;  %vm732_vm6 = vcmp.eq.f32.partialorder %v2959_v4, 0.0  ;;  %vm826_vm7 = vcmp.eq.f32.partialorder %v2961_v44, inf }
  0xe7   : > { %v2096_v55 = vpop.eup %2095  ;;  %v998_v57 = vsel %vm996_vm10, %v997_v58, %v995_v16  ;;  %v1091_v48 = vsel %vm1090_vm11, %v2858_v43, %v1089_v37  ;;  %v2994_v16 = vadd.f32 1e-10, %v2832_v22  ;;  %vm718_vm8 = vcmp.eq.f32.partialorder %v2747_v12, 0.0 }
  0xe8   : > { %v2098_v21 = vpop.eup %2097  ;;  %v1036_v9 = vadd.f32 1e-10, %v998_v57  ;;  %v1257_v53 = vmul.f32 %v2096_v55, %v2886_v0  ;;  %v2989_v40 = vpop.xlane.xlu1 %968  ;;  %v1094_v38 = vsel %vm1092_vm12, %v1093_v50, %v1091_v48  ;;  %v733_v55 = vand.u32 2147483648, %v2959_v4 }
  0xe9   : > { %v2991_v58 = vpop.xlane.xlu0 %1064  ;;  %v1264_v60 = vmul.f32 %v2098_v21, %v2888_v7  ;;  %2111 = vrsqrt.f32 %v2989_v40  ;;  %v2100_v56 = vpop.eup %2099  ;;  %v1132_v46 = vadd.f32 1e-10, %v1094_v38  ;;  %vm814_vm9 = vcmp.eq.f32.partialorder %v2749_v13, 0.0 }
  0xea   : > { %v1259_v37 = vsel %vm1258_vm13, %v2886_v0, %v1257_v53  ;;  %2113 = vrcp.f32 %v757_v36  ;;  %vm723_vm10 = vcmp.eq.f32.partialorder %v2818_v11, inf  ;;  %vm828_vm11 = vcmp.eq.f32.partialorder %v2961_v44, 0.0 }
  0xeb   : > { %v2102_v22 = vpop.eup %2101  ;;  %v1262_v43 = vsel %vm1260_vm14, %v1261_v45, %v1259_v37  ;;  %v1266_v50 = vsel %vm1265_vm15, %v2888_v7, %v1264_v60  ;;  %2115 = vrsqrt.f32 %v2991_v58  ;;  %v2349_v60 = vld [vmem:[%s2492_s29 + $0x40] sm:$0xff]  ;;  %vm819_vm12 = vcmp.eq.f32.partialorder %v2820_v34, inf }
  0xec   : > { %v2104_v38 = vpop.eup %2103  ;;  %2117 = vrcp.f32 %v1036_v9  ;;  %v1312_v53 = vadd.f32 1e-10, %v1262_v43  ;;  %v1269_v36 = vsel %vm1267_vm0, %v1268_v23, %v1266_v50  ;;  %v1353_v57 = vmul.f32 %v2102_v22, %v2926_v17  ;;  %v2350_v37 = vld [vmem:[%s2513_s9 + $0x40] sm:$0xff] }
  0xed   : > { %v2106_v0 = vpop.eup %2105  ;;  %2119 = vrcp.f32 %v1132_v46  ;;  %v1313_v45 = vadd.f32 1e-10, %v1269_v36  ;;  %v1360_v21 = vmul.f32 %v2104_v38, %v2928_v15  ;;  %v868_v9 = vmul.f32 %v2349_v60, %v2100_v56 }
  0xee   : > { %2121 = vrcp.f32 %v1312_v53  ;;  %v1355_v48 = vsel %vm1354_vm1, %v2926_v17, %v1353_v57  ;;  %v876_v43 = vmul.f32 %v2350_v37, %v2106_v0  ;;  %v853_v22 = vadd.f32 1e-10, %v809_v20  ;;  %v3042_v0 = vpop.xlane.xlu0 %1340 }
  0xef   : > { %v2108_v7 = vpop.eup %2107  ;;  %2123 = vrcp.f32 %v1313_v45  ;;  %v1358_v23 = vsel %vm1356_vm2, %v1357_v33, %v1355_v48  ;;  %v1362_v46 = vsel %vm1361_vm3, %v2928_v15, %v1360_v21  ;;  %v3035_v33 = vpop.xlane.xlu1 %1244  ;;  %v829_v15 = vand.u32 2147483648, %v2961_v44 }
  0xf0   : > { %v2110_v50 = vpop.eup %2109  ;;  %v1408_v38 = vadd.f32 1e-10, %v1358_v23  ;;  %v1365_v56 = vsel %vm1363_vm4, %v1364_v61, %v1362_v46  ;;  %v729_v53 = vmul.f32 %v2108_v7, %v2959_v4  ;;  %v884_v36 = vsub.f32 %v868_v9, %v876_v43 }
  0xf1   : > { %v1409_v57 = vadd.f32 1e-10, %v1365_v56  ;;  %v825_v17 = vmul.f32 %v2110_v50, %v2961_v44  ;;  %2125 = vrcp.f32 %v853_v22  ;;  %vm1001_vm13 = vcmp.eq.f32.partialorder %v2989_v40, inf }
  0xf2   : > { %2127 = vrcp.f32 %v1408_v38  ;;  %v731_v61 = vsel %vm730_vm5, %v2959_v4, %v729_v53  ;;  %v892_v20 = vmul.f32 %v884_v36, %v884_v36  ;;  %vm1003_vm14 = vcmp.eq.f32.partialorder %v2989_v40, 0.0 }
  0xf3   : > { %v2112_v45 = vpop.eup %2111  ;;  %2129 = vrcp.f32 %v1409_v57  ;;  %v734_v21 = vsel %vm732_vm6, %v733_v55, %v731_v61  ;;  %v827_v48 = vsel %vm826_vm7, %v2961_v44, %v825_v17  ;;  %v1004_v4 = vand.u32 2147483648, %v2989_v40  ;;  %v3068_v53 = vpop.xlane.xlu1 %1521 }
  0xf4   : > { %v2114_v60 = vpop.eup %2113  ;;  %v760_v9 = vadd.f32 1e-10, %v734_v21  ;;  %v830_v37 = vsel %vm828_vm11, %v829_v15, %v827_v48  ;;  %v1000_v43 = vmul.f32 %v2112_v45, %v2989_v40  ;;  %v900_v7 = vmul.f32 %v2854_v39, %v892_v20  ;;  %v3081_v61 = vpop.xlane.xlu0 %1523 }
  0xf5   : > { %v2116_v23 = vpop.eup %2115  ;;  %v856_v46 = vadd.f32 1e-10, %v830_v37  ;;  %2131 = vrsqrt.f32 %v3035_v33  ;;  %vm982_vm15 = vcmp.eq.f32.partialorder %v2770_v30, 0.0  ;;  %vm1078_vm0 = vcmp.eq.f32.partialorder %v2798_v51, 0.0 }
  0xf6   : > { %v3057_v55 = vpop.eup %2117  ;;  %2133 = vrcp.f32 %v760_v9  ;;  %v1002_v44 = vsel %vm1001_vm13, %v2989_v40, %v1000_v43  ;;  %v1096_v22 = vmul.f32 %v2116_v23, %v2991_v58  ;;  %vm1097_vm1 = vcmp.eq.f32.partialorder %v2991_v58, inf  ;;  %908 = vadd.xlane.f32.xlu0 %v900_v7  ;;  %v2353_v23 = vld [vmem:[%s2492_s29 + $0x10] sm:$0xff] }
  0xf7   : > { %v3064_v50 = vpop.eup %2119  ;;  %2135 = vrcp.f32 %v856_v46  ;;  %v1005_v38 = vsel %vm1003_vm14, %v1004_v4, %v1002_v44  ;;  %vm1099_vm2 = vcmp.eq.f32.partialorder %v2991_v58, 0.0  ;;  %v1100_v56 = vand.u32 2147483648, %v2991_v58  ;;  %v3115_v43 = vpop.xlane.xlu1 %1617 }
  0xf8   : > { %v3070_v36 = vpop.eup %2121  ;;  %vm989_vm3 = vcmp.eq.f32.partialorder %v2772_v31, 0.0  ;;  %vm1085_vm4 = vcmp.eq.f32.partialorder %v2800_v52, 0.0  ;;  %v1037_v40 = vadd.f32 1e-10, %v1005_v38  ;;  %v1098_v57 = vsel %vm1097_vm1, %v2991_v58, %v1096_v22  ;;  %v3121_v4 = vpop.xlane.xlu0 %1619 }
  0xf9   : > { %2137 = vrsqrt.f32 %v3042_v0  ;;  %v720_v17 = vsel %vm718_vm8, %v719_v1, %v2882_v35  ;;  %v3083_v15 = vpop.eup %2123  ;;  %v1101_v20 = vsel %vm1099_vm2, %v1100_v56, %v1098_v57  ;;  %v816_v58 = vsel %vm814_vm9, %v815_v8, %v2903_v5  ;;  %v2351_v8 = vld [vmem:[%s2492_s29 + $0x48] sm:$0xff] }
  0xfa   : > { %2139 = vrcp.f32 %v2994_v16  ;;  %v758_v45 = vadd.f32 1e-10, %v720_v17  ;;  %v3095_v12 = vsel %vm723_vm10, %v2818_v11, %v2955_v19  ;;  %v1133_v1 = vadd.f32 1e-10, %v1101_v20  ;;  %v2352_v19 = vld [vmem:[%s2513_s9 + $0x48] sm:$0xff] }
  0xfb   : > { %2141 = vrcp.f32 %v1037_v40  ;;  %v854_v35 = vadd.f32 1e-10, %v816_v58  ;;  %v2126_v21 = vpop.eup %2125  ;;  %v3101_v16 = vsel %vm819_vm12, %v2820_v34, %v2964_v49  ;;  %vm1272_vm5 = vcmp.eq.f32.partialorder %v3035_v33, inf }
  0xfc   : > { %vm1274_vm6 = vcmp.eq.f32.partialorder %v3035_v33, 0.0  ;;  %2143 = vrcp.f32 %v758_v45  ;;  %v3105_v13 = vpop.eup %2127  ;;  %v869_v5 = vmul.f32 %v2351_v8, %v2114_v60  ;;  %v877_v48 = vmul.f32 %v2352_v19, %v2126_v21  ;;  %v2354_v8 = vld [vmem:[%s2513_s9 + $0x10] sm:$0xff] }
  0xfd   : > { %2145 = vrcp.f32 %v1133_v1  ;;  %v1275_v9 = vand.u32 2147483648, %v3035_v33  ;;  %v3110_v37 = vpop.eup %2129  ;;  %vm1368_vm7 = vcmp.eq.f32.partialorder %v3042_v0, inf  ;;  %vm1370_vm8 = vcmp.eq.f32.partialorder %v3042_v0, 0.0 }
  0xfe   : > { %v1371_v49 = vand.u32 2147483648, %v3042_v0  ;;  %2147 = vrcp.f32 %v854_v35  ;;  %v885_v7 = vsub.f32 %v869_v5, %v877_v48  ;;  %v588_v46 = vmul.f32 %v2353_v23, %v2729_v62 }
  0xff   : > { %2149 = vrsqrt.f32 %v3068_v53  ;;  %v1542_v60 = vand.u32 2147483648, %v3068_v53  ;;  %v2132_v44 = vpop.eup %2131  ;;  %v1549_v22 = vand.u32 2147483648, %v3081_v61  ;;  %v984_v38 = vsel %vm982_vm15, %v983_v26, %v2913_v59 }
 0x100   : > { %2151 = vrsqrt.f32 %v3081_v61  ;;  %v1080_v62 = vsel %vm1078_vm0, %v1079_v54, %v2937_v47  ;;  %v3135_v56 = vpop.eup %2133  ;;  %vm539_vm9 = vcmp.eq.f32.partialorder %v2658_v3, 0.0  ;;  %v893_v40 = vmul.f32 %v885_v7, %v885_v7  ;;  %v3177_v7 = vpop.xlane.xlu0 %790 }
 0x101   : > { %v1271_v57 = vmul.f32 %v2132_v44, %v3035_v33  ;;  %2153 = vrsqrt.f32 %v3115_v43  ;;  %v1034_v17 = vadd.f32 1e-10, %v984_v38  ;;  %v3140_v20 = vpop.eup %2135  ;;  %v1130_v30 = vadd.f32 1e-10, %v1080_v62  ;;  %v2355_v62 = vld [vmem:[%s2492_s29 + $0x50] sm:$0xff] }
 0x102   : > { %2155 = vrsqrt.f32 %v3121_v4  ;;  %v3985_v26 = vand.u32 2147483648, %v2772_v31  ;;  %v3986_v54 = vand.u32 2147483648, %v2800_v52  ;;  %vm725_vm10 = vcmp.eq.f32.partialorder %v2818_v11, 0.0 }
 0x103   : > { %v2138_v47 = vpop.eup %2137  ;;  %v901_v45 = vmul.f32 %v2854_v39, %v893_v40  ;;  %v1273_v58 = vsel %vm1272_vm5, %v3035_v33, %v1271_v57  ;;  %vm1539_vm11 = vcmp.eq.f32.partialorder %v3068_v53, inf  ;;  %2157 = vrcp.f32 %v1034_v17  ;;  %v3169_v33 = vpop.xlane.xlu1 %694 }
 0x104   : > { %v991_v51 = vsel %vm989_vm3, %v3985_v26, %v2923_v29  ;;  %v1087_v59 = vsel %vm1085_vm4, %v3986_v54, %v2952_v14  ;;  %v2140_v29 = vpop.eup %2139  ;;  %v1276_v1 = vsel %vm1274_vm6, %v1275_v9, %v1273_v58  ;;  %v1367_v52 = vmul.f32 %v2138_v47, %v3042_v0  ;;  %v2356_v54 = vld [vmem:[%s2513_s9 + $0x50] sm:$0xff] }
 0x105   : > { %v1035_v31 = vadd.f32 1e-10, %v991_v51  ;;  %vm1541_vm12 = vcmp.eq.f32.partialorder %v3068_v53, 0.0  ;;  %vm1546_vm13 = vcmp.eq.f32.partialorder %v3081_v61, inf  ;;  %2159 = vrcp.f32 %v1130_v30  ;;  %v3164_v35 = vpop.eup %2141  ;;  %910 = vadd.xlane.f32.xlu1 %v901_v45 }
 0x106   : > { %v1131_v14 = vadd.f32 1e-10, %v1087_v59  ;;  %v1314_v21 = vadd.f32 1e-10, %v1276_v1  ;;  %v596_v5 = vmul.f32 %v2354_v8, %v2140_v29  ;;  %vm1548_vm14 = vcmp.eq.f32.partialorder %v3081_v61, 0.0  ;;  %v2144_v19 = vpop.eup %2143 }
 0x107   : > { %vm1635_vm15 = vcmp.eq.f32.partialorder %v3115_v43, inf  ;;  %2161 = vrcp.f32 %v1035_v31  ;;  %v1369_v48 = vsel %vm1368_vm7, %v3042_v0, %v1367_v52  ;;  %vm1637_vm0 = vcmp.eq.f32.partialorder %v3115_v43, 0.0  ;;  %v3179_v23 = vpop.eup %2145 }
 0x108   : > { %v1638_v9 = vand.u32 2147483648, %v3115_v43  ;;  %vm1642_vm1 = vcmp.eq.f32.partialorder %v3121_v4, inf  ;;  %2163 = vrcp.f32 %v1131_v14  ;;  %v1372_v44 = vsel %vm1370_vm8, %v1371_v49, %v1369_v48  ;;  %v2148_v57 = vpop.eup %2147 }
 0x109   : > { %2165 = vrcp.f32 %v1314_v21  ;;  %v604_v38 = vsub.f32 %v588_v46, %v596_v5  ;;  %v870_v40 = vmul.f32 %v2355_v62, %v2144_v19  ;;  %v1410_v17 = vadd.f32 1e-10, %v1372_v44  ;;  %v2150_v26 = vpop.eup %2149  ;;  %v3210_v5 = vpop.xlane.xlu1 %970 }
 0x10a   : > { %vm1644_vm2 = vcmp.eq.f32.partialorder %v3121_v4, 0.0  ;;  %v1645_v30 = vand.u32 2147483648, %v3121_v4  ;;  %2167 = vrsqrt.f32 %v3169_v33  ;;  %vm821_vm3 = vcmp.eq.f32.partialorder %v2820_v34, 0.0  ;;  %v2152_v49 = vpop.eup %2151 }
 0x10b   : > { %v612_v51 = vmul.f32 %v604_v38, %v604_v38  ;;  %v878_v59 = vmul.f32 %v2356_v54, %v2148_v57  ;;  %v740_v0 = vand.u32 2147483648, %v3169_v33  ;;  %2169 = vrsqrt.f32 %v3177_v7  ;;  %v2154_v31 = vpop.eup %2153 }
 0x10c   : > { %2171 = vrcp.f32 %v1410_v17  ;;  %v1538_v46 = vmul.f32 %v2150_v26, %v3068_v53  ;;  %v477_v47 = vadd.f32 1e-10, %v2737_v2  ;;  %v3987_v45 = vand.u32 2147483648, %v2658_v3  ;;  %v2156_v21 = vpop.eup %2155 }
 0x10d   : > { %v624_v29 = vmul.f32 %v2854_v39, %v612_v51  ;;  %v886_v1 = vsub.f32 %v870_v40, %v878_v59  ;;  %v1545_v52 = vmul.f32 %v2152_v49, %v3081_v61  ;;  %v1634_v2 = vmul.f32 %v2154_v31, %v3115_v43  ;;  %v2158_v19 = vpop.eup %2157  ;;  %v2360_v31 = vld [vmem:[%s2513_s9 + $0x88] sm:$0xff] }
 0x10e   : > { %v541_v58 = vsel %vm539_vm9, %v3987_v45, %v2784_v42  ;;  %v1540_v8 = vsel %vm1539_vm11, %v3068_v53, %v1538_v46  ;;  %vm737_vm4 = vcmp.eq.f32.partialorder %v3169_v33, inf  ;;  %2173 = vrcp.f32 %v477_v47  ;;  %v2358_v47 = vld [vmem:[%s2513_s9 + $0x80] sm:$0xff] }
 0x10f   : > { %v573_v14 = vadd.f32 1e-10, %v541_v58  ;;  %v3988_v3 = vand.u32 2147483648, %v2818_v11  ;;  %634 = vadd.xlane.f32.xlu0 %v624_v29  ;;  %v894_v48 = vmul.f32 %v886_v1, %v886_v1  ;;  %v1543_v44 = vsel %vm1541_vm12, %v1542_v60, %v1540_v8  ;;  %v2160_v11 = vpop.eup %2159  ;;  %v2357_v60 = vld [vmem:[%s2492_s29 + $0x80] sm:$0xff] }
 0x110   : > { %v1547_v38 = vsel %vm1546_vm13, %v3081_v61, %v1545_v52  ;;  %v1641_v62 = vmul.f32 %v2156_v21, %v3121_v4  ;;  %vm739_vm5 = vcmp.eq.f32.partialorder %v3169_v33, 0.0  ;;  %v1636_v53 = vsel %vm1635_vm15, %v3115_v43, %v1634_v2  ;;  %v2359_v43 = vld [vmem:[%s2492_s29 + $0x88] sm:$0xff]  ;;  %v3250_v2 = vpop.xlane.xlu1 %1246 }
 0x111   : > { %v727_v42 = vsel %vm725_vm10, %v3988_v3, %v3095_v12  ;;  %v1593_v12 = vadd.f32 1e-10, %v1543_v44  ;;  %v1550_v40 = vsel %vm1548_vm14, %v1549_v22, %v1547_v38  ;;  %v1146_v57 = vmul.f32 %v2357_v60, %v2158_v19  ;;  %v2162_v17 = vpop.eup %2161  ;;  %v3235_v22 = vpop.xlane.xlu0 %1066 }
 0x112   : > { %v902_v26 = vmul.f32 %v2854_v39, %v894_v48  ;;  %v1594_v51 = vadd.f32 1e-10, %v1550_v40  ;;  %v1639_v54 = vsel %vm1637_vm0, %v1638_v9, %v1636_v53  ;;  %v1643_v61 = vsel %vm1642_vm1, %v3121_v4, %v1641_v62  ;;  %v2164_v59 = vpop.eup %2163 }
 0x113   : > { %2175 = vrcp.f32 %v1593_v12  ;;  %v1689_v49 = vadd.f32 1e-10, %v1639_v54  ;;  %v1646_v46 = vsel %vm1644_vm2, %v1645_v30, %v1643_v61  ;;  %v1154_v45 = vmul.f32 %v2358_v47, %v2160_v11  ;;  %v3240_v58 = vpop.eup %2165 }
 0x114   : > { %912 = vadd.xlane.f32.xlu1 %v902_v26  ;;  %2177 = vrcp.f32 %v1594_v51  ;;  %v1147_v9 = vmul.f32 %v2359_v43, %v2162_v17  ;;  %v1155_v29 = vmul.f32 %v2360_v31, %v2164_v59  ;;  %vm833_vm6 = vcmp.eq.f32.partialorder %v3177_v7, inf  ;;  %v2168_v1 = vpop.eup %2167  ;;  %v2362_v59 = vld [vmem:[%s2513_s9 + $0x90] sm:$0xff] }
 0x115   : > { %v1690_v52 = vadd.f32 1e-10, %v1646_v46  ;;  %v1162_v21 = vsub.f32 %v1146_v57, %v1154_v45  ;;  %v759_v8 = vadd.f32 1e-10, %v727_v42  ;;  %v3989_v4 = vand.u32 2147483648, %v2820_v34  ;;  %v2170_v3 = vpop.eup %2169  ;;  %v3261_v12 = vpop.xlane.xlu0 %1342 }
 0x116   : > { %2179 = vrcp.f32 %v1689_v49  ;;  %v1163_v19 = vsub.f32 %v1147_v9, %v1155_v29  ;;  %v736_v48 = vmul.f32 %v2168_v1, %v3169_v33  ;;  %v3253_v38 = vpop.eup %2171  ;;  %v832_v11 = vmul.f32 %v2170_v3, %v3177_v7 }
 0x117   : > { %v823_v30 = vsel %vm821_vm3, %v3989_v4, %v3101_v16  ;;  %v1170_v62 = vmul.f32 %v1162_v21, %v1162_v21  ;;  %vm835_vm7 = vcmp.eq.f32.partialorder %v3177_v7, 0.0  ;;  %2181 = vrcp.f32 %v573_v14 }
 0x118   : > { %v855_v44 = vadd.f32 1e-10, %v823_v30  ;;  %v1171_v42 = vmul.f32 %v1163_v19, %v1163_v19  ;;  %v738_v34 = vsel %vm737_vm4, %v3169_v33, %v736_v48  ;;  %v836_v16 = vand.u32 2147483648, %v3177_v7  ;;  %v2174_v40 = vpop.eup %2173  ;;  %v3275_v33 = vpop.xlane.xlu1 %1525  ;;  %v2364_v30 = vld [vmem:[%s2513_s9 + $0x18] sm:$0xff]  ;;  %v2365_v19 = vld [vmem:[%s2492_s29 + $0xc0] sm:$0xff] }
 0x119   : > { %2183 = vrcp.f32 %v759_v8  ;;  %v1178_v53 = vmul.f32 %v2854_v39, %v1170_v62  ;;  %v741_v60 = vsel %vm739_vm5, %v740_v0, %v738_v34  ;;  %v834_v14 = vsel %vm833_vm6, %v3177_v7, %v832_v11  ;;  %v2361_v0 = vld [vmem:[%s2492_s29 + $0x90] sm:$0xff] }
 0x11a   : > { %2185 = vrcp.f32 %v855_v44  ;;  %v1179_v57 = vmul.f32 %v2854_v39, %v1171_v42  ;;  %v761_v17 = vadd.f32 1e-10, %v741_v60  ;;  %v837_v26 = vsel %vm835_vm7, %v836_v16, %v834_v14  ;;  %v2366_v44 = vld [vmem:[%s2513_s9 + $0xc0] sm:$0xff]  ;;  %v2367_v42 = vld [vmem:[%s2492_s29 + $0x58] sm:$0xff]  ;;  %v2369_v60 = vld [vmem:[%s2513_s9 + $0xc8] sm:$0xff] }
 0x11b   : > { %2187 = vrcp.f32 %v1690_v52  ;;  %v543_v51 = vmul.f32 %v2764_v28, %v2673_v18  ;;  %1186 = vadd.xlane.f32.xlu0 %v1178_v53  ;;  %v857_v54 = vadd.f32 1e-10, %v837_v26  ;;  %v1148_v7 = vmul.f32 %v2361_v0, %v3057_v55  ;;  %v3293_v55 = vpop.xlane.xlu0 %1621 }
 0x11c   : > { %2189 = vrsqrt.f32 %v3210_v5  ;;  %1188 = vadd.xlane.f32.xlu1 %v1179_v57  ;;  %vm448_vm8 = vcmp.eq.f32.partialorder %v2617_v41, inf  ;;  %v1156_v28 = vmul.f32 %v2362_v59, %v3064_v50  ;;  %v451_v47 = vand.u32 2147483648, %v2617_v41  ;;  %v3311_v8 = vpop.xlane.xlu1 %696 }
 0x11d   : > { %2191 = vrcp.f32 %v761_v17  ;;  %v3279_v61 = vpop.eup %2175  ;;  %v3288_v46 = vsel %vm448_vm8, %v2617_v41, %v2732_v63  ;;  %vm544_vm9 = vcmp.eq.f32.partialorder %v2673_v18, inf  ;;  %v547_v43 = vand.u32 2147483648, %v2673_v18  ;;  %v2363_v63 = vld [vmem:[%s2492_s29 + $0x18] sm:$0xff] }
 0x11e   : > { %2193 = vrcp.f32 %v857_v54  ;;  %v3284_v49 = vpop.eup %2177  ;;  %v3296_v45 = vsel %vm544_vm9, %v2673_v18, %v543_v51  ;;  %v1164_v50 = vsub.f32 %v1148_v7, %v1156_v28  ;;  %v589_v31 = vmul.f32 %v2363_v63, %v2174_v40  ;;  %v2368_v40 = vld [vmem:[%s2492_s29 + $0xc8] sm:$0xff]  ;;  %v2370_v17 = vld [vmem:[%s2513_s9 + $0x58] sm:$0xff] }
 0x11f   : > { %2195 = vrsqrt.f32 %v3235_v22  ;;  %vm1008_vm10 = vcmp.eq.f32.partialorder %v3210_v5, inf  ;;  %vm1010_vm11 = vcmp.eq.f32.partialorder %v3210_v5, 0.0  ;;  %vm450_vm12 = vcmp.eq.f32.partialorder %v2617_v41, 0.0  ;;  %v3334_v51 = vpop.xlane.xlu0 %792 }
 0x120   : > { %2197 = vrsqrt.f32 %v3250_v2  ;;  %v3300_v9 = vpop.eup %2179  ;;  %v1011_v1 = vand.u32 2147483648, %v3210_v5  ;;  %v1107_v52 = vand.u32 2147483648, %v3235_v22  ;;  %v1282_v21 = vand.u32 2147483648, %v3250_v2 }
 0x121   : > { %2199 = vrsqrt.f32 %v3261_v12  ;;  %v2182_v29 = vpop.eup %2181  ;;  %vm546_vm13 = vcmp.eq.f32.partialorder %v2673_v18, 0.0  ;;  %vm1104_vm14 = vcmp.eq.f32.partialorder %v3235_v22, inf  ;;  %v1424_v48 = vmul.f32 %v2365_v19, %v3070_v36 }
 0x122   : > { %2201 = vrsqrt.f32 %v3275_v33  ;;  %v597_v3 = vmul.f32 %v2364_v30, %v2182_v29  ;;  %v1432_v62 = vmul.f32 %v2366_v44, %v3105_v13  ;;  %vm1106_vm15 = vcmp.eq.f32.partialorder %v3235_v22, 0.0 }
 0x123   : > { %v2184_v4 = vpop.eup %2183  ;;  %2203 = vrsqrt.f32 %v3293_v55  ;;  %v1172_v16 = vmul.f32 %v1164_v50, %v1164_v50  ;;  %vm1279_vm0 = vcmp.eq.f32.partialorder %v3250_v2, inf  ;;  %v1425_v53 = vmul.f32 %v2368_v40, %v3083_v15 }
 0x124   : > { %v2186_v11 = vpop.eup %2185  ;;  %v871_v34 = vmul.f32 %v2367_v42, %v2184_v4  ;;  %v1433_v14 = vmul.f32 %v2369_v60, %v3110_v37  ;;  %v605_v36 = vsub.f32 %v589_v31, %v597_v3  ;;  %vm1281_vm1 = vcmp.eq.f32.partialorder %v3250_v2, 0.0 }
 0x125   : > { %v3328_v57 = vpop.eup %2187  ;;  %v879_v26 = vmul.f32 %v2370_v17, %v2186_v11  ;;  %vm1375_vm2 = vcmp.eq.f32.partialorder %v3261_v12, inf  ;;  %v1440_v13 = vsub.f32 %v1424_v48, %v1432_v62  ;;  %2205 = vrsqrt.f32 %v3311_v8  ;;  %v3355_v62 = vpop.xlane.xlu1 %972 }
 0x126   : > { %v2190_v54 = vpop.eup %2189  ;;  %vm1377_vm3 = vcmp.eq.f32.partialorder %v3261_v12, 0.0  ;;  %v1378_v15 = vand.u32 2147483648, %v3261_v12  ;;  %vm1553_vm4 = vcmp.eq.f32.partialorder %v3275_v33, inf  ;;  %v1556_v37 = vand.u32 2147483648, %v3275_v33 }
 0x127   : > { %v1441_v0 = vsub.f32 %v1425_v53, %v1433_v14  ;;  %v3340_v7 = vpop.eup %2191  ;;  %v613_v59 = vmul.f32 %v605_v36, %v605_v36  ;;  %v887_v28 = vsub.f32 %v871_v34, %v879_v26  ;;  %v1007_v50 = vmul.f32 %v2190_v54, %v3210_v5 }
 0x128   : > { %vm1555_vm5 = vcmp.eq.f32.partialorder %v3275_v33, 0.0  ;;  %vm1649_vm6 = vcmp.eq.f32.partialorder %v3293_v55, inf  ;;  %v1448_v63 = vmul.f32 %v1440_v13, %v1440_v13  ;;  %v3345_v31 = vpop.eup %2193  ;;  %vm1651_vm7 = vcmp.eq.f32.partialorder %v3293_v55, 0.0 }
 0x129   : > { %v1652_v29 = vand.u32 2147483648, %v3293_v55  ;;  %v1449_v4 = vmul.f32 %v1441_v0, %v1441_v0  ;;  %2207 = vrsqrt.f32 %v3334_v51  ;;  %v2196_v30 = vpop.eup %2195  ;;  %v625_v3 = vmul.f32 %v2854_v39, %v613_v59 }
 0x12a   : > { %v895_v19 = vmul.f32 %v887_v28, %v887_v28  ;;  %v1009_v48 = vsel %vm1008_vm10, %v3210_v5, %v1007_v50  ;;  %v1180_v44 = vmul.f32 %v2854_v39, %v1172_v16  ;;  %v2198_v11 = vpop.eup %2197  ;;  %v1103_v34 = vmul.f32 %v2196_v30, %v3235_v22 }
 0x12b   : > { %v1012_v42 = vsel %vm1010_vm11, %v1011_v1, %v1009_v48  ;;  %v1456_v40 = vmul.f32 %v2854_v39, %v1448_v63  ;;  %v1457_v53 = vmul.f32 %v2854_v39, %v1449_v4  ;;  %vm744_vm8 = vcmp.eq.f32.partialorder %v3311_v8, inf  ;;  %v2200_v60 = vpop.eup %2199  ;;  %636 = vadd.xlane.f32.xlu0 %v625_v3  ;;  %v3371_v1 = vpop.xlane.xlu0 %1068 }
 0x12c   : > { %v903_v14 = vmul.f32 %v2854_v39, %v895_v19  ;;  %v1038_v36 = vadd.f32 1e-10, %v1012_v42  ;;  %v1278_v16 = vmul.f32 %v2198_v11, %v3250_v2  ;;  %vm746_vm9 = vcmp.eq.f32.partialorder %v3311_v8, 0.0  ;;  %v2202_v17 = vpop.eup %2201 }
 0x12d   : > { %v452_v5 = vsel %vm450_vm12, %v451_v47, %v3288_v46  ;;  %v1105_v26 = vsel %vm1104_vm14, %v3235_v22, %v1103_v34  ;;  %v1374_v13 = vmul.f32 %v2200_v60, %v3261_v12  ;;  %v548_v0 = vsel %vm546_vm13, %v547_v43, %v3296_v45  ;;  %v2204_v59 = vpop.eup %2203  ;;  %v2372_v34 = vld [vmem:[%s2513_s9 + $0x60] sm:$0xff] }
 0x12e   : > { %v478_v54 = vadd.f32 1e-10, %v452_v5  ;;  %914 = vadd.xlane.f32.xlu1 %v903_v14  ;;  %2209 = vrcp.f32 %v1038_v36  ;;  %v1108_v41 = vsel %vm1106_vm15, %v1107_v52, %v1105_v26  ;;  %v1280_v46 = vsel %vm1279_vm0, %v3250_v2, %v1278_v16  ;;  %v3403_v2 = vpop.xlane.xlu1 %1248  ;;  %v2373_v26 = vld [vmem:[%s2492_s29 + $0x98] sm:$0xff] }
 0x12f   : > { %v1552_v47 = vmul.f32 %v2202_v17, %v3275_v33  ;;  %v1134_v28 = vadd.f32 1e-10, %v1108_v41  ;;  %v1283_v18 = vsel %vm1281_vm1, %v1282_v21, %v1280_v46  ;;  %v1376_v45 = vsel %vm1375_vm2, %v3261_v12, %v1374_v13  ;;  %v2206_v22 = vpop.eup %2205  ;;  %1190 = vadd.xlane.f32.xlu0 %v1180_v44  ;;  %v3413_v19 = vpop.xlane.xlu0 %1344  ;;  %v2371_v44 = vld [vmem:[%s2492_s29 + $0x60] sm:$0xff] }
 0x130   : > { %v1648_v43 = vmul.f32 %v2204_v59, %v3293_v55  ;;  %v1315_v52 = vadd.f32 1e-10, %v1283_v18  ;;  %v1379_v50 = vsel %vm1377_vm3, %v1378_v15, %v1376_v45  ;;  %2211 = vrcp.f32 %v478_v54  ;;  %v2374_v54 = vld [vmem:[%s2513_s9 + $0x98] sm:$0xff]  ;;  %v2375_v18 = vld [vmem:[%s2492_s29 + $0xd0] sm:$0xff] }
 0x131   : > { %v1554_v63 = vsel %vm1553_vm4, %v3275_v33, %v1552_v47  ;;  %2213 = vrcp.f32 %v1134_v28  ;;  %v1411_v21 = vadd.f32 1e-10, %v1379_v50  ;;  %v743_v3 = vmul.f32 %v2206_v22, %v3311_v8 }
 0x132   : > { %v1557_v4 = vsel %vm1555_vm5, %v1556_v37, %v1554_v63  ;;  %v1650_v30 = vsel %vm1649_vm6, %v3293_v55, %v1648_v43  ;;  %2215 = vrcp.f32 %v1315_v52  ;;  %1464 = vadd.xlane.f32.xlu1 %v1456_v40  ;;  %v747_v33 = vand.u32 2147483648, %v3311_v8  ;;  %v3429_v16 = vpop.xlane.xlu1 %1527  ;;  %v2376_v43 = vld [vmem:[%s2513_s9 + $0xd0] sm:$0xff] }
 0x133   : > { %v1595_v12 = vadd.f32 1e-10, %v1557_v4  ;;  %v1653_v15 = vsel %vm1651_vm7, %v1652_v29, %v1650_v30  ;;  %v2208_v48 = vpop.eup %2207  ;;  %2217 = vrcp.f32 %v1411_v21  ;;  %v574_v37 = vadd.f32 1e-10, %v548_v0  ;;  %1466 = vadd.xlane.f32.xlu0 %v1457_v53  ;;  %v3435_v17 = vpop.xlane.xlu0 %1623  ;;  %v2377_v4 = vld [vmem:[%s2492_s29 + $0x20] sm:$0xff] }
 0x134   : > { %v872_v11 = vmul.f32 %v2371_v44, %v3135_v56  ;;  %v1691_v42 = vadd.f32 1e-10, %v1653_v15  ;;  %v745_v55 = vsel %vm744_vm8, %v3311_v8, %v743_v3  ;;  %v839_v29 = vmul.f32 %v2208_v48, %v3334_v51  ;;  %v2378_v48 = vld [vmem:[%s2513_s9 + $0x20] sm:$0xff] }
 0x135   : > { %v880_v40 = vmul.f32 %v2372_v34, %v3140_v20  ;;  %2219 = vrcp.f32 %v1595_v12  ;;  %v748_v60 = vsel %vm746_vm9, %v747_v33, %v745_v55  ;;  %vm840_vm10 = vcmp.eq.f32.partialorder %v3334_v51, inf  ;;  %v3487_v55 = vld [vmem:[%s3983_s6] ss:$0 sm:$0xff] }
 0x136   : > { %v843_v56 = vand.u32 2147483648, %v3334_v51  ;;  %v762_v53 = vadd.f32 1e-10, %v748_v60  ;;  %v841_v14 = vsel %vm840_vm10, %v3334_v51, %v839_v29  ;;  %2221 = vrcp.f32 %v574_v37 }
 0x137   : > { %v888_v36 = vsub.f32 %v872_v11, %v880_v40  ;;  %vm842_vm11 = vcmp.eq.f32.partialorder %v3334_v51, 0.0  ;;  %2223 = vrsqrt.f32 %v3355_v62  ;;  %v1149_v13 = vmul.f32 %v2373_v26, %v3164_v35  ;;  %v3465_v63 = vpop.xlane.xlu0 %794 }
 0x138   : > { %v3433_v20 = vpop.eup %2209  ;;  %2225 = vrcp.f32 %v1691_v42  ;;  %v844_v8 = vsel %vm842_vm11, %v843_v56, %v841_v14  ;;  %v1157_v0 = vmul.f32 %v2374_v54, %v3179_v23  ;;  %vm1015_vm12 = vcmp.eq.f32.partialorder %v3355_v62, inf  ;;  %v2380_v14 = vld [vmem:[%s2559_s13] sm:$0xff] }
 0x139   : > { %v896_v5 = vmul.f32 %v888_v36, %v888_v36  ;;  %2227 = vrsqrt.f32 %v3371_v1  ;;  %v858_v46 = vadd.f32 1e-10, %v844_v8  ;;  %vm1017_vm13 = vcmp.eq.f32.partialorder %v3355_v62, 0.0  ;;  %v2381_v8 = vld [vmem:[%s2566_s16] sm:$0xff] }
 0x13a   : > { %v2212_v59 = vpop.eup %2211  ;;  %2229 = vrcp.f32 %v762_v53  ;;  %v1165_v47 = vsub.f32 %v1149_v13, %v1157_v0  ;;  %v1018_v35 = vand.u32 2147483648, %v3355_v62  ;;  %vm1111_vm14 = vcmp.eq.f32.partialorder %v3371_v1, inf }
 0x13b   : > { %v904_v51 = vmul.f32 %v2854_v39, %v896_v5  ;;  %v3443_v41 = vpop.eup %2213  ;;  %2231 = vrsqrt.f32 %v3403_v2  ;;  %v3452_v39 = vpop.xlane.xlu1 %698  ;;  %v1426_v45 = vmul.f32 %v2375_v18, %v3240_v58  ;;  %v1434_v22 = vmul.f32 %v2376_v43, %v3253_v38 }
 0x13c   : > { %v3446_v28 = vpop.eup %2215  ;;  %2233 = vrsqrt.f32 %v3413_v19  ;;  %vm1113_vm15 = vcmp.eq.f32.partialorder %v3371_v1, 0.0  ;;  %v1114_v52 = vand.u32 2147483648, %v3371_v1  ;;  %v1173_v50 = vmul.f32 %v1165_v47, %v1165_v47 }
 0x13d   : > { %916 = vadd.xlane.f32.xlu0 %v904_v51  ;;  %v3454_v23 = vpop.eup %2217  ;;  %2235 = vrsqrt.f32 %v3429_v16  ;;  %v590_v58 = vmul.f32 %v2377_v4, %v2212_v59  ;;  %vm1286_vm0 = vcmp.eq.f32.partialorder %v3403_v2, inf  ;;  %v1442_v38 = vsub.f32 %v1426_v45, %v1434_v22  ;;  %v2382_v59 = vld [vmem:[%s2566_s16 + $0x8] sm:$0xff] }
 0x13e   : > { %2237 = vrsqrt.f32 %v3435_v17  ;;  %vm1288_vm1 = vcmp.eq.f32.partialorder %v3403_v2, 0.0  ;;  %v1289_v12 = vand.u32 2147483648, %v3403_v2  ;;  %vm1382_vm2 = vcmp.eq.f32.partialorder %v3413_v19, inf  ;;  %v2383_v22 = vld [vmem:[%s2559_s13 + $0x8] sm:$0xff] }
 0x13f   : > { %v3467_v21 = vpop.eup %2219  ;;  %2239 = vrcp.f32 %v858_v46  ;;  %v1385_v15 = vand.u32 2147483648, %v3413_v19  ;;  %vm1384_vm3 = vcmp.eq.f32.partialorder %v3413_v19, 0.0  ;;  %v1450_v37 = vmul.f32 %v1442_v38, %v1442_v38  ;;  %v3495_v40 = vpop.xlane.xlu1 %974 }
 0x140   : > { %v2222_v30 = vpop.eup %2221  ;;  %2241 = vrsqrt.f32 %v3452_v39  ;;  %vm1560_vm4 = vcmp.eq.f32.partialorder %v3429_v16, inf  ;;  %v1563_v44 = vand.u32 2147483648, %v3429_v16  ;;  %v3490_v29 = vmul.f32 %v3487_v55, %v1173_v50 }
 0x141   : > { %v2224_v3 = vpop.eup %2223  ;;  %v598_v33 = vmul.f32 %v2378_v48, %v2222_v30  ;;  %2243 = vrsqrt.f32 %v3465_v63  ;;  %vm1562_vm5 = vcmp.eq.f32.partialorder %v3429_v16, 0.0  ;;  %vm1656_vm6 = vcmp.eq.f32.partialorder %v3435_v17, inf  ;;  %v3531_v30 = vpop.xlane.xlu0 %1070 }
 0x142   : > { %v3481_v11 = vpop.eup %2225  ;;  %v1014_v42 = vmul.f32 %v2224_v3, %v3355_v62  ;;  %v1659_v34 = vand.u32 2147483648, %v3435_v17  ;;  %v1458_v53 = vmul.f32 %v3487_v55, %v1450_v37  ;;  %vm1658_vm7 = vcmp.eq.f32.partialorder %v3435_v17, 0.0 }
 0x143   : > { %v2228_v60 = vpop.eup %2227  ;;  %v606_v56 = vsub.f32 %v590_v58, %v598_v33  ;;  %v1705_v36 = vmul.f32 %v2380_v14, %v3279_v61  ;;  %v1713_v5 = vmul.f32 %v2381_v8, %v3300_v9  ;;  %vm751_vm8 = vcmp.eq.f32.partialorder %v3452_v39, inf  ;;  %v3559_v8 = vpop.xlane.xlu1 %1250 }
 0x144   : > { %v3503_v26 = vpop.eup %2229  ;;  %v1016_v13 = vsel %vm1015_vm12, %v3355_v62, %v1014_v42  ;;  %v1110_v54 = vmul.f32 %v2228_v60, %v3371_v1  ;;  %v754_v0 = vand.u32 2147483648, %v3452_v39  ;;  %v1714_v51 = vmul.f32 %v2382_v59, %v3328_v57  ;;  %1468 = vadd.xlane.f32.xlu0 %v1458_v53  ;;  %v3550_v53 = vld [vmem:[%s3983_s6 + $0x1] ss:$0 sm:$0xff] }
 0x145   : > { %v2232_v61 = vpop.eup %2231  ;;  %v614_v46 = vmul.f32 %v606_v56, %v606_v56  ;;  %v1019_v9 = vsel %vm1017_vm13, %v1018_v35, %v1016_v13  ;;  %vm753_vm9 = vcmp.eq.f32.partialorder %v3452_v39, 0.0  ;;  %vm847_vm10 = vcmp.eq.f32.partialorder %v3465_v63, inf }
 0x146   : > { %v1721_v47 = vsub.f32 %v1705_v36, %v1713_v5  ;;  %2245 = vrsqrt.f32 %v3495_v40  ;;  %v2234_v18 = vpop.eup %2233  ;;  %v1039_v45 = vadd.f32 1e-10, %v1019_v9  ;;  %v1112_v43 = vsel %vm1111_vm14, %v3371_v1, %v1110_v54 }
 0x147   : > { %v1285_v57 = vmul.f32 %v2232_v61, %v3403_v2  ;;  %v1706_v62 = vmul.f32 %v2383_v22, %v3284_v49  ;;  %v2236_v35 = vpop.eup %2235  ;;  %v626_v50 = vmul.f32 %v3487_v55, %v614_v46  ;;  %v1115_v4 = vsel %vm1113_vm15, %v1114_v52, %v1112_v43 }
 0x148   : > { %v1381_v58 = vmul.f32 %v2234_v18, %v3413_v19  ;;  %v850_v38 = vand.u32 2147483648, %v3465_v63  ;;  %v2238_v3 = vpop.eup %2237  ;;  %v1559_v49 = vmul.f32 %v2236_v35, %v3429_v16  ;;  %v1729_v33 = vmul.f32 %v1721_v47, %v1721_v47  ;;  %v3577_v47 = vpop.xlane.xlu0 %1346 }
 0x149   : > { %v1287_v48 = vsel %vm1286_vm0, %v3403_v2, %v1285_v57  ;;  %v1722_v37 = vsub.f32 %v1706_v62, %v1714_v51  ;;  %v3537_v42 = vpop.eup %2239  ;;  %638 = vadd.xlane.f32.xlu1 %v626_v50  ;;  %v1135_v1 = vadd.f32 1e-10, %v1115_v4  ;;  %v1655_v56 = vmul.f32 %v2238_v3, %v3435_v17  ;;  %v2384_v62 = vld [vmem:[%s2492_s29 + $0x28] sm:$0xff] }
 0x14a   : > { %v1290_v52 = vsel %vm1288_vm1, %v1289_v12, %v1287_v48  ;;  %v1383_v60 = vsel %vm1382_vm2, %v3413_v19, %v1381_v58  ;;  %v2242_v14 = vpop.eup %2241  ;;  %2247 = vrcp.f32 %v1039_v45  ;;  %v1561_v12 = vsel %vm1560_vm4, %v3429_v16, %v1559_v49  ;;  %v2385_v50 = vld [vmem:[%s2513_s9 + $0x28] sm:$0xff] }
 0x14b   : > { %v1316_v36 = vadd.f32 1e-10, %v1290_v52  ;;  %v1386_v2 = vsel %vm1384_vm3, %v1385_v15, %v1383_v60  ;;  %v2244_v5 = vpop.eup %2243  ;;  %v1564_v54 = vsel %vm1562_vm5, %v1563_v44, %v1561_v12  ;;  %v1657_v59 = vsel %vm1656_vm6, %v3435_v17, %v1655_v56  ;;  %v2387_v48 = vld [vmem:[%s2513_s9 + $0x68] sm:$0xff]  ;;  %v2388_v60 = vld [vmem:[%s2492_s29 + $0xa0] sm:$0xff] }
 0x14c   : > { %v1412_v13 = vadd.f32 1e-10, %v1386_v2  ;;  %v750_v19 = vmul.f32 %v2242_v14, %v3452_v39  ;;  %v1596_v15 = vadd.f32 1e-10, %v1564_v54  ;;  %v1660_v51 = vsel %vm1658_vm7, %v1659_v34, %v1657_v59  ;;  %v2389_v14 = vld [vmem:[%s2513_s9 + $0xa0] sm:$0xff] }
 0x14d   : > { %v846_v61 = vmul.f32 %v2244_v5, %v3465_v63  ;;  %v1741_v46 = vmul.f32 %v3550_v53, %v1729_v33  ;;  %2249 = vrcp.f32 %v1135_v1  ;;  %1192 = vadd.xlane.f32.xlu1 %v3490_v29  ;;  %v1692_v9 = vadd.f32 1e-10, %v1660_v51  ;;  %v3602_v33 = vpop.xlane.xlu0 %1625 }
 0x14e   : > { %v752_v16 = vsel %vm751_vm8, %v3452_v39, %v750_v19  ;;  %v1730_v44 = vmul.f32 %v1722_v37, %v1722_v37  ;;  %2251 = vrcp.f32 %v1316_v36  ;;  %vm849_vm11 = vcmp.eq.f32.partialorder %v3465_v63, 0.0  ;;  %v3588_v39 = vpop.xlane.xlu1 %1529 }
 0x14f   : > { %v755_v17 = vsel %vm753_vm9, %v754_v0, %v752_v16  ;;  %v848_v34 = vsel %vm847_vm10, %v3465_v63, %v846_v61  ;;  %2253 = vrcp.f32 %v1412_v13  ;;  %vm1022_vm12 = vcmp.eq.f32.partialorder %v3495_v40, inf }
 0x150   : > { %v2246_v18 = vpop.eup %2245  ;;  %v851_v29 = vsel %vm849_vm11, %v850_v38, %v848_v34  ;;  %v1742_v45 = vmul.f32 %v3550_v53, %v1730_v44  ;;  %2255 = vrcp.f32 %v1596_v15  ;;  %v763_v0 = vadd.f32 1e-10, %v755_v17  ;;  %v2386_v38 = vld [vmem:[%s2492_s29 + $0x68] sm:$0xff]  ;;  %v2390_v15 = vld [vmem:[%s2492_s29 + $0xd8] sm:$0xff] }
 0x151   : > { %v1021_v43 = vmul.f32 %v2246_v18, %v3495_v40  ;;  %2257 = vrcp.f32 %v1692_v9  ;;  %v859_v57 = vadd.f32 1e-10, %v851_v29  ;;  %1749 = vadd.xlane.f32.xlu1 %v1741_v46  ;;  %v1025_v63 = vand.u32 2147483648, %v3495_v40  ;;  %v3629_v54 = vpop.xlane.xlu0 %1072  ;;  %v2391_v9 = vld [vmem:[%s2513_s9 + $0xd8] sm:$0xff] }
 0x152   : > { %1751 = vadd.xlane.f32.xlu0 %v1742_v45  ;;  %vm1024_vm13 = vcmp.eq.f32.partialorder %v3495_v40, 0.0  ;;  %v591_v35 = vmul.f32 %v2384_v62, %v2758_v24  ;;  %v599_v4 = vmul.f32 %v2385_v50, %v2897_v25  ;;  %2259 = vrsqrt.f32 %v3531_v30  ;;  %v3608_v52 = vpop.xlane.xlu1 %976  ;;  %v2394_v62 = vld [vmem:[%s2559_s13 + $0x10] sm:$0xff] }
 0x153   : > { %v1023_v22 = vsel %vm1022_vm12, %v3495_v40, %v1021_v43  ;;  %v873_v3 = vmul.f32 %v2386_v38, %v3340_v7  ;;  %v881_v49 = vmul.f32 %v2387_v48, %v3345_v31  ;;  %2261 = vrsqrt.f32 %v3559_v8  ;;  %v2395_v38 = vld [vmem:[%s2566_s16 + $0x10] sm:$0xff] }
 0x154   : > { %v1026_v58 = vsel %vm1024_vm13, %v1025_v63, %v1023_v22  ;;  %v3604_v40 = vpop.eup %2247  ;;  %v607_v37 = vsub.f32 %v591_v35, %v599_v4  ;;  %2263 = vrsqrt.f32 %v3577_v47  ;;  %vm1118_vm14 = vcmp.eq.f32.partialorder %v3531_v30, inf  ;;  %v2393_v63 = vld [vmem:[%s2513_s9 + $0x30] sm:$0xff] }
 0x155   : > { %v889_v24 = vsub.f32 %v873_v3, %v881_v49  ;;  %2265 = vrcp.f32 %v763_v0  ;;  %v1040_v25 = vadd.f32 1e-10, %v1026_v58  ;;  %v1150_v56 = vmul.f32 %v2388_v60, %v3433_v20  ;;  %v2392_v0 = vld [vmem:[%s2492_s29 + $0x30] sm:$0xff]  ;;  %v3672_v49 = vpop.xlane.xlu0 %1348 }
 0x156   : > { %v615_v1 = vmul.f32 %v607_v37, %v607_v37  ;;  %2267 = vrcp.f32 %v859_v57  ;;  %v1158_v36 = vmul.f32 %v2389_v14, %v3443_v41  ;;  %vm1120_vm15 = vcmp.eq.f32.partialorder %v3531_v30, 0.0 }
 0x157   : > { %v3610_v7 = vpop.eup %2249  ;;  %v897_v31 = vmul.f32 %v889_v24, %v889_v24  ;;  %v1121_v12 = vand.u32 2147483648, %v3531_v30  ;;  %vm1293_vm0 = vcmp.eq.f32.partialorder %v3559_v8, inf  ;;  %2269 = vrsqrt.f32 %v3588_v39 }
 0x158   : > { %v3617_v2 = vpop.eup %2251  ;;  %v627_v5 = vmul.f32 %v3487_v55, %v615_v1  ;;  %vm1295_vm1 = vcmp.eq.f32.partialorder %v3559_v8, 0.0  ;;  %v1166_v41 = vsub.f32 %v1150_v56, %v1158_v36  ;;  %2271 = vrsqrt.f32 %v3602_v33 }
 0x159   : > { %v3624_v13 = vpop.eup %2253  ;;  %v905_v20 = vmul.f32 %v3487_v55, %v897_v31  ;;  %2273 = vrcp.f32 %v1040_v25  ;;  %v1296_v19 = vand.u32 2147483648, %v3559_v8  ;;  %vm1389_vm2 = vcmp.eq.f32.partialorder %v3577_v47, inf }
 0x15a   : > { %v3631_v59 = vpop.eup %2255  ;;  %640 = vadd.xlane.f32.xlu1 %v627_v5  ;;  %v1427_v51 = vmul.f32 %v2390_v15, %v3446_v28  ;;  %vm1391_vm3 = vcmp.eq.f32.partialorder %v3577_v47, 0.0  ;;  %v1174_v46 = vmul.f32 %v1166_v41, %v1166_v41  ;;  %v1435_v16 = vmul.f32 %v2391_v9, %v3454_v23  ;;  %v3647_v28 = vpop.xlane.xlu1 %1252 }
 0x15b   : > { %v3637_v61 = vpop.eup %2257  ;;  %918 = vadd.xlane.f32.xlu0 %v905_v20  ;;  %2275 = vrsqrt.f32 %v3608_v52  ;;  %v1392_v44 = vand.u32 2147483648, %v3577_v47  ;;  %vm1567_vm4 = vcmp.eq.f32.partialorder %v3588_v39, inf  ;;  %v1570_v17 = vand.u32 2147483648, %v3588_v39 }
 0x15c   : > { %2277 = vrsqrt.f32 %v3629_v54  ;;  %v2260_v34 = vpop.eup %2259  ;;  %v1182_v18 = vmul.f32 %v3487_v55, %v1174_v46  ;;  %vm1569_vm5 = vcmp.eq.f32.partialorder %v3588_v39, 0.0  ;;  %vm1663_vm6 = vcmp.eq.f32.partialorder %v3602_v33, inf }
 0x15d   : > { %v1666_v23 = vand.u32 2147483648, %v3602_v33  ;;  %v1443_v29 = vsub.f32 %v1427_v51, %v1435_v16  ;;  %v2262_v45 = vpop.eup %2261  ;;  %v1117_v43 = vmul.f32 %v2260_v34, %v3531_v30  ;;  %vm1665_vm7 = vcmp.eq.f32.partialorder %v3602_v33, 0.0 }
 0x15e   : > { %v592_v57 = vmul.f32 %v2392_v0, %v2813_v6  ;;  %v600_v22 = vmul.f32 %v2393_v63, %v2918_v27  ;;  %v1707_v35 = vmul.f32 %v2394_v62, %v3467_v21  ;;  %v2264_v50 = vpop.eup %2263  ;;  %v1292_v4 = vmul.f32 %v2262_v45, %v3559_v8  ;;  %1194 = vadd.xlane.f32.xlu1 %v1182_v18  ;;  %v3691_v41 = vpop.xlane.xlu1 %1531 }
 0x15f   : > { %v1451_v58 = vmul.f32 %v1443_v29, %v1443_v29  ;;  %v1715_v3 = vmul.f32 %v2395_v38, %v3481_v11  ;;  %2279 = vrsqrt.f32 %v3647_v28  ;;  %v3665_v48 = vpop.eup %2265  ;;  %v1119_v6 = vsel %vm1118_vm14, %v3531_v30, %v1117_v43  ;;  %v3710_v43 = vpop.xlane.xlu0 %1627 }
 0x160   : > { %v1388_v27 = vmul.f32 %v2264_v50, %v3577_v47  ;;  %vm1029_vm8 = vcmp.eq.f32.partialorder %v3608_v52, inf  ;;  %v608_v21 = vsub.f32 %v592_v57, %v600_v22  ;;  %v3674_v37 = vpop.eup %2267  ;;  %v1122_v11 = vsel %vm1120_vm15, %v1121_v12, %v1119_v6  ;;  %v2397_v6 = vld [vmem:[%s2513_s9 + $0x70] sm:$0xff] }
 0x161   : > { %v1294_v24 = vsel %vm1293_vm0, %v3559_v8, %v1292_v4  ;;  %v1459_v25 = vmul.f32 %v3487_v55, %v1451_v58  ;;  %v1723_v1 = vsub.f32 %v1707_v35, %v1715_v3  ;;  %v2270_v31 = vpop.eup %2269  ;;  %vm1031_vm9 = vcmp.eq.f32.partialorder %v3608_v52, 0.0 }
 0x162   : > { %v1297_v60 = vsel %vm1295_vm1, %v1296_v19, %v1294_v24  ;;  %v1390_v56 = vsel %vm1389_vm2, %v3577_v47, %v1388_v27  ;;  %v616_v14 = vmul.f32 %v608_v21, %v608_v21  ;;  %v2272_v30 = vpop.eup %2271  ;;  %v1136_v36 = vadd.f32 1e-10, %v1122_v11  ;;  %v3726_v35 = vpop.xlane.xlu1 %1254 }
 0x163   : > { %v1393_v12 = vsel %vm1391_vm3, %v1392_v44, %v1390_v56  ;;  %v1566_v5 = vmul.f32 %v2270_v31, %v3588_v39  ;;  %1470 = vadd.xlane.f32.xlu0 %v1459_v25  ;;  %v1731_v20 = vmul.f32 %v1723_v1, %v1723_v1  ;;  %v3693_v8 = vpop.eup %2273  ;;  %v1662_v19 = vmul.f32 %v2272_v30, %v3602_v33 }
 0x164   : > { %v1032_v15 = vand.u32 2147483648, %v3608_v52  ;;  %vm1125_vm10 = vcmp.eq.f32.partialorder %v3629_v54, inf  ;;  %vm1127_vm11 = vcmp.eq.f32.partialorder %v3629_v54, 0.0  ;;  %v1317_v46 = vadd.f32 1e-10, %v1297_v60 }
 0x165   : > { %v2276_v51 = vpop.eup %2275  ;;  %v1568_v47 = vsel %vm1567_vm4, %v3588_v39, %v1566_v5  ;;  %v628_v9 = vmul.f32 %v3487_v55, %v616_v14  ;;  %v1743_v16 = vmul.f32 %v3550_v53, %v1731_v20  ;;  %v1413_v34 = vadd.f32 1e-10, %v1393_v12 }
 0x166   : > { %v2278_v44 = vpop.eup %2277  ;;  %v1571_v18 = vsel %vm1569_vm5, %v1570_v17, %v1568_v47  ;;  %v1664_v29 = vsel %vm1663_vm6, %v3602_v33, %v1662_v19  ;;  %v1028_v45 = vmul.f32 %v2276_v51, %v3608_v52  ;;  %2281 = vrcp.f32 %v1136_v36  ;;  %v3744_v31 = vpop.xlane.xlu1 %1533 }
 0x167   : > { %v1597_v0 = vadd.f32 1e-10, %v1571_v18  ;;  %v1667_v57 = vsel %vm1665_vm7, %v1666_v23, %v1664_v29  ;;  %v1124_v63 = vmul.f32 %v2278_v44, %v3629_v54  ;;  %642 = vadd.xlane.f32.xlu0 %v628_v9  ;;  %1753 = vadd.xlane.f32.xlu1 %v1743_v16  ;;  %v1128_v17 = vand.u32 2147483648, %v3629_v54 }
 0x168   : > { %v1693_v22 = vadd.f32 1e-10, %v1667_v57  ;;  %v1030_v39 = vsel %vm1029_vm8, %v3608_v52, %v1028_v45  ;;  %2283 = vrsqrt.f32 %v3672_v49  ;;  %vm1300_vm12 = vcmp.eq.f32.partialorder %v3647_v28, inf  ;;  %v2396_v52 = vld [vmem:[%s2492_s29 + $0x70] sm:$0xff] }
 0x169   : > { %v2280_v62 = vpop.eup %2279  ;;  %2285 = vrcp.f32 %v1317_v46  ;;  %v1033_v33 = vsel %vm1031_vm9, %v1032_v15, %v1030_v39  ;;  %v1126_v23 = vsel %vm1125_vm10, %v3629_v54, %v1124_v63  ;;  %v1303_v38 = vand.u32 2147483648, %v3647_v28  ;;  %v3738_v54 = vpop.xlane.xlu0 %1350  ;;  %v2400_v15 = vld [vmem:[%s2492_s29 + $0xe0] sm:$0xff]  ;;  %v2402_v39 = vld [vmem:[%s2492_s29 + $0x38] sm:$0xff] }
 0x16a   : > { %2287 = vrcp.f32 %v1413_v34  ;;  %v1041_v50 = vadd.f32 1e-10, %v1033_v33  ;;  %v1129_v4 = vsel %vm1127_vm11, %v1128_v17, %v1126_v23  ;;  %v1299_v58 = vmul.f32 %v2280_v62, %v3647_v28  ;;  %v2401_v46 = vld [vmem:[%s2513_s9 + $0xe0] sm:$0xff]  ;;  %v3781_v18 = vpop.xlane.xlu1 %1535  ;;  %v2403_v62 = vld [vmem:[%s2513_s9 + $0x38] sm:$0xff] }
 0x16b   : > { %2289 = vrcp.f32 %v1597_v0  ;;  %v874_v3 = vmul.f32 %v2396_v52, %v3503_v26  ;;  %v882_v27 = vmul.f32 %v2397_v6, %v3537_v42  ;;  %v1137_v21 = vadd.f32 1e-10, %v1129_v4  ;;  %v2398_v26 = vld [vmem:[%s2492_s29 + $0xa8] sm:$0xff]  ;;  %v2404_v4 = vld [vmem:[%s2559_s13 + $0x18] sm:$0xff] }
 0x16c   : > { %2291 = vrcp.f32 %v1693_v22  ;;  %v1301_v11 = vsel %vm1300_vm12, %v3647_v28, %v1299_v58  ;;  %vm1302_vm13 = vcmp.eq.f32.partialorder %v3647_v28, 0.0  ;;  %v1151_v42 = vmul.f32 %v2398_v26, %v3604_v40  ;;  %v2399_v28 = vld [vmem:[%s2513_s9 + $0xa8] sm:$0xff] }
 0x16d   : > { %2293 = vrcp.f32 %v1041_v50  ;;  %v1304_v24 = vsel %vm1302_vm13, %v1303_v38, %v1301_v11  ;;  %v890_v25 = vsub.f32 %v874_v3, %v882_v27  ;;  %vm1396_vm14 = vcmp.eq.f32.partialorder %v3672_v49, inf  ;;  %v2405_v38 = vld [vmem:[%s2566_s16 + $0x18] sm:$0xff] }
 0x16e   : > { %2295 = vrsqrt.f32 %v3691_v41  ;;  %v1318_v60 = vadd.f32 1e-10, %v1304_v24  ;;  %v1159_v56 = vmul.f32 %v2399_v28, %v3610_v7  ;;  %vm1398_vm15 = vcmp.eq.f32.partialorder %v3672_v49, 0.0  ;;  %v3758_v7 = vpop.xlane.xlu0 %1629 }
 0x16f   : > { %v898_v1 = vmul.f32 %v890_v25, %v890_v25  ;;  %2297 = vrsqrt.f32 %v3710_v43  ;;  %v1399_v30 = vand.u32 2147483648, %v3672_v49  ;;  %vm1574_vm0 = vcmp.eq.f32.partialorder %v3691_v41, inf }
 0x170   : > { %2299 = vrcp.f32 %v1137_v21  ;;  %v3749_v14 = vpop.eup %2281  ;;  %v1577_v12 = vand.u32 2147483648, %v3691_v41  ;;  %v1167_v5 = vsub.f32 %v1151_v42, %v1159_v56  ;;  %vm1576_vm1 = vcmp.eq.f32.partialorder %v3691_v41, 0.0 }
 0x171   : > { %v906_v36 = vmul.f32 %v3487_v55, %v898_v1  ;;  %2301 = vrsqrt.f32 %v3726_v35  ;;  %vm1670_vm2 = vcmp.eq.f32.partialorder %v3710_v43, inf  ;;  %v1428_v51 = vmul.f32 %v2400_v15, %v3617_v2 }
 0x172   : > { %v2284_v40 = vpop.eup %2283  ;;  %2303 = vrsqrt.f32 %v3738_v54  ;;  %v1436_v47 = vmul.f32 %v2401_v46, %v3624_v13  ;;  %vm1672_vm3 = vcmp.eq.f32.partialorder %v3710_v43, 0.0  ;;  %v1673_v16 = vand.u32 2147483648, %v3710_v43  ;;  %v3805_v3 = vpop.xlane.xlu0 %1631 }
 0x173   : > { %v3760_v20 = vpop.eup %2285  ;;  %v1395_v19 = vmul.f32 %v2284_v40, %v3672_v49  ;;  %920 = vadd.xlane.f32.xlu1 %v906_v36  ;;  %2305 = vrsqrt.f32 %v3744_v31  ;;  %v1175_v44 = vmul.f32 %v1167_v5, %v1167_v5  ;;  %vm1307_vm4 = vcmp.eq.f32.partialorder %v3726_v35, inf }
 0x174   : > { %v3770_v9 = vpop.eup %2287  ;;  %2307 = vrcp.f32 %v1318_v60  ;;  %v1444_v13 = vsub.f32 %v1428_v51, %v1436_v47  ;;  %vm1309_vm5 = vcmp.eq.f32.partialorder %v3726_v35, 0.0  ;;  %v1310_v0 = vand.u32 2147483648, %v3726_v35 }
 0x175   : > { %v3774_v34 = vpop.eup %2289  ;;  %v1397_v2 = vsel %vm1396_vm14, %v3672_v49, %v1395_v19  ;;  %2309 = vrsqrt.f32 %v3758_v7  ;;  %v1183_v45 = vmul.f32 %v3487_v55, %v1175_v44  ;;  %vm1403_vm6 = vcmp.eq.f32.partialorder %v3738_v54, inf }
 0x176   : > { %v3783_v29 = vpop.eup %2291  ;;  %v1406_v57 = vand.u32 2147483648, %v3738_v54  ;;  %vm1405_vm7 = vcmp.eq.f32.partialorder %v3738_v54, 0.0  ;;  %v1452_v22 = vmul.f32 %v1444_v13, %v1444_v13  ;;  %vm1581_vm8 = vcmp.eq.f32.partialorder %v3744_v31, inf }
 0x177   : > { %v3790_v63 = vpop.eup %2293  ;;  %v593_v17 = vmul.f32 %v2402_v39, %v2774_v32  ;;  %v601_v33 = vmul.f32 %v2403_v62, %v2908_v10  ;;  %v1400_v50 = vsel %vm1398_vm15, %v1399_v30, %v1397_v2  ;;  %1196 = vadd.xlane.f32.xlu0 %v1183_v45  ;;  %v1708_v58 = vmul.f32 %v2404_v4, %v3631_v59  ;;  %v3854_v39 = vpop.xlane.xlu1 %1788  ;;  %v2407_v62 = vld [vmem:[%s2513_s9 + $0x78] sm:$0xff] }
 0x178   : > { %v2296_v23 = vpop.eup %2295  ;;  %v1716_v52 = vmul.f32 %v2405_v38, %v3637_v61  ;;  %2311 = vrsqrt.f32 %v3781_v18  ;;  %v1460_v10 = vmul.f32 %v3487_v55, %v1452_v22  ;;  %vm1583_vm9 = vcmp.eq.f32.partialorder %v3744_v31, 0.0 }
 0x179   : > { %v2298_v6 = vpop.eup %2297  ;;  %v1573_v32 = vmul.f32 %v2296_v23, %v3691_v41  ;;  %v609_v49 = vsub.f32 %v593_v17, %v601_v33  ;;  %v1584_v59 = vand.u32 2147483648, %v3744_v31  ;;  %vm1677_vm10 = vcmp.eq.f32.partialorder %v3758_v7, inf  ;;  %v3861_v23 = vpop.xlane.xlu0 %1790 }
 0x17a   : > { %v3810_v27 = vpop.eup %2299  ;;  %v1669_v21 = vmul.f32 %v2298_v6, %v3710_v43  ;;  %v1724_v61 = vsub.f32 %v1708_v58, %v1716_v52  ;;  %v1414_v24 = vadd.f32 1e-10, %v1400_v50  ;;  %1472 = vadd.xlane.f32.xlu1 %v1460_v10  ;;  %vm1679_vm11 = vcmp.eq.f32.partialorder %v3758_v7, 0.0 }
 0x17b   : > { %v2302_v11 = vpop.eup %2301  ;;  %v1575_v25 = vsel %vm1574_vm0, %v3691_v41, %v1573_v32  ;;  %v617_v1 = vmul.f32 %v609_v49, %v609_v49  ;;  %2313 = vrsqrt.f32 %v3805_v3  ;;  %v1680_v44 = vand.u32 2147483648, %v3758_v7 }
 0x17c   : > { %v2304_v26 = vpop.eup %2303  ;;  %v1578_v42 = vsel %vm1576_vm1, %v1577_v12, %v1575_v25  ;;  %v1671_v60 = vsel %vm1670_vm2, %v3710_v43, %v1669_v21  ;;  %v1306_v28 = vmul.f32 %v2302_v11, %v3726_v35  ;;  %v1732_v56 = vmul.f32 %v1724_v61, %v1724_v61  ;;  %v2408_v11 = vld [vmem:[%s2492_s29 + $0xb0] sm:$0xff] }
 0x17d   : > { %v2306_v30 = vpop.eup %2305  ;;  %v1598_v36 = vadd.f32 1e-10, %v1578_v42  ;;  %v1674_v40 = vsel %vm1672_vm3, %v1673_v16, %v1671_v60  ;;  %v1402_v5 = vmul.f32 %v2304_v26, %v3738_v54  ;;  %v629_v19 = vmul.f32 %v3487_v55, %v617_v1  ;;  %v3887_v25 = vpop.xlane.xlu0 %1814  ;;  %v2409_v26 = vld [vmem:[%s2513_s9 + $0xb0] sm:$0xff] }
 0x17e   : > { %v3832_v15 = vpop.eup %2307  ;;  %v1694_v41 = vadd.f32 1e-10, %v1674_v40  ;;  %v1308_v12 = vsel %vm1307_vm4, %v3726_v35, %v1306_v28  ;;  %v1580_v51 = vmul.f32 %v2306_v30, %v3744_v31  ;;  %v1744_v46 = vmul.f32 %v3550_v53, %v1732_v56  ;;  %v2410_v40 = vld [vmem:[%s2492_s29 + $0xe8] sm:$0xff] }
 0x17f   : > { %v2310_v47 = vpop.eup %2309  ;;  %v1311_v43 = vsel %vm1309_vm5, %v1310_v0, %v1308_v12  ;;  %v1404_v16 = vsel %vm1403_vm6, %v3738_v54, %v1402_v5  ;;  %644 = vadd.xlane.f32.xlu1 %v629_v19  ;;  %vm1588_vm12 = vcmp.eq.f32.partialorder %v3781_v18, inf  ;;  %2315 = vrcp.f32 %v1414_v24  ;;  %v2406_v54 = vld [vmem:[%s2492_s29 + $0x78] sm:$0xff]  ;;  %v2411_v19 = vld [vmem:[%s2513_s9 + $0xe8] sm:$0xff] }
 0x180   : > { %v1319_v2 = vadd.f32 1e-10, %v1311_v43  ;;  %v1407_v13 = vsel %vm1405_vm7, %v1406_v57, %v1404_v16  ;;  %v1582_v35 = vsel %vm1581_vm8, %v3744_v31, %v1580_v51  ;;  %1755 = vadd.xlane.f32.xlu0 %v1744_v46  ;;  %2317 = vrcp.f32 %v1598_v36  ;;  %v2412_v46 = vld [vmem:[%s2559_s13 + $0x20] sm:$0xff] }
 0x181   : > { %v1415_v45 = vadd.f32 1e-10, %v1407_v13  ;;  %v1585_v0 = vsel %vm1583_vm9, %v1584_v59, %v1582_v35  ;;  %v1676_v22 = vmul.f32 %v2310_v47, %v3758_v7  ;;  %2319 = vrcp.f32 %v1694_v41  ;;  %v3881_v59 = vpop.xlane.xlu1 %1812  ;;  %v2413_v43 = vld [vmem:[%s2566_s16 + $0x20] sm:$0xff]  ;;  %v2415_v35 = vld [vmem:[%s2513_s9 + $0xb8] sm:$0xff] }
 0x182   : > { %v2312_v17 = vpop.eup %2311  ;;  %vm1590_vm13 = vcmp.eq.f32.partialorder %v3781_v18, 0.0  ;;  %v875_v57 = vmul.f32 %v2406_v54, %v3665_v48  ;;  %v883_v33 = vmul.f32 %v2407_v62, %v3674_v37  ;;  %2321 = vrcp.f32 %v1319_v2  ;;  %v2418_v54 = vld [vmem:[%s2559_s13 + $0x28] sm:$0xff] }
 0x183   : > { %v1599_v50 = vadd.f32 1e-10, %v1585_v0  ;;  %v1678_v31 = vsel %vm1677_vm10, %v3758_v7, %v1676_v22  ;;  %v1587_v4 = vmul.f32 %v2312_v17, %v3781_v18  ;;  %2323 = vrcp.f32 %v1415_v45  ;;  %v2416_v45 = vld [vmem:[%s2492_s29 + $0xf0] sm:$0xff]  ;;  %v2419_v62 = vld [vmem:[%s2566_s16 + $0x28] sm:$0xff] }
 0x184   : > { %v1681_v58 = vsel %vm1679_vm11, %v1680_v44, %v1678_v31  ;;  %v1591_v38 = vand.u32 2147483648, %v3781_v18  ;;  %v891_v48 = vsub.f32 %v875_v57, %v883_v33  ;;  %vm1684_vm14 = vcmp.eq.f32.partialorder %v3805_v3, inf  ;;  %v2414_v44 = vld [vmem:[%s2492_s29 + $0xb8] sm:$0xff]  ;;  %v2417_v22 = vld [vmem:[%s2513_s9 + $0xf0] sm:$0xff] }
 0x185   : > { %v2314_v52 = vpop.eup %2313  ;;  %v1695_v6 = vadd.f32 1e-10, %v1681_v58  ;;  %v1589_v37 = vsel %vm1588_vm12, %v3781_v18, %v1587_v4  ;;  %2325 = vrsqrt.f32 %v3854_v39  ;;  %vm1686_vm15 = vcmp.eq.f32.partialorder %v3805_v3, 0.0 }
 0x186   : > { %v1592_v32 = vsel %vm1590_vm13, %v1591_v38, %v1589_v37  ;;  %v1683_v7 = vmul.f32 %v2314_v52, %v3805_v3  ;;  %v899_v10 = vmul.f32 %v891_v48, %v891_v48  ;;  %2327 = vrsqrt.f32 %v3861_v23 }
 0x187   : > { %2329 = vrcp.f32 %v1599_v50  ;;  %v1600_v49 = vadd.f32 1e-10, %v1592_v32  ;;  %v1687_v21 = vand.u32 2147483648, %v3805_v3  ;;  %v1152_v24 = vmul.f32 %v2408_v11, %v3693_v8 }
 0x188   : > { %2331 = vrcp.f32 %v1695_v6  ;;  %v1685_v61 = vsel %vm1684_vm14, %v3805_v3, %v1683_v7  ;;  %v907_v18 = vmul.f32 %v3487_v55, %v899_v10  ;;  %vm1794_vm0 = vcmp.eq.f32.partialorder %v3854_v39, inf  ;;  %v2420_v6 = vld [vmem:[%s2492_s29 + $0xf8] sm:$0xff] }
 0x189   : > { %2333 = vrcp.f32 %v1600_v49  ;;  %v1688_v1 = vsel %vm1686_vm15, %v1687_v21, %v1685_v61  ;;  %v1160_v42 = vmul.f32 %v2409_v26, %v3749_v14  ;;  %v2316_v60 = vpop.eup %2315  ;;  %vm1796_vm1 = vcmp.eq.f32.partialorder %v3854_v39, 0.0 }
 0x18a   : > { %v1696_v28 = vadd.f32 1e-10, %v1688_v1  ;;  %922 = vadd.xlane.f32.xlu0 %v907_v18  ;;  %v1797_v3 = vand.u32 2147483648, %v3854_v39  ;;  %vm1801_vm2 = vcmp.eq.f32.partialorder %v3861_v23, inf  ;;  %2335 = vrsqrt.f32 %v3881_v59  ;;  %v2318_v8 = vpop.eup %2317 }
 0x18b   : > { %vm1803_vm3 = vcmp.eq.f32.partialorder %v3861_v23, 0.0  ;;  %v1804_v14 = vand.u32 2147483648, %v3861_v23  ;;  %v1168_v56 = vsub.f32 %v1152_v24, %v1160_v42  ;;  %2337 = vrsqrt.f32 %v3887_v25  ;;  %v2320_v30 = vpop.eup %2319 }
 0x18c   : > { %2339 = vrcp.f32 %v1696_v28  ;;  %v1821_v36 = vand.u32 2147483648, %v3881_v59  ;;  %v1429_v5 = vmul.f32 %v2410_v40, %v3760_v20  ;;  %v1437_v41 = vmul.f32 %v2411_v19, %v3770_v9  ;;  %v2322_v12 = vpop.eup %2321  ;;  %v2422_v19 = vld [vmem:[%s2559_s13 + $0x30] sm:$0xff] }
 0x18d   : > { %v1176_v51 = vmul.f32 %v1168_v56, %v1168_v56  ;;  %v1709_v47 = vmul.f32 %v2412_v46, %v3774_v34  ;;  %v1717_v16 = vmul.f32 %v2413_v43, %v3783_v29  ;;  %v1153_v2 = vmul.f32 %v2414_v44, %v3790_v63  ;;  %v2324_v13 = vpop.eup %2323 }
 0x18e   : > { %vm1818_vm4 = vcmp.eq.f32.partialorder %v3881_v59, inf  ;;  %v1445_v20 = vsub.f32 %v1429_v5, %v1437_v41  ;;  %v1161_v9 = vmul.f32 %v2415_v35, %v3810_v27  ;;  %v1430_v0 = vmul.f32 %v2416_v45, %v3832_v15  ;;  %v2425_v35 = vld [vmem:[%s2566_s16 + $0x38] sm:$0xff] }
 0x18f   : > { %v1438_v34 = vmul.f32 %v2417_v22, %v2316_v60  ;;  %v2326_v17 = vpop.eup %2325  ;;  %v1184_v29 = vmul.f32 %v3487_v55, %v1176_v51  ;;  %vm1820_vm5 = vcmp.eq.f32.partialorder %v3881_v59, 0.0  ;;  %vm1825_vm6 = vcmp.eq.f32.partialorder %v3887_v25, inf }
 0x190   : > { %v1725_v63 = vsub.f32 %v1709_v47, %v1717_v16  ;;  %v1710_v57 = vmul.f32 %v2418_v54, %v2318_v8  ;;  %v1718_v33 = vmul.f32 %v2419_v62, %v2320_v30  ;;  %v2328_v50 = vpop.eup %2327  ;;  %v1793_v27 = vmul.f32 %v2326_v17, %v3854_v39  ;;  %v2421_v30 = vld [vmem:[%s2513_s9 + $0xf8] sm:$0xff] }
 0x191   : > { %v1453_v31 = vmul.f32 %v1445_v20, %v1445_v20  ;;  %v1169_v15 = vsub.f32 %v1153_v2, %v1161_v9  ;;  %v1446_v4 = vsub.f32 %v1430_v0, %v1438_v34  ;;  %v2330_v58 = vpop.eup %2329  ;;  %v1800_v38 = vmul.f32 %v2328_v50, %v3861_v23  ;;  %1198 = vadd.xlane.f32.xlu1 %v1184_v29  ;;  %v2424_v16 = vld [vmem:[%s2559_s13 + $0x38] sm:$0xff]  ;;  %v2426_v50 = vld [vmem:[%s2625_s20] sm:$0xff] }
 0x192   : > { %v1733_v48 = vmul.f32 %v1725_v63, %v1725_v63  ;;  %v1726_v52 = vsub.f32 %v1710_v57, %v1718_v33  ;;  %v1431_v37 = vmul.f32 %v2420_v6, %v2322_v12  ;;  %v2332_v32 = vpop.eup %2331  ;;  %v1795_v7 = vsel %vm1794_vm0, %v3854_v39, %v1793_v27  ;;  %v2423_v12 = vld [vmem:[%s2566_s16 + $0x30] sm:$0xff] }
 0x193   : > { %v1461_v10 = vmul.f32 %v3487_v55, %v1453_v31  ;;  %v1177_v49 = vmul.f32 %v1169_v15, %v1169_v15  ;;  %v1454_v21 = vmul.f32 %v1446_v4, %v1446_v4  ;;  %v2334_v61 = vpop.eup %2333  ;;  %v1798_v18 = vsel %vm1796_vm1, %v1797_v3, %v1795_v7  ;;  %v2427_v31 = vld [vmem:[%s2639_s23] sm:$0xff]  ;;  %v2428_v15 = vld [vmem:[%s2625_s20 + $0x8] sm:$0xff] }
 0x194   : > { %v1802_v11 = vsel %vm1801_vm2, %v3861_v23, %v1800_v38  ;;  %v1745_v24 = vmul.f32 %v3550_v53, %v1733_v48  ;;  %v1734_v1 = vmul.f32 %v1726_v52, %v1726_v52  ;;  %v2336_v26 = vpop.eup %2335  ;;  %vm1827_vm7 = vcmp.eq.f32.partialorder %v3887_v25, 0.0  ;;  %v1996_v52 = vld [vmem:[%s3983_s6 + $0x2] ss:$0 sm:$0xff] }
 0x195   : > { %v1805_v42 = vsel %vm1803_vm3, %v1804_v14, %v1802_v11  ;;  %v1828_v60 = vand.u32 2147483648, %v3887_v25  ;;  %1474 = vadd.xlane.f32.xlu0 %v1461_v10  ;;  %v1185_v39 = vmul.f32 %v3487_v55, %v1177_v49  ;;  %v2338_v28 = vpop.eup %2337  ;;  %v1806_v3 = vadd.f32 1e-10, %v1798_v18  ;;  %v633_v10 = vpop.xlane.xlu1 %632 }
 0x196   : > { %v1817_v8 = vmul.f32 %v2336_v26, %v3881_v59  ;;  %1757 = vadd.xlane.f32.xlu1 %v1745_v24  ;;  %v1462_v56 = vmul.f32 %v3487_v55, %v1454_v21  ;;  %v1439_v23 = vmul.f32 %v2421_v30, %v2324_v13  ;;  %v2340_v40 = vpop.eup %2339  ;;  %v1807_v14 = vadd.f32 1e-10, %v1805_v42  ;;  %v631_v49 = vpop.xlane.xlu0 %630 }
 0x197   : > { %v1824_v5 = vmul.f32 %v2338_v28, %v3887_v25  ;;  %v1711_v41 = vmul.f32 %v2422_v19, %v2330_v58  ;;  %v1719_v51 = vmul.f32 %v2423_v12, %v2332_v32  ;;  %v1746_v47 = vmul.f32 %v3550_v53, %v1734_v1  ;;  %v2429_v58 = vld [vmem:[%s2639_s23 + $0x8] sm:$0xff] }
 0x198   : > { %v1819_v46 = vsel %vm1818_vm4, %v3881_v59, %v1817_v8  ;;  %v1447_v43 = vsub.f32 %v1431_v37, %v1439_v23  ;;  %v1712_v44 = vmul.f32 %v2424_v16, %v2334_v61  ;;  %v1720_v9 = vmul.f32 %v2425_v35, %v2340_v40 }
 0x199   : > { %v1822_v2 = vsel %vm1820_vm5, %v1821_v36, %v1819_v46  ;;  %v1826_v13 = vsel %vm1825_vm6, %v3887_v25, %v1824_v5  ;;  %1200 = vadd.xlane.f32.xlu0 %v1185_v39  ;;  %v1727_v20 = vsub.f32 %v1711_v41, %v1719_v51  ;;  %2341 = vrcp.f32 %v1806_v3  ;;  %v911_v21 = vpop.xlane.xlu1 %910 }
 0x19a   : > { %v1830_v45 = vadd.f32 1e-10, %v1822_v2  ;;  %v1829_v0 = vsel %vm1827_vm7, %v1828_v60, %v1826_v13  ;;  %1476 = vadd.xlane.f32.xlu1 %v1462_v56  ;;  %v1455_v22 = vmul.f32 %v1447_v43, %v1447_v43  ;;  %2343 = vrcp.f32 %v1807_v14  ;;  %v909_v61 = vpop.xlane.xlu0 %908 }
 0x19b   : > { %v1831_v34 = vadd.f32 1e-10, %v1829_v0  ;;  %v1735_v17 = vmul.f32 %v1727_v20, %v1727_v20  ;;  %v1728_v59 = vsub.f32 %v1712_v44, %v1720_v9  ;;  %v924_v44 = vadd.f32 %v911_v21, %v909_v61 }
 0x19c   : > { %2345 = vrcp.f32 %v1830_v45  ;;  %v1463_v36 = vmul.f32 %v3487_v55, %v1455_v22  ;;  %v646_v13 = vadd.f32 %v633_v10, %v631_v49 }
 0x19d   : > { %2347 = vrcp.f32 %v1831_v34  ;;  %1759 = vadd.xlane.f32.xlu0 %v1746_v47  ;;  %v1747_v29 = vmul.f32 %v3550_v53, %v1735_v17  ;;  %v1736_v63 = vmul.f32 %v1728_v59, %v1728_v59 }
 0x19e   : > { %1478 = vadd.xlane.f32.xlu1 %v1463_v36  ;;  %v635_v11 = vpop.xlane.xlu0 %634 }
 0x19f   : > { %v1748_v25 = vmul.f32 %v3550_v53, %v1736_v63  ;;  %v647_v9 = vadd.f32 %v646_v13, %v635_v11 }
 0x1a1   : > { %1761 = vadd.xlane.f32.xlu0 %v1747_v29  ;;  %v913_v18 = vpop.xlane.xlu1 %912 }
 0x1a2   : > { %1763 = vadd.xlane.f32.xlu1 %v1748_v25  ;;  %v925_v20 = vadd.f32 %v924_v44, %v913_v18 }
 0x1a3   : > { %v2342_v54 = vpop.eup %2341 }
 0x1a4   : > { %v2344_v57 = vpop.eup %2343  ;;  %v1834_v27 = vmul.f32 %v2426_v50, %v2342_v54 }
 0x1a5   : > { %v1835_v4 = vmul.f32 %v2428_v15, %v2344_v57 }
 0x1a6   : > { %v2346_v62 = vpop.eup %2345 }
 0x1a7   : > { %v2348_v33 = vpop.eup %2347  ;;  %v1836_v55 = vmul.f32 %v2427_v31, %v2346_v62 }
 0x1a8   : > { %v1837_v38 = vmul.f32 %v2429_v58, %v2348_v33  ;;  %v1187_v1 = vpop.xlane.xlu0 %1186 }
 0x1a9   : > { %v1838_v48 = vsub.f32 %v1834_v27, %v1836_v55  ;;  %v1189_v24 = vpop.xlane.xlu1 %1188 }
 0x1aa   : > { %v1839_v53 = vsub.f32 %v1835_v4, %v1837_v38  ;;  %v1202_v35 = vadd.f32 %v1189_v24, %v1187_v1 }
 0x1ab   : > { %v1840_v6 = vmul.f32 %v1838_v48, %v1838_v48 }
 0x1ac   : > { %v1841_v37 = vmul.f32 %v1839_v53, %v1839_v53 }
 0x1ad   : > { %v1846_v32 = vmul.f32 %v1996_v52, %v1840_v6 }
 0x1ae   : > { %v1847_v7 = vmul.f32 %v1996_v52, %v1841_v37 }
 0x1af   : > { %1848 = vadd.xlane.f32.xlu0 %v1846_v32 }
 0x1b0   : > { %1850 = vadd.xlane.f32.xlu1 %v1847_v7 }
 0x1b8   : > { %v637_v42 = vpop.xlane.xlu0 %636 }
 0x1b9   : > { %v648_v17 = vadd.f32 %v647_v9, %v637_v42 }
 0x1bb   : > { %v915_v26 = vpop.xlane.xlu1 %914 }
 0x1bc   : > { %v1191_v39 = vpop.xlane.xlu0 %1190  ;;  %v926_v45 = vadd.f32 %v925_v20, %v915_v26 }
 0x1bd   : > { %v1203_v0 = vadd.f32 %v1202_v35, %v1191_v39 }
 0x1bf   : > { %v1465_v60 = vpop.xlane.xlu1 %1464 }
 0x1c0   : > { %v1467_v3 = vpop.xlane.xlu0 %1466 }
 0x1c1   : > { %v1480_v59 = vadd.f32 %v1467_v3, %v1465_v60 }
 0x1ca   : > { %v917_v56 = vpop.xlane.xlu0 %916 }
 0x1cb   : > { %v927_v36 = vadd.f32 %v926_v45, %v917_v56 }
 0x1d1   : > { %v1469_v23 = vpop.xlane.xlu0 %1468 }
 0x1d2   : > { %v1481_v25 = vadd.f32 %v1480_v59, %v1469_v23 }
 0x1d6   : > { %v639_v28 = vpop.xlane.xlu1 %638 }
 0x1d7   : > { %v649_v63 = vadd.f32 %v648_v17, %v639_v28 }
 0x1da   : > { %v1193_v8 = vpop.xlane.xlu1 %1192 }
 0x1db   : > { %v1204_v29 = vadd.f32 %v1203_v0, %v1193_v8 }
 0x1de   : > { %v1750_v30 = vpop.xlane.xlu1 %1749 }
 0x1df   : > { %v1752_v40 = vpop.xlane.xlu0 %1751 }
 0x1e0   : > { %v1765_v15 = vadd.f32 %v1752_v40, %v1750_v30 }
 0x1e7   : > { %v641_v14 = vpop.xlane.xlu1 %640 }
 0x1e8   : > { %v919_v5 = vpop.xlane.xlu0 %918  ;;  %v650_v50 = vadd.f32 %v649_v63, %v641_v14 }
 0x1e9   : > { %v928_v54 = vadd.f32 %v927_v36, %v919_v5 }
 0x1eb   : > { %v1195_v19 = vpop.xlane.xlu1 %1194 }
 0x1ec   : > { %v1205_v57 = vadd.f32 %v1204_v29, %v1195_v19 }
 0x1f0   : > { %v1471_v41 = vpop.xlane.xlu0 %1470 }
 0x1f1   : > { %v1482_v27 = vadd.f32 %v1481_v25, %v1471_v41 }
 0x1f4   : > { %v1754_v12 = vpop.xlane.xlu1 %1753  ;;  %v643_v51 = vpop.xlane.xlu0 %642 }
 0x1f5   : > { %v651_v4 = vadd.f32 %v650_v50, %v643_v51  ;;  %v1766_v53 = vadd.f32 %v1765_v15, %v1754_v12 }
 0x200   : > { %v921_v46 = vpop.xlane.xlu1 %920 }
 0x201   : > { %v929_v31 = vadd.f32 %v928_v54, %v921_v46 }
 0x204   : > { %v1197_v47 = vpop.xlane.xlu0 %1196 }
 0x205   : > { %v1206_v55 = vadd.f32 %v1205_v57, %v1197_v47 }
 0x207   : > { %v1473_v43 = vpop.xlane.xlu1 %1472 }
 0x208   : > { %v1483_v58 = vadd.f32 %v1482_v27, %v1473_v43 }
 0x20c   : > { %v645_v2 = vpop.xlane.xlu1 %644 }
 0x20d   : > { %v1756_v16 = vpop.xlane.xlu0 %1755  ;;  %v652_v37 = vadd.f32 %v651_v4, %v645_v2 }
 0x20e   : > { %v1767_v10 = vadd.f32 %v1766_v53, %v1756_v16 }
 0x20f   : > { %v653_v24 = vrot.slane %v652_v37, 4 }
 0x211   : > { %v654_v56 = vadd.f32 %v653_v24, %v652_v37 }
 0x213   : > { %v655_v19 = vrot.slane %v654_v56, 2 }
 0x215   : > { %v656_v47 = vadd.f32 %v655_v19, %v654_v56 }
 0x217   : > { %v923_v22 = vpop.xlane.xlu0 %922  ;;  %v657_v13 = vrot.slane %v656_v47, 1 }
 0x218   : > { %v930_v38 = vadd.f32 %v929_v31, %v923_v22 }
 0x219   : > { %v658_v17 = vadd.f32 %v657_v13, %v656_v47 }
 0x21a   : > { %v931_v49 = vrot.slane %v930_v38, 4 }
 0x21c   : > { %v932_v60 = vadd.f32 %v931_v49, %v930_v38 }
 0x21e   : > { %v1199_v34 = vpop.xlane.xlu1 %1198  ;;  %v933_v40 = vrot.slane %v932_v60, 2 }
 0x21f   : > { %v1207_v48 = vadd.f32 %v1206_v55, %v1199_v34 }
 0x220   : > { %v934_v51 = vadd.f32 %v933_v40, %v932_v60 }
 0x222   : > { %v1475_v62 = vpop.xlane.xlu0 %1474  ;;  %v935_v44 = vrot.slane %v934_v51, 1 }
 0x223   : > { %v1758_v33 = vpop.xlane.xlu1 %1757  ;;  %v1484_v32 = vadd.f32 %v1483_v58, %v1475_v62 }
 0x224   : > { %v1768_v18 = vadd.f32 %v1767_v10, %v1758_v33  ;;  %v936_v0 = vadd.f32 %v935_v44, %v934_v51 }
 0x226   : > { %v1201_v52 = vpop.xlane.xlu0 %1200  ;;  %v937_v63 = vadd.f32 %v936_v0, %v658_v17 }
 0x227   : > { %v1477_v6 = vpop.xlane.xlu1 %1476  ;;  %v1208_v7 = vadd.f32 %v1207_v48, %v1201_v52 }
 0x228   : > { %v1485_v21 = vadd.f32 %v1484_v32, %v1477_v6 }
 0x229   : > { %v1209_v1 = vrot.slane %v1208_v7, 4 }
 0x22a   : > { %v1760_v61 = vpop.xlane.xlu0 %1759 }
 0x22b   : > { %v1479_v11 = vpop.xlane.xlu1 %1478  ;;  %v1769_v42 = vadd.f32 %v1768_v18, %v1760_v61  ;;  %v1210_v30 = vadd.f32 %v1209_v1, %v1208_v7 }
 0x22c   : > { %v1486_v26 = vadd.f32 %v1485_v21, %v1479_v11 }
 0x22d   : > { %v1211_v41 = vrot.slane %v1210_v30, 2 }
 0x22e   : > { %v1487_v39 = vrot.slane %v1486_v26, 4  ;;  %v1762_v28 = vpop.xlane.xlu0 %1761 }
 0x22f   : > { %v1770_v3 = vadd.f32 %v1769_v42, %v1762_v28  ;;  %v1764_v8 = vpop.xlane.xlu1 %1763  ;;  %v1212_v43 = vadd.f32 %v1211_v41, %v1210_v30 }
 0x230   : > { %v1488_v14 = vadd.f32 %v1487_v39, %v1486_v26 }
 0x231   : > { %v1771_v23 = vadd.f32 %v1770_v3, %v1764_v8  ;;  %v1213_v20 = vrot.slane %v1212_v43, 1 }
 0x232   : > { %v1489_v46 = vrot.slane %v1488_v14, 2 }
 0x233   : > { %v1772_v5 = vrot.slane %v1771_v23, 4  ;;  %v1214_v59 = vadd.f32 %v1213_v20, %v1212_v43 }
 0x234   : > { %v1490_v2 = vadd.f32 %v1489_v46, %v1488_v14 }
 0x235   : > { %v1773_v12 = vadd.f32 %v1772_v5, %v1771_v23  ;;  %v1215_v57 = vadd.f32 %v1214_v59, %v937_v63 }
 0x236   : > { %v1491_v22 = vrot.slane %v1490_v2, 1 }
 0x237   : > { %v1774_v16 = vrot.slane %v1773_v12, 2 }
 0x238   : > { %v1492_v25 = vadd.f32 %v1491_v22, %v1490_v2 }
 0x239   : > { %v1775_v35 = vadd.f32 %v1774_v16, %v1773_v12 }
 0x23a   : > { %v1493_v50 = vadd.f32 %v1492_v25, %v1215_v57 }
 0x23b   : > { %v1776_v36 = vrot.slane %v1775_v35, 1 }
 0x23c   : > { %v1849_v9 = vpop.xlane.xlu0 %1848  ;;  %v1494_v15 = vmul.f32 0.00390625, %v1493_v50 }
 0x23d   : > { %v1851_v45 = vpop.xlane.xlu1 %1850  ;;  %v1777_v62 = vadd.f32 %v1776_v36, %v1775_v35 }
 0x23e   : > { %v1852_v34 = vadd.f32 %v1851_v45, %v1849_v9 }
 0x23f   : > { %v1779_v31 = vmul.f32 0.015625, %v1777_v62 }
 0x240   : > { %v1853_v29 = vrot.slane %v1852_v34, 4 }
 0x241   : > { %v1780_v58 = vadd.f32 %v1779_v31, %v1494_v15 }
 0x242   : > { %v1854_v54 = vadd.f32 %v1853_v29, %v1852_v34 }
 0x244   : > { %v1855_v33 = vrot.slane %v1854_v54, 2 }
 0x246   : > { %v1856_v27 = vadd.f32 %v1855_v33, %v1854_v54 }
 0x248   : > { %v1857_v55 = vrot.slane %v1856_v27, 1 }
 0x24a   : > { %v1858_v4 = vadd.f32 %v1857_v55, %v1856_v27 }
 0x24c   : > { %v1860_v38 = vmul.f32 0.0625, %v1858_v4 }
 0x24e   : > { %v1861_v48 = vadd.f32 %v1860_v38, %v1780_v58 }
 0x250   : > { %1862 = vst [vmem:[%s376_s14] sm:$0xff] %v1861_v48 }
 0x251 PF: > { %s17_s24 = sadd.s32 1, %s2436_s24  }
 0x252   : > { %p14_p4 = scmp.ge.s32.totalorder %s17_s24, 4  }
 0x254   :  { %16 = sbr.rel (!%p14_p4) target bundleno = 1 (0x1), region = 93 }

</bundles_post_ra>
